<compile_context>
chip_gen: v7x
topology: tpu7x:2x2x1
jax: 0.10.0
libtpu: 0.0.40
codegen_flags: <defaults>
</compile_context>

<pallas_src>
import functools

import jax
import jax.numpy as jnp
import numpy as np
from jax import lax
from jax.experimental import pallas as pl
from jax.experimental.pallas import tpu as pltpu

BN_EPS = 1e-5
LANE = 128
_VMEM_LIMIT = 32 * 1024 * 1024          # explicit scoped-VMEM budget (fits all chips)


def _rup(n, m):
    return ((n + m - 1) // m) * m


def _pad2d(a, r, c):
    return jnp.pad(a, ((0, r - a.shape[0]), (0, c - a.shape[1])))


def _padc(v, n):
    return jnp.pad(v.astype(jnp.float32), (0, n - v.shape[0]))


def _tiles(m, target=512):
    """Pick an M tile (multiple of 16) of roughly `target` rows, and the padded M."""
    nt = max(1, -(-m // target))
    tm = _rup(-(-m // nt), 16)
    return tm, tm * nt


# ----------------------------------------------------------------------------
# Pallas kernels
# ----------------------------------------------------------------------------
def _mm_stats_kernel(x_ref, w_ref, o_ref, s_ref):
    """Pass A (1x1 conv): one lane-dense matmul per M tile + per-tile BN partials."""
    acc = jnp.dot(x_ref[...], w_ref[...], preferred_element_type=jnp.float32)
    o_ref[...] = acc
    s_ref[0, 0:1, :] = jnp.sum(acc, axis=0, keepdims=True)
    s_ref[0, 1:2, :] = jnp.sum(acc * acc, axis=0, keepdims=True)


def _bn_relu_kernel(x_ref, sc_ref, bi_ref, o_ref, *, m_true, tm, masked):
    """Pass B: y = relu(raw * scale + bias); zero out padded rows so they never
    pollute the next stage's batch statistics."""
    y = jnp.maximum(x_ref[...] * sc_ref[...] + bi_ref[...], 0.0)
    if masked:
        row = pl.program_id(0) * tm + lax.broadcasted_iota(jnp.int32, y.shape, 0)
        y = jnp.where(row < m_true, y, 0.0)
    o_ref[...] = y.astype(o_ref.dtype)


def _deconv_res_kernel(a_ref, w_ref, m_ref, o_ref, s_ref, *,
                       s0y, s0x, Jy, Jx, Ho_r, Wo_rp):
    """One sub-pixel residue class of the ConvTranspose2d.

    a_ref : (1, Hp, Wp, Cp) zero-padded post-BN-ReLU activations for one image.
    The Jy*Jx spatial taps are gathered here (in VMEM) and folded into a single
    (M, Jy*Jx*Cp) @ (Jy*Jx*Cp, Cp) contraction -> one MXU push per image.
    m_ref zeroes the lane-alignment padding columns so BN partials stay exact.
    """
    cp = a_ref.shape[-1]
    cols = []
    for fy in range(Jy):
        for fx in range(Jx):
            win = a_ref[0, s0y + fy:s0y + fy + Ho_r, s0x + fx:s0x + fx + Wo_rp, :]
            cols.append(win.reshape(Ho_r * Wo_rp, cp))
    xt = cols[0] if len(cols) == 1 else jnp.concatenate(cols, axis=-1)
    acc = jnp.dot(xt, w_ref[...], preferred_element_type=jnp.float32)
    acc = acc * m_ref[...]
    o_ref[0] = acc
    s_ref[0, 0:1, :] = jnp.sum(acc, axis=0, keepdims=True)
    s_ref[0, 1:2, :] = jnp.sum(acc * acc, axis=0, keepdims=True)


# ----------------------------------------------------------------------------
# pallas_call wrappers
# ----------------------------------------------------------------------------
def _run_mm_stats(x_p, w_p, tm):
    mp, cin_p = x_p.shape
    co_p = w_p.shape[1]
    nt = mp // tm
    return pl.pallas_call(
        _mm_stats_kernel,
        grid=(nt,),
        in_specs=[pl.BlockSpec((tm, cin_p), lambda i: (i, 0)),
                  pl.BlockSpec((cin_p, co_p), lambda i: (0, 0))],
        out_specs=(pl.BlockSpec((tm, co_p), lambda i: (i, 0)),
                   pl.BlockSpec((1, 2, co_p), lambda i: (i, 0, 0))),
        out_shape=(jax.ShapeDtypeStruct((mp, co_p), jnp.float32),
                   jax.ShapeDtypeStruct((nt, 2, co_p), jnp.float32)),
        compiler_params=pltpu.CompilerParams(
            dimension_semantics=("parallel",),
            vmem_limit_bytes=_VMEM_LIMIT),
    )(x_p, w_p)


def _run_bn_relu(raw_p, scale, bias, m_true, tm, out_dtype):
    mp, cp = raw_p.shape
    nt = mp // tm
    kern = functools.partial(_bn_relu_kernel, m_true=m_true, tm=tm,
                             masked=(mp != m_true))
    return pl.pallas_call(
        kern,
        grid=(nt,),
        in_specs=[pl.BlockSpec((tm, cp), lambda i: (i, 0)),
                  pl.BlockSpec((1, cp), lambda i: (0, 0)),
                  pl.BlockSpec((1, cp), lambda i: (0, 0))],
        out_specs=pl.BlockSpec((tm, cp), lambda i: (i, 0)),
        out_shape=jax.ShapeDtypeStruct((mp, cp), out_dtype),
        compiler_params=pltpu.CompilerParams(
            dimension_semantics=("parallel",),
            vmem_limit_bytes=_VMEM_LIMIT),
    )(raw_p, scale, bias)


def _bn_scale_bias(st, count, gamma_p, beta_p):
    """Fold training-mode BN (biased batch stats) into a per-channel scale/bias."""
    mean = st[0] / count
    var = jnp.maximum(st[1] / count - mean * mean, 0.0)
    inv = lax.rsqrt(var + BN_EPS)
    scale = gamma_p * inv
    bias = beta_p - mean * scale
    return scale.reshape(1, -1), bias.reshape(1, -1)


# ----------------------------------------------------------------------------
# Sub-pixel decomposition bookkeeping (ConvTranspose2d -> s*s stride-1 convs)
# ----------------------------------------------------------------------------
def _residues(k, s, p):
    """Static geometry of each (ry, rx) output residue class."""
    out = []
    for ry in range(s):
        for rx in range(s):
            out.append(dict(
                ry=ry, rx=rx,
                Jy=-(-(k - ry) // s), Jx=-(-(k - rx) // s),
                oy0=(ry - p) % s, ox0=(rx - p) % s,
                q0y=((ry - p) % s + p - ry) // s,
                q0x=((rx - p) % s + p - rx) // s))
    return out


def pack_params(params, k, s, p, compute_dtype=jnp.bfloat16):
    """Pre-pack all weights once: lane-padded, tap-folded, matmul-ready."""
    mid, cin = params["w1"].shape[0], params["w1"].shape[1]
    cout = params["w2"].shape[0]
    cin_p, mid_p, cout_p = _rup(cin, LANE), _rup(mid, LANE), _rup(cout, LANE)
    wt = params["wt"]                                    # (in, out, k, k)
    packed = {
        "w1": _pad2d(params["w1"][:, :, 0, 0].T, cin_p, mid_p).astype(compute_dtype),
        "w2": _pad2d(params["w2"][:, :, 0, 0].T, mid_p, cout_p).astype(compute_dtype),
        "g1": _padc(params["g1"], mid_p), "b1": _padc(params["b1"], mid_p),
        "g2": _padc(params["g2"], mid_p), "b2": _padc(params["b2"], mid_p),
        "g3": _padc(params["g3"], cout_p), "b3": _padc(params["b3"], cout_p),
        "wt_res": [],
    }
    for r in _residues(k, s, p):
        blocks = []
        for fy in range(r["Jy"]):
            for fx in range(r["Jx"]):
                ky = r["ry"] + s * (r["Jy"] - 1 - fy)
                kx = r["rx"] + s * (r["Jx"] - 1 - fx)
                blocks.append(_pad2d(wt[:, :, ky, kx], mid_p, mid_p))
        packed["wt_res"].append(jnp.concatenate(blocks, axis=0).astype(compute_dtype))
    return packed


# ----------------------------------------------------------------------------
# Decoder forward
# ----------------------------------------------------------------------------
def decoder_forward(x_nchw, packed, *, k, s, p, op, out_planes,
                    compute_dtype=jnp.bfloat16):
    N, cin, H, W = x_nchw.shape
    cin_p, mid_p = packed["w1"].shape
    cout_p = packed["w2"].shape[1]
    Ho = (H - 1) * s - 2 * p + k + op
    Wo = (W - 1) * s - 2 * p + k + op

    # ------------------ stage 1: 1x1 conv + BN + ReLU (two tiled passes) -----
    M1 = N * H * W
    tm1, mp1 = _tiles(M1)
    x2d = jnp.transpose(x_nchw, (0, 2, 3, 1)).reshape(M1, cin)
    x2d = jnp.pad(x2d, ((0, mp1 - M1), (0, cin_p - cin))).astype(compute_dtype)
    raw1, st1 = _run_mm_stats(x2d, packed["w1"], tm1)
    sc1, bi1 = _bn_scale_bias(st1.sum(axis=0), M1, packed["g1"], packed["b1"])
    a1 = _run_bn_relu(raw1, sc1, bi1, M1, tm1, compute_dtype)
    a1 = a1[:M1].reshape(N, H, W, mid_p)

    # ------------------ stage 2: ConvTranspose2d via sub-pixel residues ------
    geo = []
    for r in _residues(k, s, p):
        ho_r = max(0, -(-(Ho - r["oy0"]) // s))
        wo_r = max(0, -(-(Wo - r["ox0"]) // s))
        geo.append({**r, "Ho_r": ho_r, "Wo_r": wo_r, "Wo_rp": _rup(max(wo_r, 1), 16)})
    act = [g for g in geo if g["Ho_r"] > 0 and g["Wo_r"] > 0]
    pad_lo_y = max(max(0, g["Jy"] - 1 - g["q0y"]) for g in act)
    pad_hi_y = max(max(0, g["q0y"] + g["Ho_r"] - H) for g in act)
    pad_lo_x = max(max(0, g["Jx"] - 1 - g["q0x"]) for g in act)
    pad_hi_x = max(max(0, g["q0x"] + g["Wo_rp"] - W) for g in act)
    a1p = jnp.pad(a1, ((0, 0), (pad_lo_y, pad_hi_y), (pad_lo_x, pad_hi_x), (0, 0)))
    Hp, Wp = H + pad_lo_y + pad_hi_y, W + pad_lo_x + pad_hi_x

    raw_parts, st2 = [], 0.0
    for i, g in enumerate(geo):
        if g["Ho_r"] <= 0 or g["Wo_r"] <= 0:
            continue
        mr = g["Ho_r"] * g["Wo_rp"]
        s0y = g["q0y"] - g["Jy"] + 1 + pad_lo_y
        s0x = g["q0x"] - g["Jx"] + 1 + pad_lo_x
        mask = jnp.tile((jnp.arange(g["Wo_rp"]) < g["Wo_r"]).astype(jnp.float32),
                        g["Ho_r"]).reshape(mr, 1)
        wk = packed["wt_res"][i]
        kern = functools.partial(_deconv_res_kernel, s0y=s0y, s0x=s0x,
                                 Jy=g["Jy"], Jx=g["Jx"],
                                 Ho_r=g["Ho_r"], Wo_rp=g["Wo_rp"])
        raw_r, st_r = pl.pallas_call(
            kern,
            grid=(N,),
            in_specs=[pl.BlockSpec((1, Hp, Wp, mid_p), lambda n: (n, 0, 0, 0)),
                      pl.BlockSpec(wk.shape, lambda n: (0, 0)),
                      pl.BlockSpec((mr, 1), lambda n: (0, 0))],
            out_specs=(pl.BlockSpec((1, mr, mid_p), lambda n: (n, 0, 0)),
                       pl.BlockSpec((1, 2, mid_p), lambda n: (n, 0, 0))),
            out_shape=(jax.ShapeDtypeStruct((N, mr, mid_p), jnp.float32),
                       jax.ShapeDtypeStruct((N, 2, mid_p), jnp.float32)),
            compiler_params=pltpu.CompilerParams(
                dimension_semantics=("parallel",),
                vmem_limit_bytes=_VMEM_LIMIT),
        )(a1p, wk, mask)
        raw_r = raw_r.reshape(N, g["Ho_r"], g["Wo_rp"], mid_p)[:, :, :g["Wo_r"], :]
        raw_parts.append(raw_r.reshape(N * g["Ho_r"] * g["Wo_r"], mid_p))
        st2 = st2 + st_r.sum(axis=0)
    raw2 = jnp.concatenate(raw_parts, axis=0)                # (N*Ho*Wo, mid_p)

    M2 = N * Ho * Wo
    tm2, mp2 = _tiles(M2)
    sc2, bi2 = _bn_scale_bias(st2, M2, packed["g2"], packed["b2"])
    raw2 = jnp.pad(raw2, ((0, mp2 - M2), (0, 0)))
    a2 = _run_bn_relu(raw2, sc2, bi2, M2, tm2, compute_dtype)

    # ------------------ stage 3: 1x1 conv + BN + ReLU -------------------------
    raw3, st3 = _run_mm_stats(a2, packed["w2"], tm2)
    sc3, bi3 = _bn_scale_bias(st3.sum(axis=0), M2, packed["g3"], packed["b3"])
    y3 = _run_bn_relu(raw3, sc3, bi3, M2, tm2, jnp.float32)
    y3 = y3[:M2, :out_planes]

    # ------------------ interleave the s*s sub-pixel grids --------------------
    out = jnp.zeros((N, Ho, Wo, out_planes), jnp.float32)
    off = 0
    for g in geo:
        if g["Ho_r"] <= 0 or g["Wo_r"] <= 0:
            continue
        cnt = N * g["Ho_r"] * g["Wo_r"]
        blk = y3[off:off + cnt].reshape(N, g["Ho_r"], g["Wo_r"], out_planes)
        out = out.at[:, g["oy0"]::s, g["ox0"]::s, :].set(blk)
        off += cnt
    return jnp.transpose(out, (0, 3, 1, 2))                   # NCHW


# ----------------------------------------------------------------------------
# Pure-JAX reference (mirrors the PyTorch forward, training-mode BN) + params
# ----------------------------------------------------------------------------
def ref_decoder(x, params, k, s, p, op):
    dn = ("NCHW", "OIHW", "NCHW")
    hp = lax.Precision.HIGHEST

    def bn_relu(y, g, b):
        mean = jnp.mean(y, axis=(0, 2, 3), keepdims=True)
        var = jnp.mean(jnp.square(y - mean), axis=(0, 2, 3), keepdims=True)
        yn = (y - mean) * lax.rsqrt(var + BN_EPS)
        return jnp.maximum(yn * g[None, :, None, None] + b[None, :, None, None], 0.0)

    y = lax.conv_general_dilated(x, params["w1"], (1, 1), "VALID",
                                 dimension_numbers=dn, precision=hp)
    y = bn_relu(y, params["g1"], params["b1"])
    w_conv = jnp.transpose(params["wt"], (1, 0, 2, 3))[:, :, ::-1, ::-1]
    pad = ((k - 1 - p, k - 1 - p + op), (k - 1 - p, k - 1 - p + op))
    y = lax.conv_general_dilated(y, w_conv, (1, 1), pad, lhs_dilation=(s, s),
                                 dimension_numbers=dn, precision=hp)
    y = bn_relu(y, params["g2"], params["b2"])
    y = lax.conv_general_dilated(y, params["w2"], (1, 1), "VALID",
                                 dimension_numbers=dn, precision=hp)
    return bn_relu(y, params["g3"], params["b3"])


def init_params(key, in_planes, out_planes, k):
    mid = in_planes // 4
    ks = jax.random.split(key, 9)
    return {
        # Conv2d weights are OIHW, ConvTranspose2d weight is (in, out, kh, kw)
        "w1": 0.2 * jax.random.normal(ks[0], (mid, in_planes, 1, 1), jnp.float32),
        "wt": 0.2 * jax.random.normal(ks[1], (mid, mid, k, k), jnp.float32),
        "w2": 0.2 * jax.random.normal(ks[2], (out_planes, mid, 1, 1), jnp.float32),
        "g1": 1.0 + 0.1 * jax.random.normal(ks[3], (mid,), jnp.float32),
        "b1": 0.1 * jax.random.normal(ks[4], (mid,), jnp.float32),
        "g2": 1.0 + 0.1 * jax.random.normal(ks[5], (mid,), jnp.float32),
        "b2": 0.1 * jax.random.normal(ks[6], (mid,), jnp.float32),
        "g3": 1.0 + 0.1 * jax.random.normal(ks[7], (out_planes,), jnp.float32),
        "b3": 0.1 * jax.random.normal(ks[8], (out_planes,), jnp.float32),
    }


if __name__ == "__main__":
    in_planes, out_planes = 64, 32
    k, s, p, op = 3, 2, 1, 1              # kernel_size, stride, padding, output_padding
    N, H, W = 2, 12, 12

    key = jax.random.PRNGKey(0)
    kx, kp = jax.random.split(key)
    x = jax.random.normal(kx, (N, in_planes, H, W), jnp.float32)   # NCHW like PyTorch
    params = init_params(kp, in_planes, out_planes, k)

    ref = ref_decoder(x, params, k, s, p, op)
    Ho = (H - 1) * s - 2 * p + k + op

    fwd = jax.jit(decoder_forward,
                  static_argnames=("k", "s", "p", "op", "out_planes", "compute_dtype"))

    # f32 operand mode: validates exact module semantics (tight tolerance).
    packed_f32 = pack_params(params, k, s, p, compute_dtype=jnp.float32)
    out_f32 = jax.block_until_ready(
        fwd(x, packed_f32, k=k, s=s, p=p, op=op, out_planes=out_planes,
            compute_dtype=jnp.float32))
    assert out_f32.shape == (N, out_planes, Ho, Ho), out_f32.shape
    np.testing.assert_allclose(np.asarray(out_f32), np.asarray(ref),
                               rtol=2e-3, atol=2e-3)

    # bf16 operand / f32 accumulate mode: the MXU fast path for v5e/v6e/v7x.
    # Looser tolerance only reflects bf16 operand rounding (~3 decimal digits).
    packed_bf16 = pack_params(params, k, s, p, compute_dtype=jnp.bfloat16)
    out_bf16 = jax.block_until_ready(
        fwd(x, packed_bf16, k=k, s=s, p=p, op=op, out_planes=out_planes,
            compute_dtype=jnp.bfloat16))
    np.testing.assert_allclose(np.asarray(out_bf16), np.asarray(ref),
                               rtol=4e-2, atol=4e-2)

    print("KERNEL_OK")
</pallas_src>

<mosaic_0001>
module attributes {stable_mosaic.version = 11 : i64} {
  func.func @_bn_relu_kernel(%arg0: i32, %arg1: memref<288x128xf32, #tpu.memory_space<vmem>>, %arg2: memref<1x128xf32, #tpu.memory_space<vmem>>, %arg3: memref<1x128xf32, #tpu.memory_space<vmem>>, %arg4: memref<288x128xf32, #tpu.memory_space<vmem>>) attributes {dimension_semantics = [#tpu.dimension_semantics<parallel>], iteration_bounds = array<i64: 1>, scalar_prefetch = 0 : i64, scratch_operands = 0 : i64, tpu.core_type = #tpu.core_type<tc>, window_params = [{transform_indices = @transform_0, window_bounds = array<i64: 288, 128>}, {pipeline_mode = #tpu.pipeline_mode<synchronous>, transform_indices = @transform_1, window_bounds = array<i64: 1, 128>}, {pipeline_mode = #tpu.pipeline_mode<synchronous>, transform_indices = @transform_2, window_bounds = array<i64: 1, 128>}, {transform_indices = @transform_3, window_bounds = array<i64: 288, 128>}]} {
    %c0 = arith.constant 0 : index
    %c0_0 = arith.constant 0 : index
    %0 = vector.load %arg1[%c0, %c0_0] : memref<288x128xf32, #tpu.memory_space<vmem>>, vector<288x128xf32>
    %c0_1 = arith.constant 0 : index
    %c0_2 = arith.constant 0 : index
    %1 = vector.load %arg2[%c0_1, %c0_2] : memref<1x128xf32, #tpu.memory_space<vmem>>, vector<1x128xf32>
    %2 = vector.broadcast %1 : vector<1x128xf32> to vector<288x128xf32>
    %3 = arith.mulf %0, %2 : vector<288x128xf32>
    %c0_3 = arith.constant 0 : index
    %c0_4 = arith.constant 0 : index
    %4 = vector.load %arg3[%c0_3, %c0_4] : memref<1x128xf32, #tpu.memory_space<vmem>>, vector<1x128xf32>
    %5 = vector.broadcast %4 : vector<1x128xf32> to vector<288x128xf32>
    %6 = arith.addf %3, %5 : vector<288x128xf32>
    %cst = arith.constant 0.000000e+00 : f32
    %7 = vector.broadcast %cst : f32 to vector<288x128xf32>
    %8 = arith.maximumf %6, %7 : vector<288x128xf32>
    %c0_5 = arith.constant 0 : index
    %c0_6 = arith.constant 0 : index
    %9 = vector.load %arg4[%c0_5, %c0_6] : memref<288x128xf32, #tpu.memory_space<vmem>>, vector<288x128xf32>
    tpu.vector_store %arg4[%c0_5, %c0_6], %8 {strides = array<i32>} : memref<288x128xf32, #tpu.memory_space<vmem>>, vector<288x128xf32>,
    return
  }
  func.func @transform_0(%arg0: i32) -> (i32, i32) {
    %c0_i32 = arith.constant 0 : i32
    %c0_i32_0 = arith.constant 0 : i32
    return %arg0, %c0_i32 : i32, i32
  }
  func.func @transform_1(%arg0: i32) -> (i32, i32) {
    %c0_i32 = arith.constant 0 : i32
    %c0_i32_0 = arith.constant 0 : i32
    %c0_i32_1 = arith.constant 0 : i32
    return %c0_i32, %c0_i32_0 : i32, i32
  }
  func.func @transform_2(%arg0: i32) -> (i32, i32) {
    %c0_i32 = arith.constant 0 : i32
    %c0_i32_0 = arith.constant 0 : i32
    %c0_i32_1 = arith.constant 0 : i32
    return %c0_i32, %c0_i32_0 : i32, i32
  }
  func.func @transform_3(%arg0: i32) -> (i32, i32) {
    %c0_i32 = arith.constant 0 : i32
    %c0_i32_0 = arith.constant 0 : i32
    return %arg0, %c0_i32 : i32, i32
  }
}

module attributes {stable_mosaic.version = 11 : i64} {
  func.func @_mm_stats_kernel(%arg0: i32, %arg1: memref<288x128xf32, #tpu.memory_space<vmem>>, %arg2: memref<128x128xf32, #tpu.memory_space<vmem>>, %arg3: memref<288x128xf32, #tpu.memory_space<vmem>>, %arg4: memref<1x2x128xf32, #tpu.memory_space<vmem>>) attributes {dimension_semantics = [#tpu.dimension_semantics<parallel>], iteration_bounds = array<i64: 1>, scalar_prefetch = 0 : i64, scratch_operands = 0 : i64, tpu.core_type = #tpu.core_type<tc>, window_params = [{transform_indices = @transform_0, window_bounds = array<i64: 288, 128>}, {pipeline_mode = #tpu.pipeline_mode<synchronous>, transform_indices = @transform_1, window_bounds = array<i64: 128, 128>}, {transform_indices = @transform_2, window_bounds = array<i64: 288, 128>}, {transform_indices = @transform_3, window_bounds = array<i64: 1, 2, 128>}]} {
    %c0 = arith.constant 0 : index
    %c0_0 = arith.constant 0 : index
    %0 = vector.load %arg1[%c0, %c0_0] : memref<288x128xf32, #tpu.memory_space<vmem>>, vector<288x128xf32>
    %c0_1 = arith.constant 0 : index
    %c0_2 = arith.constant 0 : index
    %1 = vector.load %arg2[%c0_1, %c0_2] : memref<128x128xf32, #tpu.memory_space<vmem>>, vector<128x128xf32>
    %cst = arith.constant dense<0.000000e+00> : vector<288x128xf32>
    %2 = tpu.matmul %0, %1, %cst {dimension_numbers = #tpu.dot_dimension_numbers<[1], [0], [0], [1], [0, 0, 1, 1], [], []>} : vector<288x128xf32>, vector<128x128xf32>, vector<288x128xf32> -> vector<288x128xf32>
    %c0_3 = arith.constant 0 : index
    %c0_4 = arith.constant 0 : index
    %3 = vector.load %arg3[%c0_3, %c0_4] : memref<288x128xf32, #tpu.memory_space<vmem>>, vector<288x128xf32>
    tpu.vector_store %arg3[%c0_3, %c0_4], %2 {strides = array<i32>} : memref<288x128xf32, #tpu.memory_space<vmem>>, vector<288x128xf32>,
    %cst_5 = arith.constant dense<0.000000e+00> : vector<128xf32>
    %4 = vector.multi_reduction <add>, %2, %cst_5 [0] : vector<288x128xf32> to vector<128xf32>
    %5 = vector.shape_cast %4 : vector<128xf32> to vector<1x128xf32>
    %c0_6 = arith.constant 0 : index
    %c0_7 = arith.constant 0 : index
    %c0_8 = arith.constant 0 : index
    %6 = vector.load %arg4[%c0_6, %c0_7, %c0_8] : memref<1x2x128xf32, #tpu.memory_space<vmem>>, vector<1x1x128xf32>
    %7 = vector.shape_cast %6 : vector<1x1x128xf32> to vector<1x128xf32>
    %8 = vector.shape_cast %5 : vector<1x128xf32> to vector<1x1x128xf32>
    tpu.vector_store %arg4[%c0_6, %c0_7, %c0_8], %8 {strides = array<i32>} : memref<1x2x128xf32, #tpu.memory_space<vmem>>, vector<1x1x128xf32>,
    %9 = arith.mulf %2, %2 : vector<288x128xf32>
    %cst_9 = arith.constant dense<0.000000e+00> : vector<128xf32>
    %10 = vector.multi_reduction <add>, %9, %cst_9 [0] : vector<288x128xf32> to vector<128xf32>
    %11 = vector.shape_cast %10 : vector<128xf32> to vector<1x128xf32>
    %c0_10 = arith.constant 0 : index
    %c1 = arith.constant 1 : index
    %c0_11 = arith.constant 0 : index
    %12 = vector.load %arg4[%c0_10, %c1, %c0_11] : memref<1x2x128xf32, #tpu.memory_space<vmem>>, vector<1x1x128xf32>
    %13 = vector.shape_cast %12 : vector<1x1x128xf32> to vector<1x128xf32>
    %14 = vector.shape_cast %11 : vector<1x128xf32> to vector<1x1x128xf32>
    tpu.vector_store %arg4[%c0_10, %c1, %c0_11], %14 {strides = array<i32>} : memref<1x2x128xf32, #tpu.memory_space<vmem>>, vector<1x1x128xf32>,
    return
  }
  func.func @transform_0(%arg0: i32) -> (i32, i32) {
    %c0_i32 = arith.constant 0 : i32
    %c0_i32_0 = arith.constant 0 : i32
    return %arg0, %c0_i32 : i32, i32
  }
  func.func @transform_1(%arg0: i32) -> (i32, i32) {
    %c0_i32 = arith.constant 0 : i32
    %c0_i32_0 = arith.constant 0 : i32
    %c0_i32_1 = arith.constant 0 : i32
    return %c0_i32, %c0_i32_0 : i32, i32
  }
  func.func @transform_2(%arg0: i32) -> (i32, i32) {
    %c0_i32 = arith.constant 0 : i32
    %c0_i32_0 = arith.constant 0 : i32
    return %arg0, %c0_i32 : i32, i32
  }
  func.func @transform_3(%arg0: i32) -> (i32, i32, i32) {
    %c0_i32 = arith.constant 0 : i32
    %c0_i32_0 = arith.constant 0 : i32
    %c0_i32_1 = arith.constant 0 : i32
    return %arg0, %c0_i32, %c0_i32_0 : i32, i32, i32
  }
}

module attributes {stable_mosaic.version = 11 : i64} {
  func.func @_deconv_res_kernel(%arg0: i32, %arg1: memref<1x13x17x128xf32, #tpu.memory_space<vmem>>, %arg2: memref<128x128xf32, #tpu.memory_space<vmem>>, %arg3: memref<192x1xf32, #tpu.memory_space<vmem>>, %arg4: memref<1x192x128xf32, #tpu.memory_space<vmem>>, %arg5: memref<1x2x128xf32, #tpu.memory_space<vmem>>) attributes {dimension_semantics = [#tpu.dimension_semantics<parallel>], iteration_bounds = array<i64: 2>, scalar_prefetch = 0 : i64, scratch_operands = 0 : i64, tpu.core_type = #tpu.core_type<tc>, window_params = [{transform_indices = @transform_0, window_bounds = array<i64: 1, 13, 17, 128>}, {pipeline_mode = #tpu.pipeline_mode<synchronous>, transform_indices = @transform_1, window_bounds = array<i64: 128, 128>}, {pipeline_mode = #tpu.pipeline_mode<synchronous>, transform_indices = @transform_2, window_bounds = array<i64: 192, 1>}, {transform_indices = @transform_3, window_bounds = array<i64: 1, 192, 128>}, {transform_indices = @transform_4, window_bounds = array<i64: 1, 2, 128>}]} {
    %c0 = arith.constant 0 : index
    %c0_0 = arith.constant 0 : index
    %c0_1 = arith.constant 0 : index
    %c0_2 = arith.constant 0 : index
    %0 = vector.load %arg1[%c0, %c0_0, %c0_1, %c0_2] : memref<1x13x17x128xf32, #tpu.memory_space<vmem>>, vector<1x12x16x128xf32>
    %1 = vector.shape_cast %0 : vector<1x12x16x128xf32> to vector<12x16x128xf32>
    %2 = vector.shape_cast %1 : vector<12x16x128xf32> to vector<192x128xf32>
    %c0_3 = arith.constant 0 : index
    %c0_4 = arith.constant 0 : index
    %3 = vector.load %arg2[%c0_3, %c0_4] : memref<128x128xf32, #tpu.memory_space<vmem>>, vector<128x128xf32>
    %cst = arith.constant dense<0.000000e+00> : vector<192x128xf32>
    %4 = tpu.matmul %2, %3, %cst {dimension_numbers = #tpu.dot_dimension_numbers<[1], [0], [0], [1], [0, 0, 1, 1], [], []>} : vector<192x128xf32>, vector<128x128xf32>, vector<192x128xf32> -> vector<192x128xf32>
    %c0_5 = arith.constant 0 : index
    %c0_6 = arith.constant 0 : index
    %5 = vector.load %arg3[%c0_5, %c0_6] : memref<192x1xf32, #tpu.memory_space<vmem>>, vector<192x1xf32>
    %6 = vector.broadcast %5 : vector<192x1xf32> to vector<192x128xf32>
    %7 = arith.mulf %4, %6 : vector<192x128xf32>
    %c0_7 = arith.constant 0 : index
    %c0_8 = arith.constant 0 : index
    %c0_9 = arith.constant 0 : index
    %8 = vector.load %arg4[%c0_7, %c0_8, %c0_9] : memref<1x192x128xf32, #tpu.memory_space<vmem>>, vector<1x192x128xf32>
    %9 = vector.shape_cast %8 : vector<1x192x128xf32> to vector<192x128xf32>
    %10 = vector.shape_cast %7 : vector<192x128xf32> to vector<1x192x128xf32>
    tpu.vector_store %arg4[%c0_7, %c0_8, %c0_9], %10 {strides = array<i32>} : memref<1x192x128xf32, #tpu.memory_space<vmem>>, vector<1x192x128xf32>,
    %cst_10 = arith.constant dense<0.000000e+00> : vector<128xf32>
    %11 = vector.multi_reduction <add>, %7, %cst_10 [0] : vector<192x128xf32> to vector<128xf32>
    %12 = vector.shape_cast %11 : vector<128xf32> to vector<1x128xf32>
    %c0_11 = arith.constant 0 : index
    %c0_12 = arith.constant 0 : index
    %c0_13 = arith.constant 0 : index
    %13 = vector.load %arg5[%c0_11, %c0_12, %c0_13] : memref<1x2x128xf32, #tpu.memory_space<vmem>>, vector<1x1x128xf32>
    %14 = vector.shape_cast %13 : vector<1x1x128xf32> to vector<1x128xf32>
    %15 = vector.shape_cast %12 : vector<1x128xf32> to vector<1x1x128xf32>
    tpu.vector_store %arg5[%c0_11, %c0_12, %c0_13], %15 {strides = array<i32>} : memref<1x2x128xf32, #tpu.memory_space<vmem>>, vector<1x1x128xf32>,
    %16 = arith.mulf %7, %7 : vector<192x128xf32>
    %cst_14 = arith.constant dense<0.000000e+00> : vector<128xf32>
    %17 = vector.multi_reduction <add>, %16, %cst_14 [0] : vector<192x128xf32> to vector<128xf32>
    %18 = vector.shape_cast %17 : vector<128xf32> to vector<1x128xf32>
    %c0_15 = arith.constant 0 : index
    %c1 = arith.constant 1 : index
    %c0_16 = arith.constant 0 : index
    %19 = vector.load %arg5[%c0_15, %c1, %c0_16] : memref<1x2x128xf32, #tpu.memory_space<vmem>>, vector<1x1x128xf32>
    %20 = vector.shape_cast %19 : vector<1x1x128xf32> to vector<1x128xf32>
    %21 = vector.shape_cast %18 : vector<1x128xf32> to vector<1x1x128xf32>
    tpu.vector_store %arg5[%c0_15, %c1, %c0_16], %21 {strides = array<i32>} : memref<1x2x128xf32, #tpu.memory_space<vmem>>, vector<1x1x128xf32>,
    return
  }
  func.func @transform_0(%arg0: i32) -> (i32, i32, i32, i32) {
    %c0_i32 = arith.constant 0 : i32
    %c0_i32_0 = arith.constant 0 : i32
    %c0_i32_1 = arith.constant 0 : i32
    %c0_i32_2 = arith.constant 0 : i32
    return %arg0, %c0_i32, %c0_i32_0, %c0_i32_1 : i32, i32, i32, i32
  }
  func.func @transform_1(%arg0: i32) -> (i32, i32) {
    %c0_i32 = arith.constant 0 : i32
    %c0_i32_0 = arith.constant 0 : i32
    %c0_i32_1 = arith.constant 0 : i32
    return %c0_i32, %c0_i32_0 : i32, i32
  }
  func.func @transform_2(%arg0: i32) -> (i32, i32) {
    %c0_i32 = arith.constant 0 : i32
    %c0_i32_0 = arith.constant 0 : i32
    %c0_i32_1 = arith.constant 0 : i32
    return %c0_i32, %c0_i32_0 : i32, i32
  }
  func.func @transform_3(%arg0: i32) -> (i32, i32, i32) {
    %c0_i32 = arith.constant 0 : i32
    %c0_i32_0 = arith.constant 0 : i32
    %c0_i32_1 = arith.constant 0 : i32
    return %arg0, %c0_i32, %c0_i32_0 : i32, i32, i32
  }
  func.func @transform_4(%arg0: i32) -> (i32, i32, i32) {
    %c0_i32 = arith.constant 0 : i32
    %c0_i32_0 = arith.constant 0 : i32
    %c0_i32_1 = arith.constant 0 : i32
    return %arg0, %c0_i32, %c0_i32_0 : i32, i32, i32
  }
}

module attributes {stable_mosaic.version = 11 : i64} {
  func.func @_deconv_res_kernel(%arg0: i32, %arg1: memref<1x13x17x128xf32, #tpu.memory_space<vmem>>, %arg2: memref<256x128xf32, #tpu.memory_space<vmem>>, %arg3: memref<192x1xf32, #tpu.memory_space<vmem>>, %arg4: memref<1x192x128xf32, #tpu.memory_space<vmem>>, %arg5: memref<1x2x128xf32, #tpu.memory_space<vmem>>) attributes {dimension_semantics = [#tpu.dimension_semantics<parallel>], iteration_bounds = array<i64: 2>, scalar_prefetch = 0 : i64, scratch_operands = 0 : i64, tpu.core_type = #tpu.core_type<tc>, window_params = [{transform_indices = @transform_0, window_bounds = array<i64: 1, 13, 17, 128>}, {pipeline_mode = #tpu.pipeline_mode<synchronous>, transform_indices = @transform_1, window_bounds = array<i64: 256, 128>}, {pipeline_mode = #tpu.pipeline_mode<synchronous>, transform_indices = @transform_2, window_bounds = array<i64: 192, 1>}, {transform_indices = @transform_3, window_bounds = array<i64: 1, 192, 128>}, {transform_indices = @transform_4, window_bounds = array<i64: 1, 2, 128>}]} {
    %c0 = arith.constant 0 : index
    %c0_0 = arith.constant 0 : index
    %c0_1 = arith.constant 0 : index
    %c0_2 = arith.constant 0 : index
    %0 = vector.load %arg1[%c0, %c0_0, %c0_1, %c0_2] : memref<1x13x17x128xf32, #tpu.memory_space<vmem>>, vector<1x12x16x128xf32>
    %1 = vector.shape_cast %0 : vector<1x12x16x128xf32> to vector<12x16x128xf32>
    %2 = vector.shape_cast %1 : vector<12x16x128xf32> to vector<192x128xf32>
    %c0_3 = arith.constant 0 : index
    %c0_4 = arith.constant 0 : index
    %c1 = arith.constant 1 : index
    %c0_5 = arith.constant 0 : index
    %3 = vector.load %arg1[%c0_3, %c0_4, %c1, %c0_5] : memref<1x13x17x128xf32, #tpu.memory_space<vmem>>, vector<1x12x16x128xf32>
    %4 = vector.shape_cast %3 : vector<1x12x16x128xf32> to vector<12x16x128xf32>
    %5 = vector.shape_cast %4 : vector<12x16x128xf32> to vector<192x128xf32>
    %6 = tpu.concatenate %2, %5 in 1 : vector<192x128xf32>, vector<192x128xf32> -> vector<192x256xf32>
    %c0_6 = arith.constant 0 : index
    %c0_7 = arith.constant 0 : index
    %7 = vector.load %arg2[%c0_6, %c0_7] : memref<256x128xf32, #tpu.memory_space<vmem>>, vector<256x128xf32>
    %cst = arith.constant dense<0.000000e+00> : vector<192x128xf32>
    %8 = tpu.matmul %6, %7, %cst {dimension_numbers = #tpu.dot_dimension_numbers<[1], [0], [0], [1], [0, 0, 1, 1], [], []>} : vector<192x256xf32>, vector<256x128xf32>, vector<192x128xf32> -> vector<192x128xf32>
    %c0_8 = arith.constant 0 : index
    %c0_9 = arith.constant 0 : index
    %9 = vector.load %arg3[%c0_8, %c0_9] : memref<192x1xf32, #tpu.memory_space<vmem>>, vector<192x1xf32>
    %10 = vector.broadcast %9 : vector<192x1xf32> to vector<192x128xf32>
    %11 = arith.mulf %8, %10 : vector<192x128xf32>
    %c0_10 = arith.constant 0 : index
    %c0_11 = arith.constant 0 : index
    %c0_12 = arith.constant 0 : index
    %12 = vector.load %arg4[%c0_10, %c0_11, %c0_12] : memref<1x192x128xf32, #tpu.memory_space<vmem>>, vector<1x192x128xf32>
    %13 = vector.shape_cast %12 : vector<1x192x128xf32> to vector<192x128xf32>
    %14 = vector.shape_cast %11 : vector<192x128xf32> to vector<1x192x128xf32>
    tpu.vector_store %arg4[%c0_10, %c0_11, %c0_12], %14 {strides = array<i32>} : memref<1x192x128xf32, #tpu.memory_space<vmem>>, vector<1x192x128xf32>,
    %cst_13 = arith.constant dense<0.000000e+00> : vector<128xf32>
    %15 = vector.multi_reduction <add>, %11, %cst_13 [0] : vector<192x128xf32> to vector<128xf32>
    %16 = vector.shape_cast %15 : vector<128xf32> to vector<1x128xf32>
    %c0_14 = arith.constant 0 : index
    %c0_15 = arith.constant 0 : index
    %c0_16 = arith.constant 0 : index
    %17 = vector.load %arg5[%c0_14, %c0_15, %c0_16] : memref<1x2x128xf32, #tpu.memory_space<vmem>>, vector<1x1x128xf32>
    %18 = vector.shape_cast %17 : vector<1x1x128xf32> to vector<1x128xf32>
    %19 = vector.shape_cast %16 : vector<1x128xf32> to vector<1x1x128xf32>
    tpu.vector_store %arg5[%c0_14, %c0_15, %c0_16], %19 {strides = array<i32>} : memref<1x2x128xf32, #tpu.memory_space<vmem>>, vector<1x1x128xf32>,
    %20 = arith.mulf %11, %11 : vector<192x128xf32>
    %cst_17 = arith.constant dense<0.000000e+00> : vector<128xf32>
    %21 = vector.multi_reduction <add>, %20, %cst_17 [0] : vector<192x128xf32> to vector<128xf32>
    %22 = vector.shape_cast %21 : vector<128xf32> to vector<1x128xf32>
    %c0_18 = arith.constant 0 : index
    %c1_19 = arith.constant 1 : index
    %c0_20 = arith.constant 0 : index
    %23 = vector.load %arg5[%c0_18, %c1_19, %c0_20] : memref<1x2x128xf32, #tpu.memory_space<vmem>>, vector<1x1x128xf32>
    %24 = vector.shape_cast %23 : vector<1x1x128xf32> to vector<1x128xf32>
    %25 = vector.shape_cast %22 : vector<1x128xf32> to vector<1x1x128xf32>
    tpu.vector_store %arg5[%c0_18, %c1_19, %c0_20], %25 {strides = array<i32>} : memref<1x2x128xf32, #tpu.memory_space<vmem>>, vector<1x1x128xf32>,
    return
  }
  func.func @transform_0(%arg0: i32) -> (i32, i32, i32, i32) {
    %c0_i32 = arith.constant 0 : i32
    %c0_i32_0 = arith.constant 0 : i32
    %c0_i32_1 = arith.constant 0 : i32
    %c0_i32_2 = arith.constant 0 : i32
    return %arg0, %c0_i32, %c0_i32_0, %c0_i32_1 : i32, i32, i32, i32
  }
  func.func @transform_1(%arg0: i32) -> (i32, i32) {
    %c0_i32 = arith.constant 0 : i32
    %c0_i32_0 = arith.constant 0 : i32
    %c0_i32_1 = arith.constant 0 : i32
    return %c0_i32, %c0_i32_0 : i32, i32
  }
  func.func @transform_2(%arg0: i32) -> (i32, i32) {
    %c0_i32 = arith.constant 0 : i32
    %c0_i32_0 = arith.constant 0 : i32
    %c0_i32_1 = arith.constant 0 : i32
    return %c0_i32, %c0_i32_0 : i32, i32
  }
  func.func @transform_3(%arg0: i32) -> (i32, i32, i32) {
    %c0_i32 = arith.constant 0 : i32
    %c0_i32_0 = arith.constant 0 : i32
    %c0_i32_1 = arith.constant 0 : i32
    return %arg0, %c0_i32, %c0_i32_0 : i32, i32, i32
  }
  func.func @transform_4(%arg0: i32) -> (i32, i32, i32) {
    %c0_i32 = arith.constant 0 : i32
    %c0_i32_0 = arith.constant 0 : i32
    %c0_i32_1 = arith.constant 0 : i32
    return %arg0, %c0_i32, %c0_i32_0 : i32, i32, i32
  }
}

module attributes {stable_mosaic.version = 11 : i64} {
  func.func @_deconv_res_kernel(%arg0: i32, %arg1: memref<1x13x17x128xf32, #tpu.memory_space<vmem>>, %arg2: memref<256x128xf32, #tpu.memory_space<vmem>>, %arg3: memref<192x1xf32, #tpu.memory_space<vmem>>, %arg4: memref<1x192x128xf32, #tpu.memory_space<vmem>>, %arg5: memref<1x2x128xf32, #tpu.memory_space<vmem>>) attributes {dimension_semantics = [#tpu.dimension_semantics<parallel>], iteration_bounds = array<i64: 2>, scalar_prefetch = 0 : i64, scratch_operands = 0 : i64, tpu.core_type = #tpu.core_type<tc>, window_params = [{transform_indices = @transform_0, window_bounds = array<i64: 1, 13, 17, 128>}, {pipeline_mode = #tpu.pipeline_mode<synchronous>, transform_indices = @transform_1, window_bounds = array<i64: 256, 128>}, {pipeline_mode = #tpu.pipeline_mode<synchronous>, transform_indices = @transform_2, window_bounds = array<i64: 192, 1>}, {transform_indices = @transform_3, window_bounds = array<i64: 1, 192, 128>}, {transform_indices = @transform_4, window_bounds = array<i64: 1, 2, 128>}]} {
    %c0 = arith.constant 0 : index
    %c0_0 = arith.constant 0 : index
    %c0_1 = arith.constant 0 : index
    %c0_2 = arith.constant 0 : index
    %0 = vector.load %arg1[%c0, %c0_0, %c0_1, %c0_2] : memref<1x13x17x128xf32, #tpu.memory_space<vmem>>, vector<1x12x16x128xf32>
    %1 = vector.shape_cast %0 : vector<1x12x16x128xf32> to vector<12x16x128xf32>
    %2 = vector.shape_cast %1 : vector<12x16x128xf32> to vector<192x128xf32>
    %c0_3 = arith.constant 0 : index
    %c1 = arith.constant 1 : index
    %c0_4 = arith.constant 0 : index
    %c0_5 = arith.constant 0 : index
    %3 = vector.load %arg1[%c0_3, %c1, %c0_4, %c0_5] : memref<1x13x17x128xf32, #tpu.memory_space<vmem>>, vector<1x12x16x128xf32>
    %4 = vector.shape_cast %3 : vector<1x12x16x128xf32> to vector<12x16x128xf32>
    %5 = vector.shape_cast %4 : vector<12x16x128xf32> to vector<192x128xf32>
    %6 = tpu.concatenate %2, %5 in 1 : vector<192x128xf32>, vector<192x128xf32> -> vector<192x256xf32>
    %c0_6 = arith.constant 0 : index
    %c0_7 = arith.constant 0 : index
    %7 = vector.load %arg2[%c0_6, %c0_7] : memref<256x128xf32, #tpu.memory_space<vmem>>, vector<256x128xf32>
    %cst = arith.constant dense<0.000000e+00> : vector<192x128xf32>
    %8 = tpu.matmul %6, %7, %cst {dimension_numbers = #tpu.dot_dimension_numbers<[1], [0], [0], [1], [0, 0, 1, 1], [], []>} : vector<192x256xf32>, vector<256x128xf32>, vector<192x128xf32> -> vector<192x128xf32>
    %c0_8 = arith.constant 0 : index
    %c0_9 = arith.constant 0 : index
    %9 = vector.load %arg3[%c0_8, %c0_9] : memref<192x1xf32, #tpu.memory_space<vmem>>, vector<192x1xf32>
    %10 = vector.broadcast %9 : vector<192x1xf32> to vector<192x128xf32>
    %11 = arith.mulf %8, %10 : vector<192x128xf32>
    %c0_10 = arith.constant 0 : index
    %c0_11 = arith.constant 0 : index
    %c0_12 = arith.constant 0 : index
    %12 = vector.load %arg4[%c0_10, %c0_11, %c0_12] : memref<1x192x128xf32, #tpu.memory_space<vmem>>, vector<1x192x128xf32>
    %13 = vector.shape_cast %12 : vector<1x192x128xf32> to vector<192x128xf32>
    %14 = vector.shape_cast %11 : vector<192x128xf32> to vector<1x192x128xf32>
    tpu.vector_store %arg4[%c0_10, %c0_11, %c0_12], %14 {strides = array<i32>} : memref<1x192x128xf32, #tpu.memory_space<vmem>>, vector<1x192x128xf32>,
    %cst_13 = arith.constant dense<0.000000e+00> : vector<128xf32>
    %15 = vector.multi_reduction <add>, %11, %cst_13 [0] : vector<192x128xf32> to vector<128xf32>
    %16 = vector.shape_cast %15 : vector<128xf32> to vector<1x128xf32>
    %c0_14 = arith.constant 0 : index
    %c0_15 = arith.constant 0 : index
    %c0_16 = arith.constant 0 : index
    %17 = vector.load %arg5[%c0_14, %c0_15, %c0_16] : memref<1x2x128xf32, #tpu.memory_space<vmem>>, vector<1x1x128xf32>
    %18 = vector.shape_cast %17 : vector<1x1x128xf32> to vector<1x128xf32>
    %19 = vector.shape_cast %16 : vector<1x128xf32> to vector<1x1x128xf32>
    tpu.vector_store %arg5[%c0_14, %c0_15, %c0_16], %19 {strides = array<i32>} : memref<1x2x128xf32, #tpu.memory_space<vmem>>, vector<1x1x128xf32>,
    %20 = arith.mulf %11, %11 : vector<192x128xf32>
    %cst_17 = arith.constant dense<0.000000e+00> : vector<128xf32>
    %21 = vector.multi_reduction <add>, %20, %cst_17 [0] : vector<192x128xf32> to vector<128xf32>
    %22 = vector.shape_cast %21 : vector<128xf32> to vector<1x128xf32>
    %c0_18 = arith.constant 0 : index
    %c1_19 = arith.constant 1 : index
    %c0_20 = arith.constant 0 : index
    %23 = vector.load %arg5[%c0_18, %c1_19, %c0_20] : memref<1x2x128xf32, #tpu.memory_space<vmem>>, vector<1x1x128xf32>
    %24 = vector.shape_cast %23 : vector<1x1x128xf32> to vector<1x128xf32>
    %25 = vector.shape_cast %22 : vector<1x128xf32> to vector<1x1x128xf32>
    tpu.vector_store %arg5[%c0_18, %c1_19, %c0_20], %25 {strides = array<i32>} : memref<1x2x128xf32, #tpu.memory_space<vmem>>, vector<1x1x128xf32>,
    return
  }
  func.func @transform_0(%arg0: i32) -> (i32, i32, i32, i32) {
    %c0_i32 = arith.constant 0 : i32
    %c0_i32_0 = arith.constant 0 : i32
    %c0_i32_1 = arith.constant 0 : i32
    %c0_i32_2 = arith.constant 0 : i32
    return %arg0, %c0_i32, %c0_i32_0, %c0_i32_1 : i32, i32, i32, i32
  }
  func.func @transform_1(%arg0: i32) -> (i32, i32) {
    %c0_i32 = arith.constant 0 : i32
    %c0_i32_0 = arith.constant 0 : i32
    %c0_i32_1 = arith.constant 0 : i32
    return %c0_i32, %c0_i32_0 : i32, i32
  }
  func.func @transform_2(%arg0: i32) -> (i32, i32) {
    %c0_i32 = arith.constant 0 : i32
    %c0_i32_0 = arith.constant 0 : i32
    %c0_i32_1 = arith.constant 0 : i32
    return %c0_i32, %c0_i32_0 : i32, i32
  }
  func.func @transform_3(%arg0: i32) -> (i32, i32, i32) {
    %c0_i32 = arith.constant 0 : i32
    %c0_i32_0 = arith.constant 0 : i32
    %c0_i32_1 = arith.constant 0 : i32
    return %arg0, %c0_i32, %c0_i32_0 : i32, i32, i32
  }
  func.func @transform_4(%arg0: i32) -> (i32, i32, i32) {
    %c0_i32 = arith.constant 0 : i32
    %c0_i32_0 = arith.constant 0 : i32
    %c0_i32_1 = arith.constant 0 : i32
    return %arg0, %c0_i32, %c0_i32_0 : i32, i32, i32
  }
}

module attributes {stable_mosaic.version = 11 : i64} {
  func.func @_deconv_res_kernel(%arg0: i32, %arg1: memref<1x13x17x128xf32, #tpu.memory_space<vmem>>, %arg2: memref<512x128xf32, #tpu.memory_space<vmem>>, %arg3: memref<192x1xf32, #tpu.memory_space<vmem>>, %arg4: memref<1x192x128xf32, #tpu.memory_space<vmem>>, %arg5: memref<1x2x128xf32, #tpu.memory_space<vmem>>) attributes {dimension_semantics = [#tpu.dimension_semantics<parallel>], iteration_bounds = array<i64: 2>, scalar_prefetch = 0 : i64, scratch_operands = 0 : i64, tpu.core_type = #tpu.core_type<tc>, window_params = [{transform_indices = @transform_0, window_bounds = array<i64: 1, 13, 17, 128>}, {pipeline_mode = #tpu.pipeline_mode<synchronous>, transform_indices = @transform_1, window_bounds = array<i64: 512, 128>}, {pipeline_mode = #tpu.pipeline_mode<synchronous>, transform_indices = @transform_2, window_bounds = array<i64: 192, 1>}, {transform_indices = @transform_3, window_bounds = array<i64: 1, 192, 128>}, {transform_indices = @transform_4, window_bounds = array<i64: 1, 2, 128>}]} {
    %c0 = arith.constant 0 : index
    %c0_0 = arith.constant 0 : index
    %c0_1 = arith.constant 0 : index
    %c0_2 = arith.constant 0 : index
    %0 = vector.load %arg1[%c0, %c0_0, %c0_1, %c0_2] : memref<1x13x17x128xf32, #tpu.memory_space<vmem>>, vector<1x12x16x128xf32>
    %1 = vector.shape_cast %0 : vector<1x12x16x128xf32> to vector<12x16x128xf32>
    %2 = vector.shape_cast %1 : vector<12x16x128xf32> to vector<192x128xf32>
    %c0_3 = arith.constant 0 : index
    %c0_4 = arith.constant 0 : index
    %c1 = arith.constant 1 : index
    %c0_5 = arith.constant 0 : index
    %3 = vector.load %arg1[%c0_3, %c0_4, %c1, %c0_5] : memref<1x13x17x128xf32, #tpu.memory_space<vmem>>, vector<1x12x16x128xf32>
    %4 = vector.shape_cast %3 : vector<1x12x16x128xf32> to vector<12x16x128xf32>
    %5 = vector.shape_cast %4 : vector<12x16x128xf32> to vector<192x128xf32>
    %c0_6 = arith.constant 0 : index
    %c1_7 = arith.constant 1 : index
    %c0_8 = arith.constant 0 : index
    %c0_9 = arith.constant 0 : index
    %6 = vector.load %arg1[%c0_6, %c1_7, %c0_8, %c0_9] : memref<1x13x17x128xf32, #tpu.memory_space<vmem>>, vector<1x12x16x128xf32>
    %7 = vector.shape_cast %6 : vector<1x12x16x128xf32> to vector<12x16x128xf32>
    %8 = vector.shape_cast %7 : vector<12x16x128xf32> to vector<192x128xf32>
    %c0_10 = arith.constant 0 : index
    %c1_11 = arith.constant 1 : index
    %c1_12 = arith.constant 1 : index
    %c0_13 = arith.constant 0 : index
    %9 = vector.load %arg1[%c0_10, %c1_11, %c1_12, %c0_13] : memref<1x13x17x128xf32, #tpu.memory_space<vmem>>, vector<1x12x16x128xf32>
    %10 = vector.shape_cast %9 : vector<1x12x16x128xf32> to vector<12x16x128xf32>
    %11 = vector.shape_cast %10 : vector<12x16x128xf32> to vector<192x128xf32>
    %12 = tpu.concatenate %2, %5, %8, %11 in 1 : vector<192x128xf32>, vector<192x128xf32>, vector<192x128xf32>, vector<192x128xf32> -> vector<192x512xf32>
    %c0_14 = arith.constant 0 : index
    %c0_15 = arith.constant 0 : index
    %13 = vector.load %arg2[%c0_14, %c0_15] : memref<512x128xf32, #tpu.memory_space<vmem>>, vector<512x128xf32>
    %cst = arith.constant dense<0.000000e+00> : vector<192x128xf32>
    %14 = tpu.matmul %12, %13, %cst {dimension_numbers = #tpu.dot_dimension_numbers<[1], [0], [0], [1], [0, 0, 1, 1], [], []>} : vector<192x512xf32>, vector<512x128xf32>, vector<192x128xf32> -> vector<192x128xf32>
    %c0_16 = arith.constant 0 : index
    %c0_17 = arith.constant 0 : index
    %15 = vector.load %arg3[%c0_16, %c0_17] : memref<192x1xf32, #tpu.memory_space<vmem>>, vector<192x1xf32>
    %16 = vector.broadcast %15 : vector<192x1xf32> to vector<192x128xf32>
    %17 = arith.mulf %14, %16 : vector<192x128xf32>
    %c0_18 = arith.constant 0 : index
    %c0_19 = arith.constant 0 : index
    %c0_20 = arith.constant 0 : index
    %18 = vector.load %arg4[%c0_18, %c0_19, %c0_20] : memref<1x192x128xf32, #tpu.memory_space<vmem>>, vector<1x192x128xf32>
    %19 = vector.shape_cast %18 : vector<1x192x128xf32> to vector<192x128xf32>
    %20 = vector.shape_cast %17 : vector<192x128xf32> to vector<1x192x128xf32>
    tpu.vector_store %arg4[%c0_18, %c0_19, %c0_20], %20 {strides = array<i32>} : memref<1x192x128xf32, #tpu.memory_space<vmem>>, vector<1x192x128xf32>,
    %cst_21 = arith.constant dense<0.000000e+00> : vector<128xf32>
    %21 = vector.multi_reduction <add>, %17, %cst_21 [0] : vector<192x128xf32> to vector<128xf32>
    %22 = vector.shape_cast %21 : vector<128xf32> to vector<1x128xf32>
    %c0_22 = arith.constant 0 : index
    %c0_23 = arith.constant 0 : index
    %c0_24 = arith.constant 0 : index
    %23 = vector.load %arg5[%c0_22, %c0_23, %c0_24] : memref<1x2x128xf32, #tpu.memory_space<vmem>>, vector<1x1x128xf32>
    %24 = vector.shape_cast %23 : vector<1x1x128xf32> to vector<1x128xf32>
    %25 = vector.shape_cast %22 : vector<1x128xf32> to vector<1x1x128xf32>
    tpu.vector_store %arg5[%c0_22, %c0_23, %c0_24], %25 {strides = array<i32>} : memref<1x2x128xf32, #tpu.memory_space<vmem>>, vector<1x1x128xf32>,
    %26 = arith.mulf %17, %17 : vector<192x128xf32>
    %cst_25 = arith.constant dense<0.000000e+00> : vector<128xf32>
    %27 = vector.multi_reduction <add>, %26, %cst_25 [0] : vector<192x128xf32> to vector<128xf32>
    %28 = vector.shape_cast %27 : vector<128xf32> to vector<1x128xf32>
    %c0_26 = arith.constant 0 : index
    %c1_27 = arith.constant 1 : index
    %c0_28 = arith.constant 0 : index
    %29 = vector.load %arg5[%c0_26, %c1_27, %c0_28] : memref<1x2x128xf32, #tpu.memory_space<vmem>>, vector<1x1x128xf32>
    %30 = vector.shape_cast %29 : vector<1x1x128xf32> to vector<1x128xf32>
    %31 = vector.shape_cast %28 : vector<1x128xf32> to vector<1x1x128xf32>
    tpu.vector_store %arg5[%c0_26, %c1_27, %c0_28], %31 {strides = array<i32>} : memref<1x2x128xf32, #tpu.memory_space<vmem>>, vector<1x1x128xf32>,
    return
  }
  func.func @transform_0(%arg0: i32) -> (i32, i32, i32, i32) {
    %c0_i32 = arith.constant 0 : i32
    %c0_i32_0 = arith.constant 0 : i32
    %c0_i32_1 = arith.constant 0 : i32
    %c0_i32_2 = arith.constant 0 : i32
    return %arg0, %c0_i32, %c0_i32_0, %c0_i32_1 : i32, i32, i32, i32
  }
  func.func @transform_1(%arg0: i32) -> (i32, i32) {
    %c0_i32 = arith.constant 0 : i32
    %c0_i32_0 = arith.constant 0 : i32
    %c0_i32_1 = arith.constant 0 : i32
    return %c0_i32, %c0_i32_0 : i32, i32
  }
  func.func @transform_2(%arg0: i32) -> (i32, i32) {
    %c0_i32 = arith.constant 0 : i32
    %c0_i32_0 = arith.constant 0 : i32
    %c0_i32_1 = arith.constant 0 : i32
    return %c0_i32, %c0_i32_0 : i32, i32
  }
  func.func @transform_3(%arg0: i32) -> (i32, i32, i32) {
    %c0_i32 = arith.constant 0 : i32
    %c0_i32_0 = arith.constant 0 : i32
    %c0_i32_1 = arith.constant 0 : i32
    return %arg0, %c0_i32, %c0_i32_0 : i32, i32, i32
  }
  func.func @transform_4(%arg0: i32) -> (i32, i32, i32) {
    %c0_i32 = arith.constant 0 : i32
    %c0_i32_0 = arith.constant 0 : i32
    %c0_i32_1 = arith.constant 0 : i32
    return %arg0, %c0_i32, %c0_i32_0 : i32, i32, i32
  }
}

module attributes {stable_mosaic.version = 11 : i64} {
  func.func @_bn_relu_kernel(%arg0: i32, %arg1: memref<384x128xf32, #tpu.memory_space<vmem>>, %arg2: memref<1x128xf32, #tpu.memory_space<vmem>>, %arg3: memref<1x128xf32, #tpu.memory_space<vmem>>, %arg4: memref<384x128xf32, #tpu.memory_space<vmem>>) attributes {dimension_semantics = [#tpu.dimension_semantics<parallel>], iteration_bounds = array<i64: 3>, scalar_prefetch = 0 : i64, scratch_operands = 0 : i64, tpu.core_type = #tpu.core_type<tc>, window_params = [{transform_indices = @transform_0, window_bounds = array<i64: 384, 128>}, {pipeline_mode = #tpu.pipeline_mode<synchronous>, transform_indices = @transform_1, window_bounds = array<i64: 1, 128>}, {pipeline_mode = #tpu.pipeline_mode<synchronous>, transform_indices = @transform_2, window_bounds = array<i64: 1, 128>}, {transform_indices = @transform_3, window_bounds = array<i64: 384, 128>}]} {
    %c0 = arith.constant 0 : index
    %c0_0 = arith.constant 0 : index
    %0 = vector.load %arg1[%c0, %c0_0] : memref<384x128xf32, #tpu.memory_space<vmem>>, vector<384x128xf32>
    %c0_1 = arith.constant 0 : index
    %c0_2 = arith.constant 0 : index
    %1 = vector.load %arg2[%c0_1, %c0_2] : memref<1x128xf32, #tpu.memory_space<vmem>>, vector<1x128xf32>
    %2 = vector.broadcast %1 : vector<1x128xf32> to vector<384x128xf32>
    %3 = arith.mulf %0, %2 : vector<384x128xf32>
    %c0_3 = arith.constant 0 : index
    %c0_4 = arith.constant 0 : index
    %4 = vector.load %arg3[%c0_3, %c0_4] : memref<1x128xf32, #tpu.memory_space<vmem>>, vector<1x128xf32>
    %5 = vector.broadcast %4 : vector<1x128xf32> to vector<384x128xf32>
    %6 = arith.addf %3, %5 : vector<384x128xf32>
    %cst = arith.constant 0.000000e+00 : f32
    %7 = vector.broadcast %cst : f32 to vector<384x128xf32>
    %8 = arith.maximumf %6, %7 : vector<384x128xf32>
    %c0_5 = arith.constant 0 : index
    %c0_6 = arith.constant 0 : index
    %9 = vector.load %arg4[%c0_5, %c0_6] : memref<384x128xf32, #tpu.memory_space<vmem>>, vector<384x128xf32>
    tpu.vector_store %arg4[%c0_5, %c0_6], %8 {strides = array<i32>} : memref<384x128xf32, #tpu.memory_space<vmem>>, vector<384x128xf32>,
    return
  }
  func.func @transform_0(%arg0: i32) -> (i32, i32) {
    %c0_i32 = arith.constant 0 : i32
    %c0_i32_0 = arith.constant 0 : i32
    return %arg0, %c0_i32 : i32, i32
  }
  func.func @transform_1(%arg0: i32) -> (i32, i32) {
    %c0_i32 = arith.constant 0 : i32
    %c0_i32_0 = arith.constant 0 : i32
    %c0_i32_1 = arith.constant 0 : i32
    return %c0_i32, %c0_i32_0 : i32, i32
  }
  func.func @transform_2(%arg0: i32) -> (i32, i32) {
    %c0_i32 = arith.constant 0 : i32
    %c0_i32_0 = arith.constant 0 : i32
    %c0_i32_1 = arith.constant 0 : i32
    return %c0_i32, %c0_i32_0 : i32, i32
  }
  func.func @transform_3(%arg0: i32) -> (i32, i32) {
    %c0_i32 = arith.constant 0 : i32
    %c0_i32_0 = arith.constant 0 : i32
    return %arg0, %c0_i32 : i32, i32
  }
}

module attributes {stable_mosaic.version = 11 : i64} {
  func.func @_mm_stats_kernel(%arg0: i32, %arg1: memref<384x128xf32, #tpu.memory_space<vmem>>, %arg2: memref<128x128xf32, #tpu.memory_space<vmem>>, %arg3: memref<384x128xf32, #tpu.memory_space<vmem>>, %arg4: memref<1x2x128xf32, #tpu.memory_space<vmem>>) attributes {dimension_semantics = [#tpu.dimension_semantics<parallel>], iteration_bounds = array<i64: 3>, scalar_prefetch = 0 : i64, scratch_operands = 0 : i64, tpu.core_type = #tpu.core_type<tc>, window_params = [{transform_indices = @transform_0, window_bounds = array<i64: 384, 128>}, {pipeline_mode = #tpu.pipeline_mode<synchronous>, transform_indices = @transform_1, window_bounds = array<i64: 128, 128>}, {transform_indices = @transform_2, window_bounds = array<i64: 384, 128>}, {transform_indices = @transform_3, window_bounds = array<i64: 1, 2, 128>}]} {
    %c0 = arith.constant 0 : index
    %c0_0 = arith.constant 0 : index
    %0 = vector.load %arg1[%c0, %c0_0] : memref<384x128xf32, #tpu.memory_space<vmem>>, vector<384x128xf32>
    %c0_1 = arith.constant 0 : index
    %c0_2 = arith.constant 0 : index
    %1 = vector.load %arg2[%c0_1, %c0_2] : memref<128x128xf32, #tpu.memory_space<vmem>>, vector<128x128xf32>
    %cst = arith.constant dense<0.000000e+00> : vector<384x128xf32>
    %2 = tpu.matmul %0, %1, %cst {dimension_numbers = #tpu.dot_dimension_numbers<[1], [0], [0], [1], [0, 0, 1, 1], [], []>} : vector<384x128xf32>, vector<128x128xf32>, vector<384x128xf32> -> vector<384x128xf32>
    %c0_3 = arith.constant 0 : index
    %c0_4 = arith.constant 0 : index
    %3 = vector.load %arg3[%c0_3, %c0_4] : memref<384x128xf32, #tpu.memory_space<vmem>>, vector<384x128xf32>
    tpu.vector_store %arg3[%c0_3, %c0_4], %2 {strides = array<i32>} : memref<384x128xf32, #tpu.memory_space<vmem>>, vector<384x128xf32>,
    %cst_5 = arith.constant dense<0.000000e+00> : vector<128xf32>
    %4 = vector.multi_reduction <add>, %2, %cst_5 [0] : vector<384x128xf32> to vector<128xf32>
    %5 = vector.shape_cast %4 : vector<128xf32> to vector<1x128xf32>
    %c0_6 = arith.constant 0 : index
    %c0_7 = arith.constant 0 : index
    %c0_8 = arith.constant 0 : index
    %6 = vector.load %arg4[%c0_6, %c0_7, %c0_8] : memref<1x2x128xf32, #tpu.memory_space<vmem>>, vector<1x1x128xf32>
    %7 = vector.shape_cast %6 : vector<1x1x128xf32> to vector<1x128xf32>
    %8 = vector.shape_cast %5 : vector<1x128xf32> to vector<1x1x128xf32>
    tpu.vector_store %arg4[%c0_6, %c0_7, %c0_8], %8 {strides = array<i32>} : memref<1x2x128xf32, #tpu.memory_space<vmem>>, vector<1x1x128xf32>,
    %9 = arith.mulf %2, %2 : vector<384x128xf32>
    %cst_9 = arith.constant dense<0.000000e+00> : vector<128xf32>
    %10 = vector.multi_reduction <add>, %9, %cst_9 [0] : vector<384x128xf32> to vector<128xf32>
    %11 = vector.shape_cast %10 : vector<128xf32> to vector<1x128xf32>
    %c0_10 = arith.constant 0 : index
    %c1 = arith.constant 1 : index
    %c0_11 = arith.constant 0 : index
    %12 = vector.load %arg4[%c0_10, %c1, %c0_11] : memref<1x2x128xf32, #tpu.memory_space<vmem>>, vector<1x1x128xf32>
    %13 = vector.shape_cast %12 : vector<1x1x128xf32> to vector<1x128xf32>
    %14 = vector.shape_cast %11 : vector<1x128xf32> to vector<1x1x128xf32>
    tpu.vector_store %arg4[%c0_10, %c1, %c0_11], %14 {strides = array<i32>} : memref<1x2x128xf32, #tpu.memory_space<vmem>>, vector<1x1x128xf32>,
    return
  }
  func.func @transform_0(%arg0: i32) -> (i32, i32) {
    %c0_i32 = arith.constant 0 : i32
    %c0_i32_0 = arith.constant 0 : i32
    return %arg0, %c0_i32 : i32, i32
  }
  func.func @transform_1(%arg0: i32) -> (i32, i32) {
    %c0_i32 = arith.constant 0 : i32
    %c0_i32_0 = arith.constant 0 : i32
    %c0_i32_1 = arith.constant 0 : i32
    return %c0_i32, %c0_i32_0 : i32, i32
  }
  func.func @transform_2(%arg0: i32) -> (i32, i32) {
    %c0_i32 = arith.constant 0 : i32
    %c0_i32_0 = arith.constant 0 : i32
    return %arg0, %c0_i32 : i32, i32
  }
  func.func @transform_3(%arg0: i32) -> (i32, i32, i32) {
    %c0_i32 = arith.constant 0 : i32
    %c0_i32_0 = arith.constant 0 : i32
    %c0_i32_1 = arith.constant 0 : i32
    return %arg0, %c0_i32, %c0_i32_0 : i32, i32, i32
  }
}

</mosaic_0001>

<bundles_post_ra>
// kernel: tile.23
= control target key start
LH: loop header
LB: loop body
LE: loop exit
PB: predicated region body
PF: predicated region fallthrough
CT: control target
= control target key end

     0   :  { %s28_s0 = inlined_call_operand.vmem [shape: f32[16], index: 0, kind: input, shape index: {}]   ;;  %s29_s1 = inlined_call_operand.vmem [shape: f32[12,16], index: 1, kind: output, shape index: {}]  }
   0x1   :  { %v4_v0 = vld [vmem:[%s28_s0] ss:$0 sm:$0xff] }
   0x2   :  { %5 = vst [vmem:[%s29_s1] sm:$0xff] %v4_v0  ;;  %8 = vst [vmem:[%s29_s1 + $0x8] sm:$0xff] %v4_v0 }

// kernel: tile.0
= control target key start
LH: loop header
LB: loop body
LE: loop exit
PB: predicated region body
PF: predicated region fallthrough
CT: control target
= control target key end

     0   :  { %vm3_vm0 = vcmask 7168   ;;  %s453_s8 = smov 126   ;;  %s454_s9 = smov 127   ;;  %s934_s0 = inlined_call_operand.vmem [shape: f32[12,16], index: 0, kind: input, shape index: {}]   ;;  %s935_s1 = inlined_call_operand.vmem [shape: f32[192,1], index: 1, kind: output, shape index: {}]  }
   0x1   :  { %v481_v0 = vld [vmem:[%s934_s0] sm:$0xff]   ;;  %v344_v1 = vld [vmem:[%s934_s0 + $0x8] sm:$0xf]   ;;  %s455_s24 = smov 125   ;;  %s456_s27 = smov 124  }
   0x2   :  { %37 = vrot.lane.b32.xlu1 %v481_v0, %s453_s8  ;;  %16 = vrot.lane.b32.xlu0 %v481_v0, %s454_s9  ;;  %4 = vst.msk [vmem:[%s935_s1] ss:$16 sm:$0x3] %vm3_vm0, %v481_v0   ;;  %5 = vst.msk [vmem:[%s935_s1] ss:$16 sm:$0xc] %vm3_vm0, %v481_v0  }
   0x3   :  { %6 = vst.msk [vmem:[%s935_s1] ss:$16 sm:$0x30] %vm3_vm0, %v481_v0   ;;  %7 = vst.msk [vmem:[%s935_s1] ss:$16 sm:$0xc0] %vm3_vm0, %v481_v0  }
   0x4   :  { %v337_v2 = vld [vmem:[%s934_s0 + $0x8] sm:$0xf]   ;;  %s457_s30 = smov 123   ;;  %s458_s4 = smov 122  }
   0x5   :  { %v351_v3 = vld [vmem:[%s934_s0 + $0x8] sm:$0xf]   ;;  %s459_s7 = smov 121   ;;  %s460_s10 = smov 120  }
   0x6   :  { %50 = vrot.lane.b32.xlu1 %v344_v1, %s453_s8  ;;  %29 = vrot.lane.b32.xlu0 %v337_v2, %s454_s9  ;;  %v358_v4 = vld [vmem:[%s934_s0 + $0x8] sm:$0xf]   ;;  %s461_s13 = smov 119   ;;  %s462_s16 = smov 118  }
   0x7   :  { %v365_v5 = vld [vmem:[%s934_s0 + $0x8] sm:$0xf]   ;;  %s463_s19 = smov 117   ;;  %s464_s28 = smov 116  }
   0x8   :  { %v372_v6 = vld [vmem:[%s934_s0 + $0x8] sm:$0xf]   ;;  %s465_s2 = smov 115   ;;  %s466_s5 = smov 114  }
   0x9   :  { %v379_v7 = vld [vmem:[%s934_s0 + $0x8] sm:$0xf]  }
   0xa   :  { %71 = vrot.lane.b32.xlu1 %v351_v3, %s455_s24  ;;  %58 = vrot.lane.b32.xlu0 %v481_v0, %s455_s24  ;;  %v386_v8 = vld [vmem:[%s934_s0 + $0x8] sm:$0xf]  }
   0xb   :  { %v393_v9 = vld [vmem:[%s934_s0 + $0x8] sm:$0xf]  }
   0xc   :  { %v400_v10 = vld [vmem:[%s934_s0 + $0x8] sm:$0xf]  }
   0xd   :  { %v407_v11 = vld [vmem:[%s934_s0 + $0x8] sm:$0xf]  }
   0xe   :  { %92 = vrot.lane.b32.xlu1 %v358_v4, %s456_s27  ;;  %79 = vrot.lane.b32.xlu0 %v481_v0, %s456_s27  ;;  %v414_v12 = vld [vmem:[%s934_s0 + $0x8] sm:$0xf]  }
   0xf   :  { %v330_v13 = vld [vmem:[%s934_s0 + $0x8] sm:$0xf]  }
  0x10   :  { %331 = vst.msk [vmem:[%s935_s1 + $0x80] ss:$16 sm:$0x3] %vm3_vm0, %v330_v13   ;;  %332 = vst.msk [vmem:[%s935_s1 + $0x80] ss:$16 sm:$0xc] %vm3_vm0, %v330_v13  }
  0x11   :  { %v421_v14 = vld [vmem:[%s934_s0 + $0x8] sm:$0xf]  }
  0x12   :  { %113 = vrot.lane.b32.xlu1 %v365_v5, %s457_s30  ;;  %100 = vrot.lane.b32.xlu0 %v481_v0, %s457_s30  ;;  %v428_v15 = vld [vmem:[%s934_s0 + $0x8] sm:$0xf]  }
  0x13   :  { %v435_v16 = vld [vmem:[%s934_s0 + $0x8] sm:$0xf]   ;;  %s467_s0 = smov 113  }
  0x16   :  { %134 = vrot.lane.b32.xlu1 %v372_v6, %s458_s4  ;;  %121 = vrot.lane.b32.xlu0 %v481_v0, %s458_s4 }
  0x1a   :  { %155 = vrot.lane.b32.xlu1 %v379_v7, %s459_s7  ;;  %142 = vrot.lane.b32.xlu0 %v481_v0, %s459_s7 }
  0x1e   :  { %176 = vrot.lane.b32.xlu1 %v386_v8, %s460_s10  ;;  %163 = vrot.lane.b32.xlu0 %v481_v0, %s460_s10 }
  0x22   :  { %197 = vrot.lane.b32.xlu1 %v393_v9, %s461_s13  ;;  %184 = vrot.lane.b32.xlu0 %v481_v0, %s461_s13 }
  0x26   :  { %218 = vrot.lane.b32.xlu1 %v400_v10, %s462_s16  ;;  %205 = vrot.lane.b32.xlu0 %v481_v0, %s462_s16 }
  0x2a   :  { %239 = vrot.lane.b32.xlu1 %v407_v11, %s463_s19  ;;  %226 = vrot.lane.b32.xlu0 %v481_v0, %s463_s19 }
  0x2e   :  { %260 = vrot.lane.b32.xlu1 %v414_v12, %s464_s28  ;;  %247 = vrot.lane.b32.xlu0 %v481_v0, %s464_s28 }
  0x32   :  { %281 = vrot.lane.b32.xlu1 %v421_v14, %s465_s2  ;;  %268 = vrot.lane.b32.xlu0 %v481_v0, %s465_s2 }
  0x36   :  { %302 = vrot.lane.b32.xlu1 %v428_v15, %s466_s5  ;;  %289 = vrot.lane.b32.xlu0 %v481_v0, %s466_s5 }
  0x3a   :  { %323 = vrot.lane.b32.xlu1 %v435_v16, %s467_s0  ;;  %310 = vrot.lane.b32.xlu0 %v481_v0, %s467_s0 }
  0x74   :  { %v38_v17 = vpop.permute.xlu1 %37   ;;  %v17_v18 = vpop.permute.xlu0 %16  }
  0x75   :  { %340 = vst.msk [vmem:[%s935_s1 + $0x2] ss:$16 sm:$0x3] %vm3_vm0, %v38_v17   ;;  %341 = vst.msk [vmem:[%s935_s1 + $0x2] ss:$16 sm:$0xc] %vm3_vm0, %v38_v17  }
  0x76   :  { %342 = vst.msk [vmem:[%s935_s1 + $0x2] ss:$16 sm:$0x30] %vm3_vm0, %v38_v17   ;;  %343 = vst.msk [vmem:[%s935_s1 + $0x2] ss:$16 sm:$0xc0] %vm3_vm0, %v38_v17  }
  0x77   :  { %333 = vst.msk [vmem:[%s935_s1 + $0x1] ss:$16 sm:$0x3] %vm3_vm0, %v17_v18   ;;  %334 = vst.msk [vmem:[%s935_s1 + $0x1] ss:$16 sm:$0xc] %vm3_vm0, %v17_v18  }
  0x78   :  { %335 = vst.msk [vmem:[%s935_s1 + $0x1] ss:$16 sm:$0x30] %vm3_vm0, %v17_v18   ;;  %336 = vst.msk [vmem:[%s935_s1 + $0x1] ss:$16 sm:$0xc0] %vm3_vm0, %v17_v18   ;;  %v51_v19 = vpop.permute.xlu1 %50   ;;  %v30_v20 = vpop.permute.xlu0 %29  }
  0x79   :  { %345 = vst.msk [vmem:[%s935_s1 + $0x82] ss:$16 sm:$0x3] %vm3_vm0, %v51_v19   ;;  %346 = vst.msk [vmem:[%s935_s1 + $0x82] ss:$16 sm:$0xc] %vm3_vm0, %v51_v19  }
  0x7a   :  { %338 = vst.msk [vmem:[%s935_s1 + $0x81] ss:$16 sm:$0x3] %vm3_vm0, %v30_v20   ;;  %339 = vst.msk [vmem:[%s935_s1 + $0x81] ss:$16 sm:$0xc] %vm3_vm0, %v30_v20  }
  0x7c   :  { %v72_v21 = vpop.permute.xlu1 %71   ;;  %v59_v22 = vpop.permute.xlu0 %58  }
  0x7d   :  { %352 = vst.msk [vmem:[%s935_s1 + $0x83] ss:$16 sm:$0x3] %vm3_vm0, %v72_v21   ;;  %353 = vst.msk [vmem:[%s935_s1 + $0x83] ss:$16 sm:$0xc] %vm3_vm0, %v72_v21  }
  0x7e   :  { %347 = vst.msk [vmem:[%s935_s1 + $0x3] ss:$16 sm:$0x3] %vm3_vm0, %v59_v22   ;;  %348 = vst.msk [vmem:[%s935_s1 + $0x3] ss:$16 sm:$0xc] %vm3_vm0, %v59_v22  }
  0x7f   :  { %349 = vst.msk [vmem:[%s935_s1 + $0x3] ss:$16 sm:$0x30] %vm3_vm0, %v59_v22   ;;  %350 = vst.msk [vmem:[%s935_s1 + $0x3] ss:$16 sm:$0xc0] %vm3_vm0, %v59_v22  }
  0x80   :  { %v93_v23 = vpop.permute.xlu1 %92   ;;  %v80_v24 = vpop.permute.xlu0 %79  }
  0x81   :  { %359 = vst.msk [vmem:[%s935_s1 + $0x84] ss:$16 sm:$0x3] %vm3_vm0, %v93_v23   ;;  %360 = vst.msk [vmem:[%s935_s1 + $0x84] ss:$16 sm:$0xc] %vm3_vm0, %v93_v23  }
  0x82   :  { %354 = vst.msk [vmem:[%s935_s1 + $0x4] ss:$16 sm:$0x3] %vm3_vm0, %v80_v24   ;;  %355 = vst.msk [vmem:[%s935_s1 + $0x4] ss:$16 sm:$0xc] %vm3_vm0, %v80_v24  }
  0x83   :  { %356 = vst.msk [vmem:[%s935_s1 + $0x4] ss:$16 sm:$0x30] %vm3_vm0, %v80_v24   ;;  %357 = vst.msk [vmem:[%s935_s1 + $0x4] ss:$16 sm:$0xc0] %vm3_vm0, %v80_v24  }
  0x84   :  { %v114_v25 = vpop.permute.xlu1 %113   ;;  %v101_v26 = vpop.permute.xlu0 %100  }
  0x85   :  { %366 = vst.msk [vmem:[%s935_s1 + $0x85] ss:$16 sm:$0x3] %vm3_vm0, %v114_v25   ;;  %367 = vst.msk [vmem:[%s935_s1 + $0x85] ss:$16 sm:$0xc] %vm3_vm0, %v114_v25  }
  0x86   :  { %361 = vst.msk [vmem:[%s935_s1 + $0x5] ss:$16 sm:$0x3] %vm3_vm0, %v101_v26   ;;  %362 = vst.msk [vmem:[%s935_s1 + $0x5] ss:$16 sm:$0xc] %vm3_vm0, %v101_v26  }
  0x87   :  { %363 = vst.msk [vmem:[%s935_s1 + $0x5] ss:$16 sm:$0x30] %vm3_vm0, %v101_v26   ;;  %364 = vst.msk [vmem:[%s935_s1 + $0x5] ss:$16 sm:$0xc0] %vm3_vm0, %v101_v26  }
  0x88   :  { %v135_v27 = vpop.permute.xlu1 %134   ;;  %v122_v28 = vpop.permute.xlu0 %121  }
  0x89   :  { %373 = vst.msk [vmem:[%s935_s1 + $0x86] ss:$16 sm:$0x3] %vm3_vm0, %v135_v27   ;;  %374 = vst.msk [vmem:[%s935_s1 + $0x86] ss:$16 sm:$0xc] %vm3_vm0, %v135_v27  }
  0x8a   :  { %368 = vst.msk [vmem:[%s935_s1 + $0x6] ss:$16 sm:$0x3] %vm3_vm0, %v122_v28   ;;  %369 = vst.msk [vmem:[%s935_s1 + $0x6] ss:$16 sm:$0xc] %vm3_vm0, %v122_v28  }
  0x8b   :  { %370 = vst.msk [vmem:[%s935_s1 + $0x6] ss:$16 sm:$0x30] %vm3_vm0, %v122_v28   ;;  %371 = vst.msk [vmem:[%s935_s1 + $0x6] ss:$16 sm:$0xc0] %vm3_vm0, %v122_v28  }
  0x8c   :  { %v156_v29 = vpop.permute.xlu1 %155   ;;  %v143_v30 = vpop.permute.xlu0 %142  }
  0x8d   :  { %380 = vst.msk [vmem:[%s935_s1 + $0x87] ss:$16 sm:$0x3] %vm3_vm0, %v156_v29   ;;  %381 = vst.msk [vmem:[%s935_s1 + $0x87] ss:$16 sm:$0xc] %vm3_vm0, %v156_v29  }
  0x8e   :  { %375 = vst.msk [vmem:[%s935_s1 + $0x7] ss:$16 sm:$0x3] %vm3_vm0, %v143_v30   ;;  %376 = vst.msk [vmem:[%s935_s1 + $0x7] ss:$16 sm:$0xc] %vm3_vm0, %v143_v30  }
  0x8f   :  { %377 = vst.msk [vmem:[%s935_s1 + $0x7] ss:$16 sm:$0x30] %vm3_vm0, %v143_v30   ;;  %378 = vst.msk [vmem:[%s935_s1 + $0x7] ss:$16 sm:$0xc0] %vm3_vm0, %v143_v30  }
  0x90   :  { %v177_v31 = vpop.permute.xlu1 %176   ;;  %v164_v32 = vpop.permute.xlu0 %163  }
  0x91   :  { %387 = vst.msk [vmem:[%s935_s1 + $0x88] ss:$16 sm:$0x3] %vm3_vm0, %v177_v31   ;;  %388 = vst.msk [vmem:[%s935_s1 + $0x88] ss:$16 sm:$0xc] %vm3_vm0, %v177_v31  }
  0x92   :  { %382 = vst.msk [vmem:[%s935_s1 + $0x8] ss:$16 sm:$0x3] %vm3_vm0, %v164_v32   ;;  %383 = vst.msk [vmem:[%s935_s1 + $0x8] ss:$16 sm:$0xc] %vm3_vm0, %v164_v32  }
  0x93   :  { %384 = vst.msk [vmem:[%s935_s1 + $0x8] ss:$16 sm:$0x30] %vm3_vm0, %v164_v32   ;;  %385 = vst.msk [vmem:[%s935_s1 + $0x8] ss:$16 sm:$0xc0] %vm3_vm0, %v164_v32  }
  0x94   :  { %v198_v33 = vpop.permute.xlu1 %197   ;;  %v185_v34 = vpop.permute.xlu0 %184  }
  0x95   :  { %394 = vst.msk [vmem:[%s935_s1 + $0x89] ss:$16 sm:$0x3] %vm3_vm0, %v198_v33   ;;  %395 = vst.msk [vmem:[%s935_s1 + $0x89] ss:$16 sm:$0xc] %vm3_vm0, %v198_v33  }
  0x96   :  { %389 = vst.msk [vmem:[%s935_s1 + $0x9] ss:$16 sm:$0x3] %vm3_vm0, %v185_v34   ;;  %390 = vst.msk [vmem:[%s935_s1 + $0x9] ss:$16 sm:$0xc] %vm3_vm0, %v185_v34  }
  0x97   :  { %391 = vst.msk [vmem:[%s935_s1 + $0x9] ss:$16 sm:$0x30] %vm3_vm0, %v185_v34   ;;  %392 = vst.msk [vmem:[%s935_s1 + $0x9] ss:$16 sm:$0xc0] %vm3_vm0, %v185_v34  }
  0x98   :  { %v219_v35 = vpop.permute.xlu1 %218   ;;  %v206_v36 = vpop.permute.xlu0 %205  }
  0x99   :  { %401 = vst.msk [vmem:[%s935_s1 + $0x8a] ss:$16 sm:$0x3] %vm3_vm0, %v219_v35   ;;  %402 = vst.msk [vmem:[%s935_s1 + $0x8a] ss:$16 sm:$0xc] %vm3_vm0, %v219_v35  }
  0x9a   :  { %396 = vst.msk [vmem:[%s935_s1 + $0xa] ss:$16 sm:$0x3] %vm3_vm0, %v206_v36   ;;  %397 = vst.msk [vmem:[%s935_s1 + $0xa] ss:$16 sm:$0xc] %vm3_vm0, %v206_v36  }
  0x9b   :  { %398 = vst.msk [vmem:[%s935_s1 + $0xa] ss:$16 sm:$0x30] %vm3_vm0, %v206_v36   ;;  %399 = vst.msk [vmem:[%s935_s1 + $0xa] ss:$16 sm:$0xc0] %vm3_vm0, %v206_v36  }
  0x9c   :  { %v240_v37 = vpop.permute.xlu1 %239   ;;  %v227_v38 = vpop.permute.xlu0 %226  }
  0x9d   :  { %408 = vst.msk [vmem:[%s935_s1 + $0x8b] ss:$16 sm:$0x3] %vm3_vm0, %v240_v37   ;;  %409 = vst.msk [vmem:[%s935_s1 + $0x8b] ss:$16 sm:$0xc] %vm3_vm0, %v240_v37  }
  0x9e   :  { %403 = vst.msk [vmem:[%s935_s1 + $0xb] ss:$16 sm:$0x3] %vm3_vm0, %v227_v38   ;;  %404 = vst.msk [vmem:[%s935_s1 + $0xb] ss:$16 sm:$0xc] %vm3_vm0, %v227_v38  }
  0x9f   :  { %405 = vst.msk [vmem:[%s935_s1 + $0xb] ss:$16 sm:$0x30] %vm3_vm0, %v227_v38   ;;  %406 = vst.msk [vmem:[%s935_s1 + $0xb] ss:$16 sm:$0xc0] %vm3_vm0, %v227_v38  }
  0xa0   :  { %v261_v39 = vpop.permute.xlu1 %260   ;;  %v248_v40 = vpop.permute.xlu0 %247  }
  0xa1   :  { %415 = vst.msk [vmem:[%s935_s1 + $0x8c] ss:$16 sm:$0x3] %vm3_vm0, %v261_v39   ;;  %416 = vst.msk [vmem:[%s935_s1 + $0x8c] ss:$16 sm:$0xc] %vm3_vm0, %v261_v39  }
  0xa2   :  { %410 = vst.msk [vmem:[%s935_s1 + $0xc] ss:$16 sm:$0x3] %vm3_vm0, %v248_v40   ;;  %411 = vst.msk [vmem:[%s935_s1 + $0xc] ss:$16 sm:$0xc] %vm3_vm0, %v248_v40  }
  0xa3   :  { %412 = vst.msk [vmem:[%s935_s1 + $0xc] ss:$16 sm:$0x30] %vm3_vm0, %v248_v40   ;;  %413 = vst.msk [vmem:[%s935_s1 + $0xc] ss:$16 sm:$0xc0] %vm3_vm0, %v248_v40  }
  0xa4   :  { %v282_v41 = vpop.permute.xlu1 %281   ;;  %v269_v42 = vpop.permute.xlu0 %268  }
  0xa5   :  { %422 = vst.msk [vmem:[%s935_s1 + $0x8d] ss:$16 sm:$0x3] %vm3_vm0, %v282_v41   ;;  %423 = vst.msk [vmem:[%s935_s1 + $0x8d] ss:$16 sm:$0xc] %vm3_vm0, %v282_v41  }
  0xa6   :  { %417 = vst.msk [vmem:[%s935_s1 + $0xd] ss:$16 sm:$0x3] %vm3_vm0, %v269_v42   ;;  %418 = vst.msk [vmem:[%s935_s1 + $0xd] ss:$16 sm:$0xc] %vm3_vm0, %v269_v42  }
  0xa7   :  { %419 = vst.msk [vmem:[%s935_s1 + $0xd] ss:$16 sm:$0x30] %vm3_vm0, %v269_v42   ;;  %420 = vst.msk [vmem:[%s935_s1 + $0xd] ss:$16 sm:$0xc0] %vm3_vm0, %v269_v42  }
  0xa8   :  { %v303_v43 = vpop.permute.xlu1 %302   ;;  %v290_v44 = vpop.permute.xlu0 %289  }
  0xa9   :  { %429 = vst.msk [vmem:[%s935_s1 + $0x8e] ss:$16 sm:$0x3] %vm3_vm0, %v303_v43   ;;  %430 = vst.msk [vmem:[%s935_s1 + $0x8e] ss:$16 sm:$0xc] %vm3_vm0, %v303_v43  }
  0xaa   :  { %424 = vst.msk [vmem:[%s935_s1 + $0xe] ss:$16 sm:$0x3] %vm3_vm0, %v290_v44   ;;  %425 = vst.msk [vmem:[%s935_s1 + $0xe] ss:$16 sm:$0xc] %vm3_vm0, %v290_v44  }
  0xab   :  { %426 = vst.msk [vmem:[%s935_s1 + $0xe] ss:$16 sm:$0x30] %vm3_vm0, %v290_v44   ;;  %427 = vst.msk [vmem:[%s935_s1 + $0xe] ss:$16 sm:$0xc0] %vm3_vm0, %v290_v44  }
  0xac   :  { %v324_v45 = vpop.permute.xlu1 %323   ;;  %v311_v46 = vpop.permute.xlu0 %310  }
  0xad   :  { %436 = vst.msk [vmem:[%s935_s1 + $0x8f] ss:$16 sm:$0x3] %vm3_vm0, %v324_v45   ;;  %437 = vst.msk [vmem:[%s935_s1 + $0x8f] ss:$16 sm:$0xc] %vm3_vm0, %v324_v45  }
  0xae   :  { %431 = vst.msk [vmem:[%s935_s1 + $0xf] ss:$16 sm:$0x3] %vm3_vm0, %v311_v46   ;;  %432 = vst.msk [vmem:[%s935_s1 + $0xf] ss:$16 sm:$0xc] %vm3_vm0, %v311_v46  }
  0xaf   :  { %433 = vst.msk [vmem:[%s935_s1 + $0xf] ss:$16 sm:$0x30] %vm3_vm0, %v311_v46   ;;  %434 = vst.msk [vmem:[%s935_s1 + $0xf] ss:$16 sm:$0xc0] %vm3_vm0, %v311_v46  }

// kernel: decoder_forward.10
= control target key start
LH: loop header
LB: loop body
LE: loop exit
PB: predicated region body
PF: predicated region fallthrough
CT: control target
= control target key end

     0   :  { %s532_s0 = inlined_call_operand.vmem [shape: f32[288,128], index: 0, kind: input, shape index: {}]   ;;  %s533_s1 = inlined_call_operand.vmem [shape: f32[1,128], index: 1, kind: input, shape index: {}]   ;;  %s534_s2 = inlined_call_operand.vmem [shape: f32[1,128], index: 2, kind: input, shape index: {}]   ;;  %s535_s3 = inlined_call_operand.vmem [shape: f32[288,128], index: 3, kind: output, shape index: {}]  }
   0x1   :  { %v14_v0 = vld [vmem:[%s532_s0] sm:$0xff]  ;;  %v15_v4 = vld [vmem:[%s532_s0 + $0x8] sm:$0xff]  ;;  %v16_v5 = vld [vmem:[%s532_s0 + $0x10] sm:$0xff] }
   0x2   :  { %v240_v1 = vld [vmem:[%s533_s1] ss:$0 sm:$0xff]  ;;  %v17_v6 = vld [vmem:[%s532_s0 + $0x18] sm:$0xff]  ;;  %v19_v11 = vld [vmem:[%s532_s0 + $0x28] sm:$0xff] }
   0x3   :  { %v245_v2 = vld [vmem:[%s534_s2] ss:$0 sm:$0xff]  ;;  %v57_v3 = vmul.f32 %v240_v1, %v14_v0  ;;  %v58_v7 = vmul.f32 %v240_v1, %v15_v4  ;;  %v59_v8 = vmul.f32 %v240_v1, %v16_v5  ;;  %v60_v9 = vmul.f32 %v240_v1, %v17_v6  ;;  %v20_v12 = vld [vmem:[%s532_s0 + $0x30] sm:$0xff]  ;;  %v21_v17 = vld [vmem:[%s532_s0 + $0x38] sm:$0xff] }
   0x4   :  { %v18_v10 = vld [vmem:[%s532_s0 + $0x20] sm:$0xff]  ;;  %v62_v15 = vmul.f32 %v240_v1, %v19_v11  ;;  %v63_v16 = vmul.f32 %v240_v1, %v20_v12  ;;  %v64_v21 = vmul.f32 %v240_v1, %v21_v17  ;;  %v23_v27 = vld [vmem:[%s532_s0 + $0x48] sm:$0xff]  ;;  %v24_v28 = vld [vmem:[%s532_s0 + $0x50] sm:$0xff] }
   0x5   :  { %v100_v13 = vadd.f32 %v245_v2, %v57_v3  ;;  %v61_v14 = vmul.f32 %v240_v1, %v18_v10  ;;  %v101_v18 = vadd.f32 %v245_v2, %v58_v7  ;;  %v102_v19 = vadd.f32 %v245_v2, %v59_v8  ;;  %v22_v22 = vld [vmem:[%s532_s0 + $0x40] sm:$0xff]  ;;  %v25_v29 = vld [vmem:[%s532_s0 + $0x58] sm:$0xff]  ;;  %v27_v35 = vld [vmem:[%s532_s0 + $0x68] sm:$0xff] }
   0x6   :  { %v103_v20 = vadd.f32 %v245_v2, %v60_v9  ;;  %v105_v25 = vadd.f32 %v245_v2, %v62_v15  ;;  %v106_v26 = vadd.f32 %v245_v2, %v63_v16  ;;  %v107_v33 = vadd.f32 %v245_v2, %v64_v21  ;;  %v26_v34 = vld [vmem:[%s532_s0 + $0x60] sm:$0xff]  ;;  %v28_v36 = vld [vmem:[%s532_s0 + $0x70] sm:$0xff]  ;;  %v29_v41 = vld [vmem:[%s532_s0 + $0x78] sm:$0xff] }
   0x7   :  { %v136_v23 = vmax.f32 %v100_v13, 0.0  ;;  %v104_v24 = vadd.f32 %v245_v2, %v61_v14  ;;  %v137_v30 = vmax.f32 %v101_v18, 0.0  ;;  %v138_v31 = vmax.f32 %v102_v19, 0.0  ;;  %v30_v54 = vld [vmem:[%s532_s0 + $0x80] sm:$0xff]  ;;  %v31_v59 = vld [vmem:[%s532_s0 + $0x88] sm:$0xff]  ;;  %v32_v60 = vld [vmem:[%s532_s0 + $0x90] sm:$0xff] }
   0x8   :  { %v139_v32 = vmax.f32 %v103_v20, 0.0  ;;  %v141_v38 = vmax.f32 %v105_v25, 0.0  ;;  %v142_v39 = vmax.f32 %v106_v26, 0.0  ;;  %v65_v40 = vmul.f32 %v240_v1, %v22_v22  ;;  %v33_v61 = vld [vmem:[%s532_s0 + $0x98] sm:$0xff]  ;;  %v34_v4 = vld [vmem:[%s532_s0 + $0xa0] sm:$0xff]  ;;  %v35_v5 = vld [vmem:[%s532_s0 + $0xa8] sm:$0xff] }
   0x9   :  { %172 = vst [vmem:[%s535_s3] sm:$0xff] %v136_v23  ;;  %v140_v37 = vmax.f32 %v104_v24, 0.0  ;;  %173 = vst [vmem:[%s535_s3 + $0x8] sm:$0xff] %v137_v30  ;;  %v143_v42 = vmax.f32 %v107_v33, 0.0  ;;  %v66_v43 = vmul.f32 %v240_v1, %v23_v27  ;;  %v67_v44 = vmul.f32 %v240_v1, %v24_v28  ;;  %v36_v6 = vld [vmem:[%s532_s0 + $0xb0] sm:$0xff]  ;;  %v37_v11 = vld [vmem:[%s532_s0 + $0xb8] sm:$0xff] }
   0xa   :  { %174 = vst [vmem:[%s535_s3 + $0x10] sm:$0xff] %v138_v31  ;;  %175 = vst [vmem:[%s535_s3 + $0x18] sm:$0xff] %v139_v32  ;;  %v68_v45 = vmul.f32 %v240_v1, %v25_v29  ;;  %v108_v46 = vadd.f32 %v245_v2, %v65_v40  ;;  %v69_v47 = vmul.f32 %v240_v1, %v26_v34  ;;  %v38_v24 = vld [vmem:[%s532_s0 + $0xc0] sm:$0xff]  ;;  %v39_v29 = vld [vmem:[%s532_s0 + $0xc8] sm:$0xff] }
   0xb   :  { %176 = vst [vmem:[%s535_s3 + $0x20] sm:$0xff] %v140_v37  ;;  %177 = vst [vmem:[%s535_s3 + $0x28] sm:$0xff] %v141_v38  ;;  %v70_v48 = vmul.f32 %v240_v1, %v27_v35  ;;  %v71_v49 = vmul.f32 %v240_v1, %v28_v36  ;;  %v109_v50 = vadd.f32 %v245_v2, %v66_v43  ;;  %v40_v30 = vld [vmem:[%s532_s0 + $0xd0] sm:$0xff]  ;;  %v41_v31 = vld [vmem:[%s532_s0 + $0xd8] sm:$0xff] }
   0xc   :  { %178 = vst [vmem:[%s535_s3 + $0x30] sm:$0xff] %v142_v39  ;;  %179 = vst [vmem:[%s535_s3 + $0x38] sm:$0xff] %v143_v42  ;;  %v110_v51 = vadd.f32 %v245_v2, %v67_v44  ;;  %v111_v52 = vadd.f32 %v245_v2, %v68_v45  ;;  %v72_v53 = vmul.f32 %v240_v1, %v29_v41  ;;  %v144_v55 = vmax.f32 %v108_v46, 0.0  ;;  %v42_v36 = vld [vmem:[%s532_s0 + $0xe0] sm:$0xff]  ;;  %v43_v37 = vld [vmem:[%s532_s0 + $0xe8] sm:$0xff] }
   0xd   :  { %v112_v56 = vadd.f32 %v245_v2, %v69_v47  ;;  %v113_v57 = vadd.f32 %v245_v2, %v70_v48  ;;  %v114_v58 = vadd.f32 %v245_v2, %v71_v49  ;;  %v145_v62 = vmax.f32 %v109_v50, 0.0  ;;  %v44_v38 = vld [vmem:[%s532_s0 + $0xf0] sm:$0xff]  ;;  %v45_v43 = vld [vmem:[%s532_s0 + $0xf8] sm:$0xff] }
   0xe   :  { %v146_v63 = vmax.f32 %v110_v51, 0.0  ;;  %v147_v0 = vmax.f32 %v111_v52, 0.0  ;;  %v115_v3 = vadd.f32 %v245_v2, %v72_v53  ;;  %180 = vst [vmem:[%s535_s3 + $0x40] sm:$0xff] %v144_v55  ;;  %v73_v10 = vmul.f32 %v240_v1, %v30_v54 }
   0xf   :  { %v148_v7 = vmax.f32 %v112_v56, 0.0  ;;  %v149_v8 = vmax.f32 %v113_v57, 0.0  ;;  %v150_v9 = vmax.f32 %v114_v58, 0.0  ;;  %181 = vst [vmem:[%s535_s3 + $0x48] sm:$0xff] %v145_v62  ;;  %v74_v13 = vmul.f32 %v240_v1, %v31_v59  ;;  %v46_v56 = vld [vmem:[%s532_s0 + $0x100] sm:$0xff]  ;;  %v48_v62 = vld [vmem:[%s532_s0 + $0x110] sm:$0xff] }
  0x10   :  { %182 = vst [vmem:[%s535_s3 + $0x50] sm:$0xff] %v146_v63  ;;  %183 = vst [vmem:[%s535_s3 + $0x58] sm:$0xff] %v147_v0  ;;  %v151_v12 = vmax.f32 %v115_v3, 0.0  ;;  %v75_v14 = vmul.f32 %v240_v1, %v32_v60  ;;  %v76_v15 = vmul.f32 %v240_v1, %v33_v61  ;;  %v116_v16 = vadd.f32 %v245_v2, %v73_v10  ;;  %v47_v61 = vld [vmem:[%s532_s0 + $0x108] sm:$0xff]  ;;  %v49_v63 = vld [vmem:[%s532_s0 + $0x118] sm:$0xff] }
  0x11   :  { %184 = vst [vmem:[%s535_s3 + $0x60] sm:$0xff] %v148_v7  ;;  %185 = vst [vmem:[%s535_s3 + $0x68] sm:$0xff] %v149_v8  ;;  %v77_v17 = vmul.f32 %v240_v1, %v34_v4  ;;  %v78_v18 = vmul.f32 %v240_v1, %v35_v5  ;;  %v79_v19 = vmul.f32 %v240_v1, %v36_v6 }
  0x12   :  { %186 = vst [vmem:[%s535_s3 + $0x70] sm:$0xff] %v150_v9  ;;  %187 = vst [vmem:[%s535_s3 + $0x78] sm:$0xff] %v151_v12  ;;  %v117_v20 = vadd.f32 %v245_v2, %v74_v13  ;;  %v118_v21 = vadd.f32 %v245_v2, %v75_v14  ;;  %v119_v22 = vadd.f32 %v245_v2, %v76_v15  ;;  %v152_v25 = vmax.f32 %v116_v16, 0.0 }
  0x13   :  { %v80_v23 = vmul.f32 %v240_v1, %v37_v11  ;;  %v120_v26 = vadd.f32 %v245_v2, %v77_v17  ;;  %v121_v27 = vadd.f32 %v245_v2, %v78_v18  ;;  %v122_v28 = vadd.f32 %v245_v2, %v79_v19 }
  0x14   :  { %v153_v32 = vmax.f32 %v117_v20, 0.0  ;;  %v154_v33 = vmax.f32 %v118_v21, 0.0  ;;  %v155_v34 = vmax.f32 %v119_v22, 0.0  ;;  %188 = vst [vmem:[%s535_s3 + $0x80] sm:$0xff] %v152_v25  ;;  %v81_v42 = vmul.f32 %v240_v1, %v38_v24 }
  0x15   :  { %v123_v35 = vadd.f32 %v245_v2, %v80_v23  ;;  %v156_v39 = vmax.f32 %v120_v26, 0.0  ;;  %v157_v40 = vmax.f32 %v121_v27, 0.0  ;;  %v158_v41 = vmax.f32 %v122_v28, 0.0 }
  0x16   :  { %189 = vst [vmem:[%s535_s3 + $0x88] sm:$0xff] %v153_v32  ;;  %190 = vst [vmem:[%s535_s3 + $0x90] sm:$0xff] %v154_v33  ;;  %v82_v45 = vmul.f32 %v240_v1, %v39_v29  ;;  %v83_v46 = vmul.f32 %v240_v1, %v40_v30  ;;  %v84_v47 = vmul.f32 %v240_v1, %v41_v31 }
  0x17   :  { %191 = vst [vmem:[%s535_s3 + $0x98] sm:$0xff] %v155_v34  ;;  %v159_v44 = vmax.f32 %v123_v35, 0.0  ;;  %192 = vst [vmem:[%s535_s3 + $0xa0] sm:$0xff] %v156_v39  ;;  %v124_v48 = vadd.f32 %v245_v2, %v81_v42  ;;  %v85_v49 = vmul.f32 %v240_v1, %v42_v36  ;;  %v86_v50 = vmul.f32 %v240_v1, %v43_v37 }
  0x18   :  { %193 = vst [vmem:[%s535_s3 + $0xa8] sm:$0xff] %v157_v40  ;;  %194 = vst [vmem:[%s535_s3 + $0xb0] sm:$0xff] %v158_v41  ;;  %v87_v51 = vmul.f32 %v240_v1, %v44_v38  ;;  %v125_v52 = vadd.f32 %v245_v2, %v82_v45  ;;  %v126_v53 = vadd.f32 %v245_v2, %v83_v46 }
  0x19   :  { %195 = vst [vmem:[%s535_s3 + $0xb8] sm:$0xff] %v159_v44  ;;  %v127_v54 = vadd.f32 %v245_v2, %v84_v47  ;;  %v88_v55 = vmul.f32 %v240_v1, %v45_v43  ;;  %v160_v57 = vmax.f32 %v124_v48, 0.0  ;;  %v128_v58 = vadd.f32 %v245_v2, %v85_v49 }
  0x1a   :  { %v129_v59 = vadd.f32 %v245_v2, %v86_v50  ;;  %v130_v60 = vadd.f32 %v245_v2, %v87_v51  ;;  %v161_v0 = vmax.f32 %v125_v52, 0.0  ;;  %v162_v3 = vmax.f32 %v126_v53, 0.0 }
  0x1b   :  { %v163_v4 = vmax.f32 %v127_v54, 0.0  ;;  %v131_v5 = vadd.f32 %v245_v2, %v88_v55  ;;  %196 = vst [vmem:[%s535_s3 + $0xc0] sm:$0xff] %v160_v57  ;;  %v164_v6 = vmax.f32 %v128_v58, 0.0  ;;  %v89_v9 = vmul.f32 %v240_v1, %v46_v56 }
  0x1c   :  { %v165_v7 = vmax.f32 %v129_v59, 0.0  ;;  %v166_v8 = vmax.f32 %v130_v60, 0.0  ;;  %197 = vst [vmem:[%s535_s3 + $0xc8] sm:$0xff] %v161_v0  ;;  %198 = vst [vmem:[%s535_s3 + $0xd0] sm:$0xff] %v162_v3  ;;  %v90_v11 = vmul.f32 %v240_v1, %v47_v61  ;;  %v91_v12 = vmul.f32 %v240_v1, %v48_v62 }
  0x1d   :  { %199 = vst [vmem:[%s535_s3 + $0xd8] sm:$0xff] %v163_v4  ;;  %v167_v10 = vmax.f32 %v131_v5, 0.0  ;;  %v92_v13 = vmul.f32 %v240_v1, %v49_v63  ;;  %200 = vst [vmem:[%s535_s3 + $0xe0] sm:$0xff] %v164_v6  ;;  %v132_v14 = vadd.f32 %v245_v2, %v89_v9 }
  0x1e   :  { %201 = vst [vmem:[%s535_s3 + $0xe8] sm:$0xff] %v165_v7  ;;  %202 = vst [vmem:[%s535_s3 + $0xf0] sm:$0xff] %v166_v8  ;;  %v133_v1 = vadd.f32 %v245_v2, %v90_v11  ;;  %v134_v15 = vadd.f32 %v245_v2, %v91_v12 }
  0x1f   :  { %203 = vst [vmem:[%s535_s3 + $0xf8] sm:$0xff] %v167_v10  ;;  %v135_v16 = vadd.f32 %v245_v2, %v92_v13  ;;  %v168_v17 = vmax.f32 %v132_v14, 0.0 }
  0x20   :  { %v169_v18 = vmax.f32 %v133_v1, 0.0  ;;  %v170_v19 = vmax.f32 %v134_v15, 0.0 }
  0x21   :  { %v171_v20 = vmax.f32 %v135_v16, 0.0  ;;  %204 = vst [vmem:[%s535_s3 + $0x100] sm:$0xff] %v168_v17 }
  0x22   :  { %205 = vst [vmem:[%s535_s3 + $0x108] sm:$0xff] %v169_v18  ;;  %206 = vst [vmem:[%s535_s3 + $0x110] sm:$0xff] %v170_v19 }
  0x23   :  { %207 = vst [vmem:[%s535_s3 + $0x118] sm:$0xff] %v171_v20 }

// kernel: decoder_forward.9
= control target key start
LH: loop header
LB: loop body
LE: loop exit
PB: predicated region body
PF: predicated region fallthrough
CT: control target
= control target key end

     0   :  { %s1052_s1 = inlined_call_operand.vmem [shape: f32[128,128], index: 1, kind: input, shape index: {}]   ;;  %s1053_s0 = inlined_call_operand.vmem [shape: f32[288,128], index: 0, kind: input, shape index: {}]   ;;  %s1054_s2 = inlined_call_operand.vmem [shape: f32[288,128], index: 2, kind: output, shape index: {0}]   ;;  %s1055_s3 = inlined_call_operand.vmem [shape: f32[1,2,128], index: 3, kind: output, shape index: {1}]  }
   0x1   :  { %v49_v0 = vld [vmem:[%s1052_s1] sm:$0xff]  ;;  %v50_v1 = vld [vmem:[%s1052_s1 + $0x8] sm:$0xff]  ;;  %v51_v2 = vld [vmem:[%s1052_s1 + $0x10] sm:$0xff] }
   0x2   :  { %v612_v3 = vpack.c.bf16 %v50_v1, %v49_v0  ;;  %v52_v4 = vld [vmem:[%s1052_s1 + $0x18] sm:$0xff]  ;;  %v53_v6 = vld [vmem:[%s1052_s1 + $0x20] sm:$0xff]  ;;  %v54_v7 = vld [vmem:[%s1052_s1 + $0x28] sm:$0xff] }
   0x3   :  { %v616_v5 = vpack.c.bf16 %v52_v4, %v51_v2  ;;  %v620_v8 = vpack.c.bf16 %v54_v7, %v53_v6  ;;  %v13_v9 = vld [vmem:[%s1053_s0] sm:$0xff]  ;;  %v55_v10 = vld [vmem:[%s1052_s1 + $0x30] sm:$0xff]  ;;  %v56_v11 = vld [vmem:[%s1052_s1 + $0x38] sm:$0xff] }
   0x4   :  { %613 = vmatprep.subr.bf16.mxu0 %v612_v3  ;;  %644 = vmatprep.subr.bf16.mxu1 %v612_v3  ;;  %v624_v12 = vpack.c.bf16 %v56_v11, %v55_v10  ;;  %v57_v13 = vld [vmem:[%s1052_s1 + $0x40] sm:$0xff]  ;;  %v58_v14 = vld [vmem:[%s1052_s1 + $0x48] sm:$0xff]  ;;  %v31_v15 = vld [vmem:[%s1053_s0 + $0x90] sm:$0xff] }
   0x5   :  { %615 = vmatpush3.bf16.msra.mxu0 %v612_v3  ;;  %652 = vmatpush3.bf16.msra.mxu1 %v612_v3  ;;  %v628_v16 = vpack.c.bf16 %v58_v14, %v57_v13  ;;  %v59_v17 = vld [vmem:[%s1052_s1 + $0x50] sm:$0xff]  ;;  %v60_v18 = vld [vmem:[%s1052_s1 + $0x58] sm:$0xff]  ;;  %v61_v20 = vld [vmem:[%s1052_s1 + $0x60] sm:$0xff] }
   0x6   :  { %617 = vmatprep.subr.bf16.mxu0 %v616_v5  ;;  %645 = vmatprep.subr.bf16.mxu1 %v616_v5  ;;  %v632_v19 = vpack.c.bf16 %v60_v18, %v59_v17  ;;  %v62_v21 = vld [vmem:[%s1052_s1 + $0x68] sm:$0xff]  ;;  %v63_v23 = vld [vmem:[%s1052_s1 + $0x70] sm:$0xff]  ;;  %v64_v24 = vld [vmem:[%s1052_s1 + $0x78] sm:$0xff] }
   0x7   :  { %558 = vmatprep.mubr.f32.mxu0 %v13_v9  ;;  %585 = vmatprep.mubr.f32.mxu1 %v31_v15  ;;  %v636_v22 = vpack.c.bf16 %v62_v21, %v61_v20  ;;  %v640_v25 = vpack.c.bf16 %v64_v24, %v63_v23  ;;  %v14_v26 = vld [vmem:[%s1053_s0 + $0x8] sm:$0xff]  ;;  %v32_v27 = vld [vmem:[%s1053_s0 + $0x98] sm:$0xff]  ;;  %v15_v28 = vld [vmem:[%s1053_s0 + $0x10] sm:$0xff] }
   0x8   :  { %v33_v29 = vld [vmem:[%s1053_s0 + $0xa0] sm:$0xff]  ;;  %v16_v30 = vld [vmem:[%s1053_s0 + $0x18] sm:$0xff]  ;;  %v34_v31 = vld [vmem:[%s1053_s0 + $0xa8] sm:$0xff] }
   0x9   :  { %619 = vmatpush3.bf16.msra.mxu0 %v616_v5  ;;  %653 = vmatpush3.bf16.msra.mxu1 %v616_v5  ;;  %v17_v32 = vld [vmem:[%s1053_s0 + $0x20] sm:$0xff]  ;;  %v35_v33 = vld [vmem:[%s1053_s0 + $0xb0] sm:$0xff]  ;;  %v18_v34 = vld [vmem:[%s1053_s0 + $0x28] sm:$0xff] }
   0xa   :  { %621 = vmatprep.subr.bf16.mxu0 %v620_v8  ;;  %646 = vmatprep.subr.bf16.mxu1 %v620_v8  ;;  %v36_v35 = vld [vmem:[%s1053_s0 + $0xb8] sm:$0xff]  ;;  %v19_v36 = vld [vmem:[%s1053_s0 + $0x30] sm:$0xff]  ;;  %v37_v37 = vld [vmem:[%s1053_s0 + $0xc0] sm:$0xff] }
   0xb   :  { %v20_v38 = vld [vmem:[%s1053_s0 + $0x38] sm:$0xff]  ;;  %v38_v39 = vld [vmem:[%s1053_s0 + $0xc8] sm:$0xff]  ;;  %v21_v40 = vld [vmem:[%s1053_s0 + $0x40] sm:$0xff] }
   0xc   :  { %v39_v41 = vld [vmem:[%s1053_s0 + $0xd0] sm:$0xff]  ;;  %v22_v42 = vld [vmem:[%s1053_s0 + $0x48] sm:$0xff]  ;;  %v40_v43 = vld [vmem:[%s1053_s0 + $0xd8] sm:$0xff] }
   0xd   :  { %623 = vmatpush3.bf16.msra.mxu0 %v620_v8  ;;  %654 = vmatpush3.bf16.msra.mxu1 %v620_v8  ;;  %v23_v44 = vld [vmem:[%s1053_s0 + $0x50] sm:$0xff]  ;;  %v41_v45 = vld [vmem:[%s1053_s0 + $0xe0] sm:$0xff]  ;;  %v24_v46 = vld [vmem:[%s1053_s0 + $0x58] sm:$0xff] }
   0xe   :  { %625 = vmatprep.subr.bf16.mxu0 %v624_v12  ;;  %647 = vmatprep.subr.bf16.mxu1 %v624_v12  ;;  %v42_v47 = vld [vmem:[%s1053_s0 + $0xe8] sm:$0xff]  ;;  %v25_v48 = vld [vmem:[%s1053_s0 + $0x60] sm:$0xff]  ;;  %v43_v49 = vld [vmem:[%s1053_s0 + $0xf0] sm:$0xff] }
   0xf   :  { %v26_v50 = vld [vmem:[%s1053_s0 + $0x68] sm:$0xff]  ;;  %v44_v51 = vld [vmem:[%s1053_s0 + $0xf8] sm:$0xff]  ;;  %v27_v52 = vld [vmem:[%s1053_s0 + $0x70] sm:$0xff] }
  0x10   :  { %v45_v53 = vld [vmem:[%s1053_s0 + $0x100] sm:$0xff]  ;;  %v28_v54 = vld [vmem:[%s1053_s0 + $0x78] sm:$0xff]  ;;  %v46_v55 = vld [vmem:[%s1053_s0 + $0x108] sm:$0xff] }
  0x11   :  { %627 = vmatpush3.bf16.msra.mxu0 %v624_v12  ;;  %655 = vmatpush3.bf16.msra.mxu1 %v624_v12  ;;  %v29_v56 = vld [vmem:[%s1053_s0 + $0x80] sm:$0xff]  ;;  %v47_v57 = vld [vmem:[%s1053_s0 + $0x110] sm:$0xff]  ;;  %v30_v58 = vld [vmem:[%s1053_s0 + $0x88] sm:$0xff] }
  0x12   :  { %629 = vmatprep.subr.bf16.mxu0 %v628_v16  ;;  %648 = vmatprep.subr.bf16.mxu1 %v628_v16  ;;  %v48_v59 = vld [vmem:[%s1053_s0 + $0x118] sm:$0xff] }
  0x15   :  { %631 = vmatpush3.bf16.msra.mxu0 %v628_v16  ;;  %656 = vmatpush3.bf16.msra.mxu1 %v628_v16 }
  0x16   :  { %633 = vmatprep.subr.bf16.mxu0 %v632_v19  ;;  %649 = vmatprep.subr.bf16.mxu1 %v632_v19 }
  0x19   :  { %635 = vmatpush3.bf16.msra.mxu0 %v632_v19  ;;  %657 = vmatpush3.bf16.msra.mxu1 %v632_v19 }
  0x1a   :  { %637 = vmatprep.subr.bf16.mxu0 %v636_v22  ;;  %650 = vmatprep.subr.bf16.mxu1 %v636_v22 }
  0x1d   :  { %639 = vmatpush3.bf16.msra.mxu0 %v636_v22  ;;  %658 = vmatpush3.bf16.msra.mxu1 %v636_v22 }
  0x1e   :  { %641 = vmatprep.subr.bf16.mxu0 %v640_v25  ;;  %651 = vmatprep.subr.bf16.mxu1 %v640_v25 }
  0x21   :  { %643 = vmatpush3.bf16.msra.mxu0 %v640_v25  ;;  %659 = vmatpush3.bf16.msra.mxu1 %v640_v25 }
  0x24   :  { %559 = vmatmul.mubr.f32.vlgmr.msra.gmra.mrb[0].mxu0 %v14_v26  ;;  %586 = vmatmul.mubr.f32.vlgmr.msra.gmra.mrb[0].mxu1 %v32_v27 }
  0x25   :  { %561 = vmatprep.mubr.f32.mxu0 %v15_v28  ;;  %588 = vmatprep.mubr.f32.mxu1 %v33_v29 }
  0x28   :  { %562 = vmatmul.mubr.f32.gmra.mrb[2].mxu0 %v16_v30  ;;  %589 = vmatmul.mubr.f32.gmra.mrb[2].mxu1 %v34_v31 }
  0x29   :  { %564 = vmatprep.mubr.f32.mxu0 %v17_v32  ;;  %591 = vmatprep.mubr.f32.mxu1 %v35_v33 }
  0x2c   :  { %565 = vmatmul.mubr.f32.gmra.mrb[4].mxu0 %v18_v34  ;;  %592 = vmatmul.mubr.f32.gmra.mrb[4].mxu1 %v36_v35 }
  0x2d   :  { %567 = vmatprep.mubr.f32.mxu0 %v19_v36  ;;  %594 = vmatprep.mubr.f32.mxu1 %v37_v37 }
  0x30   :  { %568 = vmatmul.mubr.f32.gmra.mrb[6].mxu0 %v20_v38  ;;  %595 = vmatmul.mubr.f32.gmra.mrb[6].mxu1 %v38_v39 }
  0x31   :  { %570 = vmatprep.mubr.f32.mxu0 %v21_v40  ;;  %597 = vmatprep.mubr.f32.mxu1 %v39_v41 }
  0x34   :  { %571 = vmatmul.mubr.f32.gmra.mrb[8].mxu0 %v22_v42  ;;  %598 = vmatmul.mubr.f32.gmra.mrb[8].mxu1 %v40_v43 }
  0x35   :  { %573 = vmatprep.mubr.f32.mxu0 %v23_v44  ;;  %600 = vmatprep.mubr.f32.mxu1 %v41_v45 }
  0x38   :  { %574 = vmatmul.mubr.f32.gmra.mrb[10].mxu0 %v24_v46  ;;  %601 = vmatmul.mubr.f32.gmra.mrb[10].mxu1 %v42_v47 }
  0x39   :  { %576 = vmatprep.mubr.f32.mxu0 %v25_v48  ;;  %603 = vmatprep.mubr.f32.mxu1 %v43_v49 }
  0x3c   :  { %577 = vmatmul.mubr.f32.gmra.mrb[12].mxu0 %v26_v50  ;;  %604 = vmatmul.mubr.f32.gmra.mrb[12].mxu1 %v44_v51 }
  0x3d   :  { %579 = vmatprep.mubr.f32.mxu0 %v27_v52  ;;  %606 = vmatprep.mubr.f32.mxu1 %v45_v53 }
  0x40   :  { %580 = vmatmul.mubr.f32.gmra.mrb[14].mxu0 %v28_v54  ;;  %607 = vmatmul.mubr.f32.gmra.mrb[14].mxu1 %v46_v55 }
  0x41   :  { %582 = vmatprep.mubr.f32.mxu0 %v29_v56  ;;  %609 = vmatprep.mubr.f32.mxu1 %v47_v57 }
  0x44   :  { %583 = vmatmul.mubr.f32.gmra.mrb[16].mxu0 %v30_v58  ;;  %610 = vmatmul.mubr.f32.gmra.mrb[16].mxu1 %v48_v59 }
  0xf7   :  { %v560_v60 = vpop.f32.mrb[0].mxu0  ;;  %v836_v61 = vpop.f32.mrb[0].mxu1 }
  0xf8   :  { %311 = vst [vmem:[%s1054_s2 + $0x8] sm:$0xff] %v560_v60  ;;  %v389_v62 = vmul.f32 %v560_v60, %v560_v60  ;;  %v131_v63 = vpop.f32.mrb[1].mxu0  ;;  %329 = vst [vmem:[%s1054_s2 + $0x98] sm:$0xff] %v836_v61  ;;  %v845_v0 = vpop.f32.mrb[1].mxu1 }
  0xf9   :  { %310 = vst [vmem:[%s1054_s2] sm:$0xff] %v131_v63  ;;  %v346_v1 = vadd.f32 %v560_v60, %v131_v63  ;;  %v388_v2 = vmul.f32 %v131_v63, %v131_v63  ;;  %328 = vst [vmem:[%s1054_s2 + $0x90] sm:$0xff] %v845_v0 }
  0xfb   :  { %v424_v3 = vadd.f32 %v389_v62, %v388_v2  ;;  %v563_v4 = vpop.f32.mrb[2].mxu0  ;;  %v854_v5 = vpop.f32.mrb[2].mxu1 }
  0xfc   :  { %313 = vst [vmem:[%s1054_s2 + $0x18] sm:$0xff] %v563_v4  ;;  %v141_v6 = vpop.f32.mrb[3].mxu0  ;;  %331 = vst [vmem:[%s1054_s2 + $0xa8] sm:$0xff] %v854_v5  ;;  %v863_v7 = vpop.f32.mrb[3].mxu1  ;;  %v391_v10 = vmul.f32 %v563_v4, %v563_v4 }
  0xfd   :  { %312 = vst [vmem:[%s1054_s2 + $0x10] sm:$0xff] %v141_v6  ;;  %v347_v8 = vadd.f32 %v346_v1, %v141_v6  ;;  %v390_v9 = vmul.f32 %v141_v6, %v141_v6  ;;  %330 = vst [vmem:[%s1054_s2 + $0xa0] sm:$0xff] %v863_v7 }
  0xff   :  { %v425_v11 = vadd.f32 %v424_v3, %v390_v9  ;;  %v566_v12 = vpop.f32.mrb[4].mxu0  ;;  %v348_v13 = vadd.f32 %v563_v4, %v347_v8  ;;  %v872_v14 = vpop.f32.mrb[4].mxu1 }
 0x100   :  { %315 = vst [vmem:[%s1054_s2 + $0x28] sm:$0xff] %v566_v12  ;;  %v151_v15 = vpop.f32.mrb[5].mxu0  ;;  %333 = vst [vmem:[%s1054_s2 + $0xb8] sm:$0xff] %v872_v14  ;;  %v881_v16 = vpop.f32.mrb[5].mxu1  ;;  %v393_v20 = vmul.f32 %v566_v12, %v566_v12 }
 0x101   :  { %314 = vst [vmem:[%s1054_s2 + $0x20] sm:$0xff] %v151_v15  ;;  %v349_v17 = vadd.f32 %v348_v13, %v151_v15  ;;  %v392_v18 = vmul.f32 %v151_v15, %v151_v15  ;;  %v426_v19 = vadd.f32 %v425_v11, %v391_v10  ;;  %332 = vst [vmem:[%s1054_s2 + $0xb0] sm:$0xff] %v881_v16 }
 0x103   :  { %v427_v21 = vadd.f32 %v426_v19, %v392_v18  ;;  %v569_v22 = vpop.f32.mrb[6].mxu0  ;;  %v350_v23 = vadd.f32 %v566_v12, %v349_v17  ;;  %v890_v24 = vpop.f32.mrb[6].mxu1 }
 0x104   :  { %317 = vst [vmem:[%s1054_s2 + $0x38] sm:$0xff] %v569_v22  ;;  %v161_v25 = vpop.f32.mrb[7].mxu0  ;;  %335 = vst [vmem:[%s1054_s2 + $0xc8] sm:$0xff] %v890_v24  ;;  %v899_v26 = vpop.f32.mrb[7].mxu1  ;;  %v395_v30 = vmul.f32 %v569_v22, %v569_v22 }
 0x105   :  { %316 = vst [vmem:[%s1054_s2 + $0x30] sm:$0xff] %v161_v25  ;;  %v351_v27 = vadd.f32 %v350_v23, %v161_v25  ;;  %v394_v28 = vmul.f32 %v161_v25, %v161_v25  ;;  %v428_v29 = vadd.f32 %v427_v21, %v393_v20  ;;  %334 = vst [vmem:[%s1054_s2 + $0xc0] sm:$0xff] %v899_v26 }
 0x107   :  { %v429_v31 = vadd.f32 %v428_v29, %v394_v28  ;;  %v572_v32 = vpop.f32.mrb[8].mxu0  ;;  %v352_v33 = vadd.f32 %v569_v22, %v351_v27  ;;  %v908_v34 = vpop.f32.mrb[8].mxu1  ;;  %v406_v27 = vmul.f32 %v845_v0, %v845_v0 }
 0x108   :  { %319 = vst [vmem:[%s1054_s2 + $0x48] sm:$0xff] %v572_v32  ;;  %v171_v35 = vpop.f32.mrb[9].mxu0  ;;  %337 = vst [vmem:[%s1054_s2 + $0xd8] sm:$0xff] %v908_v34  ;;  %v917_v36 = vpop.f32.mrb[9].mxu1  ;;  %v397_v40 = vmul.f32 %v572_v32, %v572_v32 }
 0x109   :  { %318 = vst [vmem:[%s1054_s2 + $0x40] sm:$0xff] %v171_v35  ;;  %v353_v37 = vadd.f32 %v352_v33, %v171_v35  ;;  %v396_v38 = vmul.f32 %v171_v35, %v171_v35  ;;  %v430_v39 = vadd.f32 %v429_v31, %v395_v30  ;;  %336 = vst [vmem:[%s1054_s2 + $0xd0] sm:$0xff] %v917_v36 }
 0x10a   :  { %v407_v30 = vmul.f32 %v836_v61, %v836_v61  ;;  %v408_v33 = vmul.f32 %v863_v7, %v863_v7 }
 0x10b   :  { %v431_v41 = vadd.f32 %v430_v39, %v396_v38  ;;  %v575_v42 = vpop.f32.mrb[10].mxu0  ;;  %v354_v43 = vadd.f32 %v572_v32, %v353_v37  ;;  %v926_v44 = vpop.f32.mrb[10].mxu1  ;;  %v409_v38 = vmul.f32 %v854_v5, %v854_v5 }
 0x10c   :  { %321 = vst [vmem:[%s1054_s2 + $0x58] sm:$0xff] %v575_v42  ;;  %v181_v45 = vpop.f32.mrb[11].mxu0  ;;  %339 = vst [vmem:[%s1054_s2 + $0xe8] sm:$0xff] %v926_v44  ;;  %v935_v46 = vpop.f32.mrb[11].mxu1  ;;  %v399_v50 = vmul.f32 %v575_v42, %v575_v42 }
 0x10d   :  { %320 = vst [vmem:[%s1054_s2 + $0x50] sm:$0xff] %v181_v45  ;;  %v355_v47 = vadd.f32 %v354_v43, %v181_v45  ;;  %v398_v48 = vmul.f32 %v181_v45, %v181_v45  ;;  %v432_v49 = vadd.f32 %v431_v41, %v397_v40  ;;  %338 = vst [vmem:[%s1054_s2 + $0xe0] sm:$0xff] %v935_v46 }
 0x10f   :  { %v433_v51 = vadd.f32 %v432_v49, %v398_v48  ;;  %v578_v52 = vpop.f32.mrb[12].mxu0  ;;  %v356_v53 = vadd.f32 %v575_v42, %v355_v47  ;;  %v944_v54 = vpop.f32.mrb[12].mxu1 }
 0x110   :  { %323 = vst [vmem:[%s1054_s2 + $0x68] sm:$0xff] %v578_v52  ;;  %v191_v55 = vpop.f32.mrb[13].mxu0  ;;  %341 = vst [vmem:[%s1054_s2 + $0xf8] sm:$0xff] %v944_v54  ;;  %v953_v56 = vpop.f32.mrb[13].mxu1  ;;  %v401_v60 = vmul.f32 %v578_v52, %v578_v52 }
 0x111   :  { %322 = vst [vmem:[%s1054_s2 + $0x60] sm:$0xff] %v191_v55  ;;  %v357_v57 = vadd.f32 %v356_v53, %v191_v55  ;;  %v400_v58 = vmul.f32 %v191_v55, %v191_v55  ;;  %v434_v59 = vadd.f32 %v433_v51, %v399_v50  ;;  %340 = vst [vmem:[%s1054_s2 + $0xf0] sm:$0xff] %v953_v56 }
 0x113   :  { %v435_v62 = vadd.f32 %v434_v59, %v400_v58  ;;  %v581_v63 = vpop.f32.mrb[14].mxu0  ;;  %v358_v1 = vadd.f32 %v578_v52, %v357_v57  ;;  %v962_v2 = vpop.f32.mrb[14].mxu1 }
 0x114   :  { %325 = vst [vmem:[%s1054_s2 + $0x78] sm:$0xff] %v581_v63  ;;  %v201_v3 = vpop.f32.mrb[15].mxu0  ;;  %343 = vst [vmem:[%s1054_s2 + $0x108] sm:$0xff] %v962_v2  ;;  %v971_v4 = vpop.f32.mrb[15].mxu1  ;;  %v403_v10 = vmul.f32 %v581_v63, %v581_v63 }
 0x115   :  { %324 = vst [vmem:[%s1054_s2 + $0x70] sm:$0xff] %v201_v3  ;;  %v359_v6 = vadd.f32 %v358_v1, %v201_v3  ;;  %v402_v8 = vmul.f32 %v201_v3, %v201_v3  ;;  %v436_v9 = vadd.f32 %v435_v62, %v401_v60  ;;  %342 = vst [vmem:[%s1054_s2 + $0x100] sm:$0xff] %v971_v4 }
 0x117   :  { %v437_v11 = vadd.f32 %v436_v9, %v402_v8  ;;  %v584_v12 = vpop.f32.mrb[16].mxu0  ;;  %v360_v13 = vadd.f32 %v581_v63, %v359_v6  ;;  %v980_v15 = vpop.f32.mrb[16].mxu1 }
 0x118   :  { %327 = vst [vmem:[%s1054_s2 + $0x88] sm:$0xff] %v584_v12  ;;  %v211_v17 = vpop.f32.mrb[17].mxu0  ;;  %345 = vst [vmem:[%s1054_s2 + $0x118] sm:$0xff] %v980_v15  ;;  %v301_v18 = vpop.f32.mrb[17].mxu1  ;;  %v405_v22 = vmul.f32 %v584_v12, %v584_v12 }
 0x119   :  { %326 = vst [vmem:[%s1054_s2 + $0x80] sm:$0xff] %v211_v17  ;;  %v361_v19 = vadd.f32 %v360_v13, %v211_v17  ;;  %v404_v20 = vmul.f32 %v211_v17, %v211_v17  ;;  %v438_v21 = vadd.f32 %v437_v11, %v403_v10  ;;  %344 = vst [vmem:[%s1054_s2 + $0x110] sm:$0xff] %v301_v18 }
 0x11a   :  { %v423_v13 = vmul.f32 %v980_v15, %v980_v15 }
 0x11b   :  { %v362_v23 = vadd.f32 %v584_v12, %v361_v19  ;;  %v439_v25 = vadd.f32 %v438_v21, %v404_v20 }
 0x11d   :  { %v440_v28 = vadd.f32 %v439_v25, %v405_v22  ;;  %v363_v29 = vadd.f32 %v362_v23, %v845_v0  ;;  %v410_v0 = vmul.f32 %v881_v16, %v881_v16 }
 0x11f   :  { %v441_v31 = vadd.f32 %v440_v28, %v406_v27  ;;  %v364_v32 = vadd.f32 %v836_v61, %v363_v29  ;;  %v411_v61 = vmul.f32 %v872_v14, %v872_v14 }
 0x121   :  { %v365_v35 = vadd.f32 %v364_v32, %v863_v7  ;;  %v442_v37 = vadd.f32 %v441_v31, %v407_v30  ;;  %v412_v7 = vmul.f32 %v899_v26, %v899_v26 }
 0x123   :  { %v443_v39 = vadd.f32 %v442_v37, %v408_v33  ;;  %v366_v40 = vadd.f32 %v854_v5, %v365_v35  ;;  %v413_v5 = vmul.f32 %v890_v24, %v890_v24 }
 0x125   :  { %v367_v41 = vadd.f32 %v366_v40, %v881_v16  ;;  %v444_v42 = vadd.f32 %v443_v39, %v409_v38  ;;  %v414_v16 = vmul.f32 %v917_v36, %v917_v36 }
 0x127   :  { %v445_v43 = vadd.f32 %v444_v42, %v410_v0  ;;  %v368_v45 = vadd.f32 %v872_v14, %v367_v41  ;;  %v415_v14 = vmul.f32 %v908_v34, %v908_v34 }
 0x129   :  { %v369_v47 = vadd.f32 %v368_v45, %v899_v26  ;;  %v446_v48 = vadd.f32 %v445_v43, %v411_v61  ;;  %v416_v26 = vmul.f32 %v935_v46, %v935_v46 }
 0x12b   :  { %v447_v49 = vadd.f32 %v446_v48, %v412_v7  ;;  %v370_v50 = vadd.f32 %v890_v24, %v369_v47  ;;  %v417_v24 = vmul.f32 %v926_v44, %v926_v44 }
 0x12d   :  { %v371_v51 = vadd.f32 %v370_v50, %v917_v36  ;;  %v448_v52 = vadd.f32 %v447_v49, %v413_v5  ;;  %v418_v36 = vmul.f32 %v953_v56, %v953_v56 }
 0x12f   :  { %v449_v53 = vadd.f32 %v448_v52, %v414_v16  ;;  %v372_v55 = vadd.f32 %v908_v34, %v371_v51  ;;  %v419_v34 = vmul.f32 %v944_v54, %v944_v54 }
 0x131   :  { %v373_v57 = vadd.f32 %v372_v55, %v935_v46  ;;  %v450_v58 = vadd.f32 %v449_v53, %v415_v14  ;;  %v420_v46 = vmul.f32 %v971_v4, %v971_v4 }
 0x133   :  { %v451_v59 = vadd.f32 %v450_v58, %v416_v26  ;;  %v374_v60 = vadd.f32 %v926_v44, %v373_v57  ;;  %v421_v44 = vmul.f32 %v962_v2, %v962_v2 }
 0x135   :  { %v375_v62 = vadd.f32 %v374_v60, %v953_v56  ;;  %v452_v63 = vadd.f32 %v451_v59, %v417_v24  ;;  %v422_v56 = vmul.f32 %v301_v18, %v301_v18 }
 0x137   :  { %v453_v1 = vadd.f32 %v452_v63, %v418_v36  ;;  %v376_v3 = vadd.f32 %v944_v54, %v375_v62 }
 0x139   :  { %v377_v6 = vadd.f32 %v376_v3, %v971_v4  ;;  %v454_v8 = vadd.f32 %v453_v1, %v419_v34 }
 0x13b   :  { %v455_v9 = vadd.f32 %v454_v8, %v420_v46  ;;  %v378_v10 = vadd.f32 %v962_v2, %v377_v6 }
 0x13d   :  { %v379_v11 = vadd.f32 %v378_v10, %v301_v18  ;;  %v456_v12 = vadd.f32 %v455_v9, %v421_v44 }
 0x13f   :  { %v380_v54 = vadd.f32 %v980_v15, %v379_v11  ;;  %v457_v17 = vadd.f32 %v456_v12, %v422_v56 }
 0x141   :  { %v381_v19 = vrot.slane %v380_v54, 4  ;;  %v458_v20 = vadd.f32 %v457_v17, %v423_v13 }
 0x143   :  { %v382_v21 = vadd.f32 %v381_v19, %v380_v54  ;;  %v459_v4 = vrot.slane %v458_v20, 4 }
 0x145   :  { %v383_v22 = vrot.slane %v382_v21, 2  ;;  %v460_v23 = vadd.f32 %v459_v4, %v458_v20 }
 0x147   :  { %v384_v25 = vadd.f32 %v383_v22, %v382_v21  ;;  %v461_v27 = vrot.slane %v460_v23, 2 }
 0x149   :  { %v385_v28 = vrot.slane %v384_v25, 1  ;;  %v462_v29 = vadd.f32 %v461_v27, %v460_v23 }
 0x14b   :  { %v386_v2 = vadd.f32 %v385_v28, %v384_v25  ;;  %v463_v30 = vrot.slane %v462_v29, 1 }
 0x14d   :  { %387 = vst [vmem:[%s1055_s3] sm:$0x1] %v386_v2  ;;  %v464_v18 = vadd.f32 %v463_v30, %v462_v29 }
 0x14f   :  { %465 = vst [vmem:[%s1055_s3 + $0x1] sm:$0x1] %v464_v18 }

// kernel: decoder_forward.14
= control target key start
LH: loop header
LB: loop body
LE: loop exit
PB: predicated region body
PF: predicated region fallthrough
CT: control target
= control target key end

     0   :  { %s1009_s15 = smov 0   ;;  %s1278_s0 = inlined_call_operand.vmem [shape: f32[2,13,17,128], index: 0, kind: input, shape index: {}]   ;;  %s1279_s1 = inlined_call_operand.vmem [shape: f32[128,128], index: 1, kind: input, shape index: {}]   ;;  %s1280_s2 = inlined_call_operand.vmem [shape: f32[192,1], index: 2, kind: input, shape index: {}]   ;;  %s1281_s3 = inlined_call_operand.vmem [shape: f32[2,192,128], index: 3, kind: output, shape index: {0}]   ;;  %s1282_s4 = inlined_call_operand.vmem [shape: f32[2,2,128], index: 4, kind: output, shape index: {1}]  }
   0x1 LB: > { %s796_s16 = sadd.s32 4294967295, %s981_s15   ;;  %p800_p0 = scmp.ge.s32.totalorder %s981_s15, 1  ;;  %s981_s15 = sphi %s1009_s15, %s15_s15  }
   0x2   : > { %p165_p1 = scmp.lt.s32.totalorder %s981_s15, 3 }
   0x4   : > { %p166_p2 = pnand %p800_p0, %p165_p1 }
   0x5   : > { %v233_v0 = vld [vmem:[%s1279_s1] sm:$0xff] (!%p166_p2)  ;;  %v234_v1 = vld [vmem:[%s1279_s1 + $0x8] sm:$0xff] (!%p166_p2)  ;;  %v235_v2 = vld [vmem:[%s1279_s1 + $0x10] sm:$0xff] (!%p166_p2)  ;;  %p195_p3 = scmp.lt.s32.totalorder (!%p166_p2), %s796_s16, 1  ;;  %v983_v5 = vmov (!%p166_p2), 0  }
   0x6   : > { %169 = sbr.rel (%p166_p2) target bundleno = 318 (0x13e), region = 32  ;;  %v914_v3 = vpack.c.bf16 (!%p166_p2), %v234_v1, %v233_v0  ;;  %v236_v4 = vld [vmem:[%s1279_s1 + $0x18] sm:$0xff] (!%p166_p2)  ;;  %973 = vset.pattern.permute.xlu0 (!%p166_p2), %v983_v5  ;;  %974 = vset.pattern.permute.xlu1 (!%p166_p2), %v983_v5  ;;  %v237_v7 = vld [vmem:[%s1279_s1 + $0x20] sm:$0xff] (!%p166_p2)  ;;  %v238_v8 = vld [vmem:[%s1279_s1 + $0x28] sm:$0xff] (!%p166_p2) }
   0x7   : > { %v918_v6 = vpack.c.bf16 (!%p166_p2), %v236_v4, %v235_v2  ;;  %v922_v9 = vpack.c.bf16 (!%p166_p2), %v238_v8, %v237_v7  ;;  %v434_v10 = vld [vmem:[%s1280_s2] sm:$0xff] (!%p166_p2)  ;;  %v436_v11 = vld [vmem:[%s1280_s2 + $0x10] sm:$0xff] (!%p166_p2)  ;;  %v240_v13 = vld [vmem:[%s1279_s1 + $0x38] sm:$0xff] (!%p166_p2) }
   0x8   : > { %915 = vmatprep.subr.bf16.mxu0 (!%p166_p2), %v914_v3  ;;  %946 = vmatprep.subr.bf16.mxu1 (!%p166_p2), %v914_v3  ;;  %v239_v12 = vld [vmem:[%s1279_s1 + $0x30] sm:$0xff] (!%p166_p2)  ;;  %v435_v16 = vld [vmem:[%s1280_s2 + $0x8] sm:$0xff] (!%p166_p2)  ;;  %v437_v17 = vld [vmem:[%s1280_s2 + $0x18] sm:$0xff] (!%p166_p2) }
   0x9   : > { %917 = vmatpush3.bf16.msra.mxu0 (!%p166_p2), %v914_v3  ;;  %954 = vmatpush3.bf16.msra.mxu1 (!%p166_p2), %v914_v3  ;;  %v926_v18 = vpack.c.bf16 (!%p166_p2), %v240_v13, %v239_v12  ;;  %v241_v19 = vld [vmem:[%s1279_s1 + $0x40] sm:$0xff] (!%p166_p2)  ;;  %v242_v20 = vld [vmem:[%s1279_s1 + $0x48] sm:$0xff] (!%p166_p2)  ;;  %v243_v23 = vld [vmem:[%s1279_s1 + $0x50] sm:$0xff] (!%p166_p2) }
   0xa   : > { %919 = vmatprep.subr.bf16.mxu0 (!%p166_p2), %v918_v6  ;;  %947 = vmatprep.subr.bf16.mxu1 (!%p166_p2), %v918_v6  ;;  %v438_v21 = vld [vmem:[%s1280_s2 + $0x20] sm:$0xff] (!%p166_p2)  ;;  %v930_v22 = vpack.c.bf16 (!%p166_p2), %v242_v20, %v241_v19  ;;  %v244_v24 = vld [vmem:[%s1279_s1 + $0x58] sm:$0xff] (!%p166_p2)  ;;  %v439_v25 = vld [vmem:[%s1280_s2 + $0x28] sm:$0xff] (!%p166_p2) }
   0xb   : > { %460 = vperm.xlu0 (!%p166_p2), %973, %v434_v10   ;;  %470 = vperm.xlu1 (!%p166_p2), %974, %v436_v11   ;;  %v440_v26 = vld [vmem:[%s1280_s2 + $0x30] sm:$0xff] (!%p166_p2)  ;;  %v934_v27 = vpack.c.bf16 (!%p166_p2), %v244_v24, %v243_v23  ;;  %v245_v28 = vld [vmem:[%s1279_s1 + $0x60] sm:$0xff] (!%p166_p2)  ;;  %v246_v29 = vld [vmem:[%s1279_s1 + $0x68] sm:$0xff] (!%p166_p2) }
   0xc   : > { %v441_v30 = vld [vmem:[%s1280_s2 + $0x38] sm:$0xff] (!%p166_p2)  ;;  %v442_v31 = vld [vmem:[%s1280_s2 + $0x40] sm:$0xff] (!%p166_p2)  ;;  %v938_v32 = vpack.c.bf16 (!%p166_p2), %v246_v29, %v245_v28  ;;  %v247_v33 = vld [vmem:[%s1279_s1 + $0x70] sm:$0xff] (!%p166_p2) }
   0xd   : > { %s1284_s16 = smov (!%p195_p3, %s796_s16), 1  ;;  %921 = vmatpush3.bf16.msra.mxu0 %v918_v6  ;;  %955 = vmatpush3.bf16.msra.mxu1 %v918_v6  ;;  %v248_v34 = vld [vmem:[%s1279_s1 + $0x78] sm:$0xff]  ;;  %v443_v35 = vld [vmem:[%s1280_s2 + $0x48] sm:$0xff]  ;;  %v444_v36 = vld [vmem:[%s1280_s2 + $0x50] sm:$0xff] }
   0xe   : > { %s962_s29 = smul.u32 312, %s1284_s16  ;;  %923 = vmatprep.subr.bf16.mxu0 %v922_v9  ;;  %948 = vmatprep.subr.bf16.mxu1 %v922_v9  ;;  %v942_v37 = vpack.c.bf16 %v248_v34, %v247_v33  ;;  %v445_v38 = vld [vmem:[%s1280_s2 + $0x58] sm:$0xff]  ;;  %v446_v39 = vld [vmem:[%s1280_s2 + $0x60] sm:$0xff]  ;;  %v447_v40 = vld [vmem:[%s1280_s2 + $0x68] sm:$0xff]  ;;  %s803_s8 = sshll.u32 %s1284_s16, 1 }
   0xf   : > { %465 = vperm.xlu0 %973, %v435_v16   ;;  %475 = vperm.xlu1 %974, %v437_v17   ;;  %v448_v45 = vld [vmem:[%s1280_s2 + $0x70] sm:$0xff]  ;;  %v449_v46 = vld [vmem:[%s1280_s2 + $0x78] sm:$0xff]  ;;  %v450_v51 = vld [vmem:[%s1280_s2 + $0x80] sm:$0xff]  ;;  %s208_s11 = scalar_lea.vmem %s1282_s4, %s803_s8 }
  0x10   : > { %s1053_s14 = scalar_lea.vmem %s1278_s0, %s962_s29  ;;  %v451_v52 = vld [vmem:[%s1280_s2 + $0x88] sm:$0xff]  ;;  %v452_v57 = vld [vmem:[%s1280_s2 + $0x90] sm:$0xff]  ;;  %v453_v58 = vld [vmem:[%s1280_s2 + $0x98] sm:$0xff] }
  0x11   : > { %v209_v14 = vld [vmem:[%s1053_s14] sm:$0xff]  ;;  %v221_v15 = vld [vmem:[%s1053_s14 + $0x90] sm:$0xff]  ;;  %925 = vmatpush3.bf16.msra.mxu0 %v922_v9  ;;  %956 = vmatpush3.bf16.msra.mxu1 %v922_v9  ;;  %v210_v41 = vld [vmem:[%s1053_s14 + $0x8] sm:$0xff] }
  0x12   : > { %878 = vmatprep.mubr.f32.mxu0 %v209_v14  ;;  %896 = vmatprep.mubr.f32.mxu1 %v221_v15  ;;  %v222_v42 = vld [vmem:[%s1053_s14 + $0x98] sm:$0xff]  ;;  %v223_v44 = vld [vmem:[%s1053_s14 + $0xa8] sm:$0xff]  ;;  %v212_v47 = vld [vmem:[%s1053_s14 + $0x20] sm:$0xff] }
  0x13   : > { %927 = vmatprep.subr.bf16.mxu0 %v926_v18  ;;  %949 = vmatprep.subr.bf16.mxu1 %v926_v18  ;;  %v211_v43 = vld [vmem:[%s1053_s14 + $0x18] sm:$0xff]  ;;  %v224_v48 = vld [vmem:[%s1053_s14 + $0xb0] sm:$0xff]  ;;  %v225_v50 = vld [vmem:[%s1053_s14 + $0xc0] sm:$0xff] }
  0x14   : > { %480 = vperm.xlu0 %973, %v438_v21   ;;  %485 = vperm.xlu1 %974, %v439_v25   ;;  %v213_v49 = vld [vmem:[%s1053_s14 + $0x30] sm:$0xff]  ;;  %v214_v53 = vld [vmem:[%s1053_s14 + $0x38] sm:$0xff]  ;;  %v226_v54 = vld [vmem:[%s1053_s14 + $0xc8] sm:$0xff] }
  0x15   : > { %929 = vmatpush3.bf16.msra.mxu0 %v926_v18  ;;  %957 = vmatpush3.bf16.msra.mxu1 %v926_v18  ;;  %v215_v55 = vld [vmem:[%s1053_s14 + $0x48] sm:$0xff]  ;;  %v227_v56 = vld [vmem:[%s1053_s14 + $0xd8] sm:$0xff]  ;;  %v216_v59 = vld [vmem:[%s1053_s14 + $0x50] sm:$0xff] }
  0x16   : > { %931 = vmatprep.subr.bf16.mxu0 %v930_v22  ;;  %950 = vmatprep.subr.bf16.mxu1 %v930_v22  ;;  %v228_v60 = vld [vmem:[%s1053_s14 + $0xe0] sm:$0xff]  ;;  %v229_v62 = vld [vmem:[%s1053_s14 + $0xf0] sm:$0xff]  ;;  %v455_v0 = vld [vmem:[%s1280_s2 + $0xa8] sm:$0xff] }
  0x17   : > { %v217_v61 = vld [vmem:[%s1053_s14 + $0x60] sm:$0xff]  ;;  %v218_v1 = vld [vmem:[%s1053_s14 + $0x68] sm:$0xff]  ;;  %v230_v2 = vld [vmem:[%s1053_s14 + $0xf8] sm:$0xff] }
  0x18   : > { %490 = vperm.xlu0 %973, %v440_v26   ;;  %495 = vperm.xlu1 %974, %v441_v30   ;;  %v454_v63 = vld [vmem:[%s1280_s2 + $0xa0] sm:$0xff]  ;;  %v219_v3 = vld [vmem:[%s1053_s14 + $0x78] sm:$0xff]  ;;  %v231_v4 = vld [vmem:[%s1053_s14 + $0x108] sm:$0xff] }
  0x19   : > { %933 = vmatpush3.bf16.msra.mxu0 %v930_v22  ;;  %958 = vmatpush3.bf16.msra.mxu1 %v930_v22  ;;  %v456_v5 = vld [vmem:[%s1280_s2 + $0xb0] sm:$0xff]  ;;  %v457_v6 = vld [vmem:[%s1280_s2 + $0xb8] sm:$0xff]  ;;  %v220_v7 = vld [vmem:[%s1053_s14 + $0x80] sm:$0xff] }
  0x1a   : > { %935 = vmatprep.subr.bf16.mxu0 %v934_v27  ;;  %951 = vmatprep.subr.bf16.mxu1 %v934_v27  ;;  %v232_v8 = vld [vmem:[%s1053_s14 + $0x110] sm:$0xff]  ;;  %s963_s14 = smul.u32 192, %s1284_s16 }
  0x1c   : > { %500 = vperm.xlu0 %973, %v442_v31   ;;  %505 = vperm.xlu1 %974, %v443_v35   ;;  %s1185_s7 = scalar_lea.vmem %s1281_s3, %s963_s14 }
  0x1d   : > { %937 = vmatpush3.bf16.msra.mxu0 %v934_v27  ;;  %959 = vmatpush3.bf16.msra.mxu1 %v934_v27 }
  0x1e   : > { %939 = vmatprep.subr.bf16.mxu0 %v938_v32  ;;  %952 = vmatprep.subr.bf16.mxu1 %v938_v32 }
  0x20   : > { %510 = vperm.xlu0 %973, %v444_v36   ;;  %515 = vperm.xlu1 %974, %v445_v38  }
  0x21   : > { %941 = vmatpush3.bf16.msra.mxu0 %v938_v32  ;;  %960 = vmatpush3.bf16.msra.mxu1 %v938_v32 }
  0x22   : > { %943 = vmatprep.subr.bf16.mxu0 %v942_v37  ;;  %953 = vmatprep.subr.bf16.mxu1 %v942_v37 }
  0x24   : > { %520 = vperm.xlu0 %973, %v446_v39   ;;  %525 = vperm.xlu1 %974, %v447_v40  }
  0x25   : > { %945 = vmatpush3.bf16.msra.mxu0 %v942_v37  ;;  %961 = vmatpush3.bf16.msra.mxu1 %v942_v37 }
  0x28   : > { %879 = vmatmul.mubr.f32.vlgmr.msra.gmra.mrb[0].mxu0 %v210_v41  ;;  %897 = vmatmul.mubr.f32.vlgmr.msra.gmra.mrb[0].mxu1 %v222_v42 }
  0x29   : > { %881 = vmatprep.mubr.f32.mxu0 %v211_v43  ;;  %899 = vmatprep.mubr.f32.mxu1 %v223_v44 }
  0x2a   : > { %530 = vperm.xlu0 %973, %v448_v45   ;;  %535 = vperm.xlu1 %974, %v449_v46  }
  0x2c   : > { %882 = vmatmul.mubr.f32.gmra.mrb[2].mxu0 %v212_v47  ;;  %900 = vmatmul.mubr.f32.gmra.mrb[2].mxu1 %v224_v48 }
  0x2d   : > { %884 = vmatprep.mubr.f32.mxu0 %v213_v49  ;;  %902 = vmatprep.mubr.f32.mxu1 %v225_v50 }
  0x2e   : > { %540 = vperm.xlu0 %973, %v450_v51   ;;  %545 = vperm.xlu1 %974, %v451_v52  }
  0x30   : > { %885 = vmatmul.mubr.f32.gmra.mrb[4].mxu0 %v214_v53  ;;  %903 = vmatmul.mubr.f32.gmra.mrb[4].mxu1 %v226_v54 }
  0x31   : > { %887 = vmatprep.mubr.f32.mxu0 %v215_v55  ;;  %905 = vmatprep.mubr.f32.mxu1 %v227_v56 }
  0x32   : > { %550 = vperm.xlu0 %973, %v452_v57   ;;  %555 = vperm.xlu1 %974, %v453_v58  }
  0x34   : > { %888 = vmatmul.mubr.f32.gmra.mrb[6].mxu0 %v216_v59  ;;  %906 = vmatmul.mubr.f32.gmra.mrb[6].mxu1 %v228_v60 }
  0x35   : > { %890 = vmatprep.mubr.f32.mxu0 %v217_v61  ;;  %908 = vmatprep.mubr.f32.mxu1 %v229_v62 }
  0x36   : > { %560 = vperm.xlu0 %973, %v454_v63   ;;  %565 = vperm.xlu1 %974, %v455_v0  }
  0x38   : > { %891 = vmatmul.mubr.f32.gmra.mrb[8].mxu0 %v218_v1  ;;  %909 = vmatmul.mubr.f32.gmra.mrb[8].mxu1 %v230_v2 }
  0x39   : > { %893 = vmatprep.mubr.f32.mxu0 %v219_v3  ;;  %911 = vmatprep.mubr.f32.mxu1 %v231_v4 }
  0x3a   : > { %570 = vperm.xlu0 %973, %v456_v5   ;;  %575 = vperm.xlu1 %974, %v457_v6  }
  0x3c   : > { %894 = vmatmul.mubr.f32.gmra.mrb[10].mxu0 %v220_v7  ;;  %912 = vmatmul.mubr.f32.gmra.mrb[10].mxu1 %v232_v8 }
  0x8a   : > { %v461_v9 = vpop.permute.xlu0 %460  ;;  %v471_v10 = vpop.permute.xlu1 %470 }
  0x8e   : > { %v466_v11 = vpop.permute.xlu0 %465  ;;  %v476_v12 = vpop.permute.xlu1 %475 }
  0x93   : > { %v481_v13 = vpop.permute.xlu0 %480  ;;  %v486_v14 = vpop.permute.xlu1 %485 }
  0x97   : > { %v1169_v15 = vpop.permute.xlu0 %490  ;;  %v1171_v16 = vpop.permute.xlu1 %495 }
  0x9b   : > { %v1173_v17 = vpop.permute.xlu0 %500  ;;  %v1175_v18 = vpop.permute.xlu1 %505 }
  0x9f   : > { %v1177_v19 = vpop.permute.xlu0 %510  ;;  %v1179_v20 = vpop.permute.xlu1 %515 }
  0xa3   : > { %v521_v21 = vpop.permute.xlu0 %520  ;;  %v526_v22 = vpop.permute.xlu1 %525 }
  0xa9   : > { %v531_v23 = vpop.permute.xlu0 %530  ;;  %v536_v24 = vpop.permute.xlu1 %535 }
  0xad   : > { %v541_v25 = vpop.permute.xlu0 %540  ;;  %v546_v26 = vpop.permute.xlu1 %545 }
  0xb1   : > { %v551_v35 = vpop.permute.xlu0 %550  ;;  %v556_v36 = vpop.permute.xlu1 %555 }
  0xb5   : > { %v561_v62 = vpop.permute.xlu0 %560  ;;  %v566_v63 = vpop.permute.xlu1 %565 }
  0xfb   : > { %v880_v27 = vpop.f32.mrb[0].mxu0  ;;  %v898_v28 = vpop.f32.mrb[0].mxu1 }
  0xfc   : > { %v579_v29 = vmul.f32 %v880_v27, %v466_v11  ;;  %v1187_v30 = vmul.f32 %v898_v28, %v526_v22  ;;  %v315_v31 = vpop.f32.mrb[1].mxu0  ;;  %v375_v32 = vpop.f32.mrb[1].mxu1 }
  0xfd   : > { %v578_v33 = vmul.f32 %v461_v9, %v315_v31  ;;  %v1189_v34 = vmul.f32 %v521_v21, %v375_v32 }
  0xfe   : > { %603 = vst [vmem:[%s1185_s7 + $0x8] sm:$0xff] %v579_v29  ;;  %v657_v37 = vmul.f32 %v579_v29, %v579_v29  ;;  %615 = vst [vmem:[%s1185_s7 + $0x68] sm:$0xff] %v1187_v30 }
  0xff   : > { %602 = vst [vmem:[%s1185_s7] sm:$0xff] %v578_v33  ;;  %v626_v38 = vadd.f32 %v579_v29, %v578_v33  ;;  %v656_v39 = vmul.f32 %v578_v33, %v578_v33  ;;  %614 = vst [vmem:[%s1185_s7 + $0x60] sm:$0xff] %v1189_v34  ;;  %v883_v40 = vpop.f32.mrb[2].mxu0  ;;  %v901_v41 = vpop.f32.mrb[2].mxu1 }
 0x100   : > { %v581_v42 = vmul.f32 %v883_v40, %v476_v12  ;;  %v1197_v43 = vmul.f32 %v901_v41, %v536_v24  ;;  %v325_v44 = vpop.f32.mrb[3].mxu0  ;;  %v385_v45 = vpop.f32.mrb[3].mxu1 }
 0x101   : > { %v680_v46 = vadd.f32 %v657_v37, %v656_v39  ;;  %v580_v47 = vmul.f32 %v471_v10, %v325_v44  ;;  %v1199_v48 = vmul.f32 %v531_v23, %v385_v45  ;;  %v571_v33 = vpop.permute.xlu0 %570 }
 0x102   : > { %605 = vst [vmem:[%s1185_s7 + $0x18] sm:$0xff] %v581_v42  ;;  %617 = vst [vmem:[%s1185_s7 + $0x78] sm:$0xff] %v1197_v43  ;;  %v659_v53 = vmul.f32 %v581_v42, %v581_v42 }
 0x103   : > { %604 = vst [vmem:[%s1185_s7 + $0x10] sm:$0xff] %v580_v47  ;;  %v627_v49 = vadd.f32 %v626_v38, %v580_v47  ;;  %v658_v50 = vmul.f32 %v580_v47, %v580_v47  ;;  %616 = vst [vmem:[%s1185_s7 + $0x70] sm:$0xff] %v1199_v48  ;;  %v886_v51 = vpop.f32.mrb[4].mxu0  ;;  %v904_v52 = vpop.f32.mrb[4].mxu1 }
 0x104   : > { %v583_v54 = vmul.f32 %v886_v51, %v486_v14  ;;  %v1207_v55 = vmul.f32 %v904_v52, %v546_v26  ;;  %v335_v56 = vpop.f32.mrb[5].mxu0  ;;  %v395_v57 = vpop.f32.mrb[5].mxu1 }
 0x105   : > { %v681_v58 = vadd.f32 %v680_v46, %v658_v50  ;;  %v582_v59 = vmul.f32 %v481_v13, %v335_v56  ;;  %v628_v60 = vadd.f32 %v627_v49, %v581_v42  ;;  %v1209_v61 = vmul.f32 %v541_v25, %v395_v57 }
 0x106   : > { %607 = vst [vmem:[%s1185_s7 + $0x28] sm:$0xff] %v583_v54  ;;  %619 = vst [vmem:[%s1185_s7 + $0x88] sm:$0xff] %v1207_v55  ;;  %v661_v5 = vmul.f32 %v583_v54, %v583_v54 }
 0x107   : > { %606 = vst [vmem:[%s1185_s7 + $0x20] sm:$0xff] %v582_v59  ;;  %v629_v0 = vadd.f32 %v628_v60, %v582_v59  ;;  %v660_v1 = vmul.f32 %v582_v59, %v582_v59  ;;  %v682_v2 = vadd.f32 %v681_v58, %v659_v53  ;;  %618 = vst [vmem:[%s1185_s7 + $0x80] sm:$0xff] %v1209_v61  ;;  %v889_v3 = vpop.f32.mrb[6].mxu0  ;;  %v907_v4 = vpop.f32.mrb[6].mxu1 }
 0x108   : > { %v585_v6 = vmul.f32 %v889_v3, %v1171_v16  ;;  %v1218_v7 = vmul.f32 %v907_v4, %v556_v36  ;;  %v345_v8 = vpop.f32.mrb[7].mxu0  ;;  %v405_v9 = vpop.f32.mrb[7].mxu1 }
 0x109   : > { %v683_v10 = vadd.f32 %v682_v2, %v660_v1  ;;  %v584_v11 = vmul.f32 %v1169_v15, %v345_v8  ;;  %v630_v12 = vadd.f32 %v629_v0, %v583_v54  ;;  %v1221_v13 = vmul.f32 %v551_v35, %v405_v9  ;;  %v576_v35 = vpop.permute.xlu1 %575 }
 0x10a   : > { %609 = vst [vmem:[%s1185_s7 + $0x38] sm:$0xff] %v585_v6  ;;  %621 = vst [vmem:[%s1185_s7 + $0x98] sm:$0xff] %v1218_v7  ;;  %v663_v24 = vmul.f32 %v585_v6, %v585_v6  ;;  %v671_v1 = vmul.f32 %v1197_v43, %v1197_v43 }
 0x10b   : > { %608 = vst [vmem:[%s1185_s7 + $0x30] sm:$0xff] %v584_v11  ;;  %v631_v14 = vadd.f32 %v630_v12, %v584_v11  ;;  %v662_v21 = vmul.f32 %v584_v11, %v584_v11  ;;  %v684_v22 = vadd.f32 %v683_v10, %v661_v5  ;;  %620 = vst [vmem:[%s1185_s7 + $0x90] sm:$0xff] %v1221_v13  ;;  %v892_v16 = vpop.f32.mrb[8].mxu0  ;;  %v910_v23 = vpop.f32.mrb[8].mxu1 }
 0x10c   : > { %v587_v15 = vmul.f32 %v892_v16, %v1175_v18  ;;  %v1230_v25 = vmul.f32 %v910_v23, %v566_v63  ;;  %v355_v26 = vpop.f32.mrb[9].mxu0  ;;  %v415_v27 = vpop.f32.mrb[9].mxu1 }
 0x10d   : > { %v685_v28 = vadd.f32 %v684_v22, %v662_v21  ;;  %v586_v29 = vmul.f32 %v1173_v17, %v355_v26  ;;  %v632_v31 = vadd.f32 %v631_v14, %v585_v6  ;;  %v598_v32 = vmul.f32 %v561_v62, %v415_v27 }
 0x10e   : > { %611 = vst [vmem:[%s1185_s7 + $0x48] sm:$0xff] %v587_v15  ;;  %623 = vst [vmem:[%s1185_s7 + $0xa8] sm:$0xff] %v1230_v25  ;;  %v665_v40 = vmul.f32 %v587_v15, %v587_v15  ;;  %v670_v62 = vmul.f32 %v1199_v48, %v1199_v48 }
 0x10f   : > { %610 = vst [vmem:[%s1185_s7 + $0x40] sm:$0xff] %v586_v29  ;;  %v633_v36 = vadd.f32 %v632_v31, %v586_v29  ;;  %v664_v18 = vmul.f32 %v586_v29, %v586_v29  ;;  %v686_v37 = vadd.f32 %v685_v28, %v663_v24  ;;  %622 = vst [vmem:[%s1185_s7 + $0xa0] sm:$0xff] %v598_v32  ;;  %v895_v38 = vpop.f32.mrb[10].mxu0  ;;  %v913_v39 = vpop.f32.mrb[10].mxu1 }
 0x110   : > { %v589_v17 = vmul.f32 %v895_v38, %v1179_v20  ;;  %v601_v41 = vmul.f32 %v913_v39, %v576_v35  ;;  %v365_v42 = vpop.f32.mrb[11].mxu0  ;;  %v425_v44 = vpop.f32.mrb[11].mxu1  ;;  %v668_v20 = vmul.f32 %v1189_v34, %v1189_v34  ;;  %v676_v14 = vmul.f32 %v598_v32, %v598_v32 }
 0x111   : > { %v687_v45 = vadd.f32 %v686_v37, %v664_v18  ;;  %v588_v46 = vmul.f32 %v1177_v19, %v365_v42  ;;  %v634_v47 = vadd.f32 %v633_v36, %v587_v15  ;;  %v600_v49 = vmul.f32 %v571_v33, %v425_v44 }
 0x112   : > { %613 = vst [vmem:[%s1185_s7 + $0x58] sm:$0xff] %v589_v17  ;;  %625 = vst [vmem:[%s1185_s7 + $0xb8] sm:$0xff] %v601_v41  ;;  %v667_v53 = vmul.f32 %v589_v17, %v589_v17  ;;  %v669_v19 = vmul.f32 %v1187_v30, %v1187_v30  ;;  %v679_v15 = vmul.f32 %v601_v41, %v601_v41 }
 0x113   : > { %612 = vst [vmem:[%s1185_s7 + $0x50] sm:$0xff] %v588_v46  ;;  %v635_v50 = vadd.f32 %v634_v47, %v588_v46  ;;  %v666_v51 = vmul.f32 %v588_v46, %v588_v46  ;;  %v688_v52 = vadd.f32 %v687_v45, %v665_v40  ;;  %624 = vst [vmem:[%s1185_s7 + $0xb0] sm:$0xff] %v600_v49 }
 0x114   : > { %v678_v24 = vmul.f32 %v600_v49, %v600_v49 }
 0x115   : > { %v636_v54 = vadd.f32 %v635_v50, %v589_v17  ;;  %v689_v56 = vadd.f32 %v688_v52, %v666_v51 }
 0x117   : > { %v637_v57 = vadd.f32 %v636_v54, %v1189_v34  ;;  %v690_v58 = vadd.f32 %v689_v56, %v667_v53  ;;  %v672_v34 = vmul.f32 %v1209_v61, %v1209_v61 }
 0x119   : > { %v638_v59 = vadd.f32 %v637_v57, %v1187_v30  ;;  %v691_v60 = vadd.f32 %v690_v58, %v668_v20  ;;  %v673_v30 = vmul.f32 %v1207_v55, %v1207_v55 }
 0x11b   : > { %v639_v63 = vadd.f32 %v638_v59, %v1199_v48  ;;  %v692_v0 = vadd.f32 %v691_v60, %v669_v19  ;;  %v674_v48 = vmul.f32 %v1221_v13, %v1221_v13 }
 0x11d   : > { %v640_v2 = vadd.f32 %v639_v63, %v1197_v43  ;;  %v693_v3 = vadd.f32 %v692_v0, %v670_v62  ;;  %v675_v43 = vmul.f32 %v1218_v7, %v1218_v7 }
 0x11f   : > { %v694_v4 = vadd.f32 %v693_v3, %v671_v1  ;;  %v641_v5 = vadd.f32 %v640_v2, %v1209_v61 }
 0x121   : > { %v642_v6 = vadd.f32 %v641_v5, %v1207_v55  ;;  %v695_v8 = vadd.f32 %v694_v4, %v672_v34  ;;  %v677_v55 = vmul.f32 %v1230_v25, %v1230_v25 }
 0x123   : > { %v643_v9 = vadd.f32 %v642_v6, %v1221_v13  ;;  %v696_v10 = vadd.f32 %v695_v8, %v673_v30 }
 0x125   : > { %v644_v11 = vadd.f32 %v643_v9, %v1218_v7  ;;  %v697_v12 = vadd.f32 %v696_v10, %v674_v48 }
 0x127   : > { %v645_v61 = vadd.f32 %v644_v11, %v598_v32  ;;  %v698_v21 = vadd.f32 %v697_v12, %v675_v43 }
 0x129   : > { %v646_v22 = vadd.f32 %v645_v61, %v1230_v25  ;;  %v699_v16 = vadd.f32 %v698_v21, %v676_v14 }
 0x12b   : > { %v647_v23 = vadd.f32 %v646_v22, %v600_v49  ;;  %v700_v13 = vadd.f32 %v699_v16, %v677_v55 }
 0x12d   : > { %v648_v26 = vadd.f32 %v647_v23, %v601_v41  ;;  %v701_v27 = vadd.f32 %v700_v13, %v678_v24 }
 0x12f   : > { %v649_v28 = vrot.slane %v648_v26, 4  ;;  %v702_v29 = vadd.f32 %v701_v27, %v679_v15 }
 0x131   : > { %v650_v7 = vadd.f32 %v649_v28, %v648_v26  ;;  %v703_v31 = vrot.slane %v702_v29, 4 }
 0x133   : > { %v651_v33 = vrot.slane %v650_v7, 2  ;;  %v704_v32 = vadd.f32 %v703_v31, %v702_v29 }
 0x135   : > { %v652_v35 = vadd.f32 %v651_v33, %v650_v7  ;;  %v705_v36 = vrot.slane %v704_v32, 2 }
 0x137   : > { %v653_v18 = vrot.slane %v652_v35, 1  ;;  %v706_v37 = vadd.f32 %v705_v36, %v704_v32 }
 0x139   : > { %v654_v25 = vadd.f32 %v653_v18, %v652_v35  ;;  %v707_v38 = vrot.slane %v706_v37, 1 }
 0x13b   : > { %655 = vst [vmem:[%s208_s11] sm:$0x1] %v654_v25  ;;  %v708_v39 = vadd.f32 %v707_v38, %v706_v37 }
 0x13d   : > { %709 = vst [vmem:[%s208_s11 + $0x1] sm:$0x1] %v708_v39 }
 0x13e PF: > { %s15_s15 = sadd.s32 1, %s981_s15  }
 0x13f   : > { %p12_p4 = scmp.ge.s32.totalorder %s15_s15, 4  }
 0x141   :  { %14 = sbr.rel (!%p12_p4) target bundleno = 1 (0x1), region = 74 }

// kernel: decoder_forward.13
= control target key start
LH: loop header
LB: loop body
LE: loop exit
PB: predicated region body
PF: predicated region fallthrough
CT: control target
= control target key end

     0   :  { %s975_s15 = smov 0   ;;  %s1351_s0 = inlined_call_operand.vmem [shape: f32[2,13,17,128], index: 0, kind: input, shape index: {}]   ;;  %s1352_s1 = inlined_call_operand.vmem [shape: f32[256,128], index: 1, kind: input, shape index: {}]   ;;  %s1353_s2 = inlined_call_operand.vmem [shape: f32[192,1], index: 2, kind: input, shape index: {}]   ;;  %s1354_s3 = inlined_call_operand.vmem [shape: f32[2,192,128], index: 3, kind: output, shape index: {0}]   ;;  %s1355_s4 = inlined_call_operand.vmem [shape: f32[2,2,128], index: 4, kind: output, shape index: {1}]  }
   0x1 LB: > { %s836_s16 = sadd.s32 4294967295, %s946_s15   ;;  %p840_p0 = scmp.ge.s32.totalorder %s946_s15, 1  ;;  %s946_s15 = sphi %s975_s15, %s15_s15  }
   0x2   : > { %p165_p1 = scmp.lt.s32.totalorder %s946_s15, 3 }
   0x4   : > { %p166_p2 = pnand %p840_p0, %p165_p1 }
   0x5   : > { %v257_v0 = vld [vmem:[%s1352_s1] sm:$0xff] (!%p166_p2)  ;;  %v258_v1 = vld [vmem:[%s1352_s1 + $0x8] sm:$0xff] (!%p166_p2)  ;;  %v259_v2 = vld [vmem:[%s1352_s1 + $0x10] sm:$0xff] (!%p166_p2)  ;;  %p195_p3 = scmp.lt.s32.totalorder (!%p166_p2), %s836_s16, 1  ;;  %v948_v3 = vmov (!%p166_p2), 0.0|0.0   ;;  %v949_v6 = vmov (!%p166_p2), 0  }
   0x6   : > { %169 = sbr.rel (%p166_p2) target bundleno = 370 (0x172), region = 32  ;;  %846 = vmatprep.subr.bf16.mxu0 (!%p166_p2), %v948_v3  ;;  %894 = vmatprep.subr.bf16.mxu1 (!%p166_p2), %v948_v3  ;;  %v847_v4 = vpack.c.bf16 (!%p166_p2), %v258_v1, %v257_v0  ;;  %v260_v5 = vld [vmem:[%s1352_s1 + $0x18] sm:$0xff] (!%p166_p2)  ;;  %v261_v8 = vld [vmem:[%s1352_s1 + $0x20] sm:$0xff] (!%p166_p2)  ;;  %v262_v9 = vld [vmem:[%s1352_s1 + $0x28] sm:$0xff] (!%p166_p2) }
   0x7   : > { %938 = vset.pattern.permute.xlu0 (!%p166_p2), %v949_v6  ;;  %939 = vset.pattern.permute.xlu1 (!%p166_p2), %v949_v6  ;;  %v850_v7 = vpack.c.bf16 (!%p166_p2), %v260_v5, %v259_v2  ;;  %v853_v10 = vpack.c.bf16 (!%p166_p2), %v262_v9, %v261_v8  ;;  %v263_v11 = vld [vmem:[%s1352_s1 + $0x30] sm:$0xff] (!%p166_p2)  ;;  %v264_v12 = vld [vmem:[%s1352_s1 + $0x38] sm:$0xff] (!%p166_p2)  ;;  %v265_v16 = vld [vmem:[%s1352_s1 + $0x40] sm:$0xff] (!%p166_p2) }
   0x8   : > { %848 = vmatpush1.bf16.msra.mxu0 (!%p166_p2), %v847_v4  ;;  %910 = vmatpush1.bf16.msra.mxu1 (!%p166_p2), %v847_v4  ;;  %v856_v14 = vpack.c.bf16 (!%p166_p2), %v264_v12, %v263_v11  ;;  %v266_v17 = vld [vmem:[%s1352_s1 + $0x48] sm:$0xff] (!%p166_p2)  ;;  %v267_v19 = vld [vmem:[%s1352_s1 + $0x50] sm:$0xff] (!%p166_p2)  ;;  %v268_v20 = vld [vmem:[%s1352_s1 + $0x58] sm:$0xff] (!%p166_p2) }
   0x9   : > { %849 = vmatprep.subr.bf16.mxu0 (!%p166_p2), %v948_v3  ;;  %895 = vmatprep.subr.bf16.mxu1 (!%p166_p2), %v948_v3  ;;  %v859_v18 = vpack.c.bf16 (!%p166_p2), %v266_v17, %v265_v16  ;;  %v862_v21 = vpack.c.bf16 (!%p166_p2), %v268_v20, %v267_v19  ;;  %v269_v22 = vld [vmem:[%s1352_s1 + $0x60] sm:$0xff] (!%p166_p2)  ;;  %v270_v23 = vld [vmem:[%s1352_s1 + $0x68] sm:$0xff] (!%p166_p2)  ;;  %v271_v25 = vld [vmem:[%s1352_s1 + $0x70] sm:$0xff] (!%p166_p2) }
   0xa   : > { %v865_v24 = vpack.c.bf16 (!%p166_p2), %v270_v23, %v269_v22  ;;  %v272_v26 = vld [vmem:[%s1352_s1 + $0x78] sm:$0xff] (!%p166_p2)  ;;  %v474_v27 = vld [vmem:[%s1353_s2] sm:$0xff] (!%p166_p2)  ;;  %v476_v29 = vld [vmem:[%s1353_s2 + $0x10] sm:$0xff] (!%p166_p2) }
   0xb   : > { %v868_v28 = vpack.c.bf16 (!%p166_p2), %v272_v26, %v271_v25  ;;  %v273_v30 = vld [vmem:[%s1352_s1 + $0x80] sm:$0xff] (!%p166_p2)  ;;  %v274_v31 = vld [vmem:[%s1352_s1 + $0x88] sm:$0xff] (!%p166_p2)  ;;  %500 = vperm.xlu0 (!%p166_p2), %938, %v474_v27   ;;  %510 = vperm.xlu1 (!%p166_p2), %939, %v476_v29   ;;  %v477_v33 = vld [vmem:[%s1353_s2 + $0x18] sm:$0xff] (!%p166_p2) }
   0xc   : > { %851 = vmatpush1.bf16.msra.mxu0 (!%p166_p2), %v850_v7  ;;  %911 = vmatpush1.bf16.msra.mxu1 (!%p166_p2), %v850_v7  ;;  %v475_v32 = vld [vmem:[%s1353_s2 + $0x8] sm:$0xff] (!%p166_p2)  ;;  %v871_v34 = vpack.c.bf16 (!%p166_p2), %v274_v31, %v273_v30  ;;  %v275_v35 = vld [vmem:[%s1352_s1 + $0x90] sm:$0xff] (!%p166_p2)  ;;  %v276_v36 = vld [vmem:[%s1352_s1 + $0x98] sm:$0xff] (!%p166_p2) }
   0xd   : > { %s1357_s16 = smov (!%p195_p3, %s836_s16), 1  ;;  %852 = vmatprep.subr.bf16.mxu0 %v948_v3  ;;  %896 = vmatprep.subr.bf16.mxu1 %v948_v3  ;;  %v478_v37 = vld [vmem:[%s1353_s2 + $0x20] sm:$0xff]  ;;  %v479_v38 = vld [vmem:[%s1353_s2 + $0x28] sm:$0xff]  ;;  %v874_v39 = vpack.c.bf16 %v276_v36, %v275_v35  ;;  %v480_v42 = vld [vmem:[%s1353_s2 + $0x30] sm:$0xff] }
   0xe   : > { %s926_s29 = smul.u32 312, %s1357_s16  ;;  %v277_v40 = vld [vmem:[%s1352_s1 + $0xa0] sm:$0xff]  ;;  %v278_v41 = vld [vmem:[%s1352_s1 + $0xa8] sm:$0xff]  ;;  %v481_v43 = vld [vmem:[%s1353_s2 + $0x38] sm:$0xff]  ;;  %s843_s20 = sshll.u32 %s1357_s16, 1 }
   0xf   : > { %505 = vperm.xlu0 %938, %v475_v32   ;;  %515 = vperm.xlu1 %939, %v477_v33   ;;  %v877_v44 = vpack.c.bf16 %v278_v41, %v277_v40  ;;  %v279_v45 = vld [vmem:[%s1352_s1 + $0xb0] sm:$0xff]  ;;  %v280_v46 = vld [vmem:[%s1352_s1 + $0xb8] sm:$0xff]  ;;  %v482_v47 = vld [vmem:[%s1353_s2 + $0x40] sm:$0xff]  ;;  %s208_s23 = scalar_lea.vmem %s1355_s4, %s843_s20 }
  0x10   : > { %s1011_s6 = scalar_lea.vmem %s1351_s0, %s926_s29  ;;  %854 = vmatpush1.bf16.msra.mxu0 %v853_v10  ;;  %912 = vmatpush1.bf16.msra.mxu1 %v853_v10  ;;  %v483_v48 = vld [vmem:[%s1353_s2 + $0x48] sm:$0xff]  ;;  %v880_v49 = vpack.c.bf16 %v280_v46, %v279_v45  ;;  %v281_v50 = vld [vmem:[%s1352_s1 + $0xc0] sm:$0xff]  ;;  %v484_v52 = vld [vmem:[%s1353_s2 + $0x50] sm:$0xff] }
  0x11   : > { %v233_v13 = vld [vmem:[%s1011_s6 + $0x1] sm:$0xff]  ;;  %v245_v15 = vld [vmem:[%s1011_s6 + $0x91] sm:$0xff]  ;;  %855 = vmatprep.subr.bf16.mxu0 %v948_v3  ;;  %897 = vmatprep.subr.bf16.mxu1 %v948_v3  ;;  %v234_v11 = vld [vmem:[%s1011_s6 + $0x9] sm:$0xff] }
  0x12   : > { %353 = vmatprep.mubr.f32.mxu0 %v233_v13  ;;  %413 = vmatprep.mubr.f32.mxu1 %v245_v15  ;;  %v282_v51 = vld [vmem:[%s1352_s1 + $0xc8] sm:$0xff]  ;;  %v485_v53 = vld [vmem:[%s1353_s2 + $0x58] sm:$0xff]  ;;  %v283_v55 = vld [vmem:[%s1352_s1 + $0xd0] sm:$0xff] }
  0x13   : > { %520 = vperm.xlu0 %938, %v478_v37   ;;  %525 = vperm.xlu1 %939, %v479_v38   ;;  %v883_v54 = vpack.c.bf16 %v282_v51, %v281_v50  ;;  %v284_v56 = vld [vmem:[%s1352_s1 + $0xd8] sm:$0xff]  ;;  %v486_v57 = vld [vmem:[%s1353_s2 + $0x60] sm:$0xff]  ;;  %v487_v58 = vld [vmem:[%s1353_s2 + $0x68] sm:$0xff] }
  0x14   : > { %857 = vmatpush1.bf16.msra.mxu0 %v856_v14  ;;  %913 = vmatpush1.bf16.msra.mxu1 %v856_v14  ;;  %v886_v59 = vpack.c.bf16 %v284_v56, %v283_v55  ;;  %v285_v60 = vld [vmem:[%s1352_s1 + $0xe0] sm:$0xff]  ;;  %v286_v61 = vld [vmem:[%s1352_s1 + $0xe8] sm:$0xff]  ;;  %v488_v62 = vld [vmem:[%s1353_s2 + $0x70] sm:$0xff] }
  0x15   : > { %858 = vmatprep.subr.bf16.mxu0 %v948_v3  ;;  %898 = vmatprep.subr.bf16.mxu1 %v948_v3  ;;  %v489_v63 = vld [vmem:[%s1353_s2 + $0x78] sm:$0xff]  ;;  %v889_v0 = vpack.c.bf16 %v286_v61, %v285_v60  ;;  %v287_v1 = vld [vmem:[%s1352_s1 + $0xf0] sm:$0xff]  ;;  %v490_v4 = vld [vmem:[%s1353_s2 + $0x80] sm:$0xff] }
  0x16   : > { %v288_v2 = vld [vmem:[%s1352_s1 + $0xf8] sm:$0xff]  ;;  %v491_v5 = vld [vmem:[%s1353_s2 + $0x88] sm:$0xff]  ;;  %v492_v7 = vld [vmem:[%s1353_s2 + $0x90] sm:$0xff] }
  0x17   : > { %530 = vperm.xlu0 %938, %v480_v42   ;;  %535 = vperm.xlu1 %939, %v481_v43   ;;  %v892_v6 = vpack.c.bf16 %v288_v2, %v287_v1  ;;  %v493_v8 = vld [vmem:[%s1353_s2 + $0x98] sm:$0xff]  ;;  %v209_v9 = vld [vmem:[%s1011_s6] sm:$0xff]  ;;  %v221_v10 = vld [vmem:[%s1011_s6 + $0x90] sm:$0xff] }
  0x18   : > { %860 = vmatpush1.bf16.msra.mxu0 %v859_v18  ;;  %914 = vmatpush1.bf16.msra.mxu1 %v859_v18  ;;  %v494_v12 = vld [vmem:[%s1353_s2 + $0xa0] sm:$0xff]  ;;  %v495_v13 = vld [vmem:[%s1353_s2 + $0xa8] sm:$0xff]  ;;  %v222_v15 = vld [vmem:[%s1011_s6 + $0x98] sm:$0xff] }
  0x19   : > { %861 = vmatprep.subr.bf16.mxu0 %v948_v3  ;;  %899 = vmatprep.subr.bf16.mxu1 %v948_v3  ;;  %v210_v14 = vld [vmem:[%s1011_s6 + $0x8] sm:$0xff]  ;;  %v235_v16 = vld [vmem:[%s1011_s6 + $0x19] sm:$0xff]  ;;  %v496_v18 = vld [vmem:[%s1353_s2 + $0xb0] sm:$0xff] }
  0x1a   : > { %v247_v17 = vld [vmem:[%s1011_s6 + $0xa9] sm:$0xff]  ;;  %v497_v19 = vld [vmem:[%s1353_s2 + $0xb8] sm:$0xff]  ;;  %v236_v22 = vld [vmem:[%s1011_s6 + $0x21] sm:$0xff] }
  0x1b   : > { %540 = vperm.xlu0 %938, %v482_v47   ;;  %545 = vperm.xlu1 %939, %v483_v48   ;;  %v211_v20 = vld [vmem:[%s1011_s6 + $0x18] sm:$0xff]  ;;  %v224_v25 = vld [vmem:[%s1011_s6 + $0xb0] sm:$0xff]  ;;  %v249_v27 = vld [vmem:[%s1011_s6 + $0xc1] sm:$0xff] }
  0x1c   : > { %863 = vmatpush1.bf16.msra.mxu0 %v862_v21  ;;  %915 = vmatpush1.bf16.msra.mxu1 %v862_v21  ;;  %v223_v21 = vld [vmem:[%s1011_s6 + $0xa8] sm:$0xff]  ;;  %v248_v23 = vld [vmem:[%s1011_s6 + $0xb1] sm:$0xff]  ;;  %v225_v29 = vld [vmem:[%s1011_s6 + $0xc0] sm:$0xff] }
  0x1d   : > { %864 = vmatprep.subr.bf16.mxu0 %v948_v3  ;;  %900 = vmatprep.subr.bf16.mxu1 %v948_v3  ;;  %v237_v26 = vld [vmem:[%s1011_s6 + $0x31] sm:$0xff]  ;;  %v238_v30 = vld [vmem:[%s1011_s6 + $0x39] sm:$0xff]  ;;  %v250_v31 = vld [vmem:[%s1011_s6 + $0xc9] sm:$0xff] }
  0x1e   : > { %v214_v32 = vld [vmem:[%s1011_s6 + $0x38] sm:$0xff]  ;;  %v226_v33 = vld [vmem:[%s1011_s6 + $0xc8] sm:$0xff]  ;;  %v216_v40 = vld [vmem:[%s1011_s6 + $0x50] sm:$0xff] }
  0x1f   : > { %550 = vperm.xlu0 %938, %v484_v52   ;;  %555 = vperm.xlu1 %939, %v485_v53   ;;  %v251_v35 = vld [vmem:[%s1011_s6 + $0xd9] sm:$0xff]  ;;  %v215_v36 = vld [vmem:[%s1011_s6 + $0x48] sm:$0xff]  ;;  %v240_v38 = vld [vmem:[%s1011_s6 + $0x51] sm:$0xff] }
  0x20   : > { %866 = vmatpush1.bf16.msra.mxu0 %v865_v24  ;;  %916 = vmatpush1.bf16.msra.mxu1 %v865_v24  ;;  %v212_v24 = vld [vmem:[%s1011_s6 + $0x20] sm:$0xff]  ;;  %v227_v37 = vld [vmem:[%s1011_s6 + $0xd8] sm:$0xff]  ;;  %v229_v45 = vld [vmem:[%s1011_s6 + $0xf0] sm:$0xff] }
  0x21   : > { %867 = vmatprep.subr.bf16.mxu0 %v948_v3  ;;  %901 = vmatprep.subr.bf16.mxu1 %v948_v3  ;;  %v228_v41 = vld [vmem:[%s1011_s6 + $0xe0] sm:$0xff]  ;;  %v253_v43 = vld [vmem:[%s1011_s6 + $0xf1] sm:$0xff]  ;;  %v242_v46 = vld [vmem:[%s1011_s6 + $0x69] sm:$0xff] }
  0x22   : > { %v241_v42 = vld [vmem:[%s1011_s6 + $0x61] sm:$0xff]  ;;  %v254_v47 = vld [vmem:[%s1011_s6 + $0xf9] sm:$0xff]  ;;  %v255_v51 = vld [vmem:[%s1011_s6 + $0x109] sm:$0xff] }
  0x23   : > { %560 = vperm.xlu0 %938, %v486_v57   ;;  %565 = vperm.xlu1 %939, %v487_v58   ;;  %v218_v48 = vld [vmem:[%s1011_s6 + $0x68] sm:$0xff]  ;;  %v243_v50 = vld [vmem:[%s1011_s6 + $0x79] sm:$0xff]  ;;  %v256_v55 = vld [vmem:[%s1011_s6 + $0x111] sm:$0xff] }
  0x24   : > { %869 = vmatpush1.bf16.msra.mxu0 %v868_v28  ;;  %917 = vmatpush1.bf16.msra.mxu1 %v868_v28  ;;  %v213_v28 = vld [vmem:[%s1011_s6 + $0x30] sm:$0xff]  ;;  %v219_v52 = vld [vmem:[%s1011_s6 + $0x78] sm:$0xff]  ;;  %v231_v53 = vld [vmem:[%s1011_s6 + $0x108] sm:$0xff] }
  0x25   : > { %870 = vmatprep.subr.bf16.mxu0 %v948_v3  ;;  %902 = vmatprep.subr.bf16.mxu1 %v948_v3  ;;  %v220_v56 = vld [vmem:[%s1011_s6 + $0x80] sm:$0xff]  ;;  %v232_v57 = vld [vmem:[%s1011_s6 + $0x110] sm:$0xff] }
  0x27   : > { %570 = vperm.xlu0 %938, %v488_v62   ;;  %575 = vperm.xlu1 %939, %v489_v63  }
  0x28   : > { %872 = vmatpush1.bf16.msra.mxu0 %v871_v34  ;;  %918 = vmatpush1.bf16.msra.mxu1 %v871_v34  ;;  %v239_v34 = vld [vmem:[%s1011_s6 + $0x49] sm:$0xff] }
  0x29   : > { %873 = vmatprep.subr.bf16.mxu0 %v948_v3  ;;  %903 = vmatprep.subr.bf16.mxu1 %v948_v3 }
  0x2b   : > { %580 = vperm.xlu0 %938, %v490_v4   ;;  %585 = vperm.xlu1 %939, %v491_v5  }
  0x2c   : > { %875 = vmatpush1.bf16.msra.mxu0 %v874_v39  ;;  %919 = vmatpush1.bf16.msra.mxu1 %v874_v39  ;;  %v252_v39 = vld [vmem:[%s1011_s6 + $0xe1] sm:$0xff] }
  0x2d   : > { %876 = vmatprep.subr.bf16.mxu0 %v948_v3  ;;  %904 = vmatprep.subr.bf16.mxu1 %v948_v3 }
  0x2f   : > { %590 = vperm.xlu0 %938, %v492_v7   ;;  %595 = vperm.xlu1 %939, %v493_v8  }
  0x30   : > { %878 = vmatpush1.bf16.msra.mxu0 %v877_v44  ;;  %920 = vmatpush1.bf16.msra.mxu1 %v877_v44  ;;  %v217_v44 = vld [vmem:[%s1011_s6 + $0x60] sm:$0xff] }
  0x31   : > { %879 = vmatprep.subr.bf16.mxu0 %v948_v3  ;;  %905 = vmatprep.subr.bf16.mxu1 %v948_v3 }
  0x33   : > { %600 = vperm.xlu0 %938, %v494_v12   ;;  %605 = vperm.xlu1 %939, %v495_v13  }
  0x34   : > { %881 = vmatpush1.bf16.msra.mxu0 %v880_v49  ;;  %921 = vmatpush1.bf16.msra.mxu1 %v880_v49  ;;  %v230_v49 = vld [vmem:[%s1011_s6 + $0xf8] sm:$0xff] }
  0x35   : > { %882 = vmatprep.subr.bf16.mxu0 %v948_v3  ;;  %906 = vmatprep.subr.bf16.mxu1 %v948_v3 }
  0x37   : > { %610 = vperm.xlu0 %938, %v496_v18   ;;  %615 = vperm.xlu1 %939, %v497_v19  }
  0x38   : > { %884 = vmatpush1.bf16.msra.mxu0 %v883_v54  ;;  %922 = vmatpush1.bf16.msra.mxu1 %v883_v54  ;;  %v244_v54 = vld [vmem:[%s1011_s6 + $0x81] sm:$0xff] }
  0x39   : > { %885 = vmatprep.subr.bf16.mxu0 %v948_v3  ;;  %907 = vmatprep.subr.bf16.mxu1 %v948_v3 }
  0x3c   : > { %887 = vmatpush1.bf16.msra.mxu0 %v886_v59  ;;  %923 = vmatpush1.bf16.msra.mxu1 %v886_v59 }
  0x3d   : > { %888 = vmatprep.subr.bf16.mxu0 %v948_v3  ;;  %908 = vmatprep.subr.bf16.mxu1 %v948_v3 }
  0x40   : > { %890 = vmatpush1.bf16.msra.mxu0 %v889_v0  ;;  %924 = vmatpush1.bf16.msra.mxu1 %v889_v0 }
  0x41   : > { %891 = vmatprep.subr.bf16.mxu0 %v948_v3  ;;  %909 = vmatprep.subr.bf16.mxu1 %v948_v3  ;;  %v246_v3 = vld [vmem:[%s1011_s6 + $0x99] sm:$0xff]  ;;  %s927_s6 = smul.u32 192, %s1357_s16 }
  0x43   : > { %s1257_s19 = scalar_lea.vmem %s1354_s3, %s927_s6 }
  0x44   : > { %893 = vmatpush1.bf16.msra.mxu0 %v892_v6  ;;  %925 = vmatpush1.bf16.msra.mxu1 %v892_v6 }
  0x47   : > { %354 = vmatmul.mubr.f32.vlgmr.msra.gmra.mrb[0].mxu0 %v209_v9  ;;  %414 = vmatmul.mubr.f32.vlgmr.msra.gmra.mrb[0].mxu1 %v221_v10 }
  0x48   : > { %358 = vmatprep.mubr.f32.mxu0 %v234_v11  ;;  %418 = vmatprep.mubr.f32.mxu1 %v246_v3 }
  0x4b   : > { %359 = vmatmul.mubr.f32.gmra.mrb[2].mxu0 %v210_v14  ;;  %419 = vmatmul.mubr.f32.gmra.mrb[2].mxu1 %v222_v15 }
  0x4c   : > { %363 = vmatprep.mubr.f32.mxu0 %v235_v16  ;;  %423 = vmatprep.mubr.f32.mxu1 %v247_v17 }
  0x4f   : > { %364 = vmatmul.mubr.f32.gmra.mrb[4].mxu0 %v211_v20  ;;  %424 = vmatmul.mubr.f32.gmra.mrb[4].mxu1 %v223_v21 }
  0x50   : > { %368 = vmatprep.mubr.f32.mxu0 %v236_v22  ;;  %428 = vmatprep.mubr.f32.mxu1 %v248_v23 }
  0x53   : > { %369 = vmatmul.mubr.f32.gmra.mrb[6].mxu0 %v212_v24  ;;  %429 = vmatmul.mubr.f32.gmra.mrb[6].mxu1 %v224_v25 }
  0x54   : > { %373 = vmatprep.mubr.f32.mxu0 %v237_v26  ;;  %433 = vmatprep.mubr.f32.mxu1 %v249_v27 }
  0x57   : > { %374 = vmatmul.mubr.f32.gmra.mrb[8].mxu0 %v213_v28  ;;  %434 = vmatmul.mubr.f32.gmra.mrb[8].mxu1 %v225_v29 }
  0x58   : > { %378 = vmatprep.mubr.f32.mxu0 %v238_v30  ;;  %438 = vmatprep.mubr.f32.mxu1 %v250_v31 }
  0x5b   : > { %379 = vmatmul.mubr.f32.gmra.mrb[10].mxu0 %v214_v32  ;;  %439 = vmatmul.mubr.f32.gmra.mrb[10].mxu1 %v226_v33 }
  0x5c   : > { %383 = vmatprep.mubr.f32.mxu0 %v239_v34  ;;  %443 = vmatprep.mubr.f32.mxu1 %v251_v35 }
  0x5f   : > { %384 = vmatmul.mubr.f32.gmra.mrb[12].mxu0 %v215_v36  ;;  %444 = vmatmul.mubr.f32.gmra.mrb[12].mxu1 %v227_v37 }
  0x60   : > { %388 = vmatprep.mubr.f32.mxu0 %v240_v38  ;;  %448 = vmatprep.mubr.f32.mxu1 %v252_v39 }
  0x63   : > { %389 = vmatmul.mubr.f32.gmra.mrb[14].mxu0 %v216_v40  ;;  %449 = vmatmul.mubr.f32.gmra.mrb[14].mxu1 %v228_v41 }
  0x64   : > { %393 = vmatprep.mubr.f32.mxu0 %v241_v42  ;;  %453 = vmatprep.mubr.f32.mxu1 %v253_v43 }
  0x67   : > { %394 = vmatmul.mubr.f32.gmra.mrb[16].mxu0 %v217_v44  ;;  %454 = vmatmul.mubr.f32.gmra.mrb[16].mxu1 %v229_v45 }
  0x68   : > { %398 = vmatprep.mubr.f32.mxu0 %v242_v46  ;;  %458 = vmatprep.mubr.f32.mxu1 %v254_v47 }
  0x6b   : > { %399 = vmatmul.mubr.f32.gmra.mrb[18].mxu0 %v218_v48  ;;  %459 = vmatmul.mubr.f32.gmra.mrb[18].mxu1 %v230_v49 }
  0x6c   : > { %403 = vmatprep.mubr.f32.mxu0 %v243_v50  ;;  %463 = vmatprep.mubr.f32.mxu1 %v255_v51 }
  0x6f   : > { %404 = vmatmul.mubr.f32.gmra.mrb[20].mxu0 %v219_v52  ;;  %464 = vmatmul.mubr.f32.gmra.mrb[20].mxu1 %v231_v53 }
  0x70   : > { %408 = vmatprep.mubr.f32.mxu0 %v244_v54  ;;  %468 = vmatprep.mubr.f32.mxu1 %v256_v55 }
  0x73   : > { %409 = vmatmul.mubr.f32.gmra.mrb[22].mxu0 %v220_v56  ;;  %469 = vmatmul.mubr.f32.gmra.mrb[22].mxu1 %v232_v57 }
  0x8a   : > { %v501_v58 = vpop.permute.xlu0 %500  ;;  %v511_v59 = vpop.permute.xlu1 %510 }
  0x8e   : > { %v506_v60 = vpop.permute.xlu0 %505  ;;  %v516_v61 = vpop.permute.xlu1 %515 }
  0x92   : > { %v521_v62 = vpop.permute.xlu0 %520  ;;  %v1239_v63 = vpop.permute.xlu1 %525 }
  0x96   : > { %v1241_v0 = vpop.permute.xlu0 %530  ;;  %v1243_v1 = vpop.permute.xlu1 %535 }
  0x9a   : > { %v1245_v2 = vpop.permute.xlu0 %540  ;;  %v1247_v4 = vpop.permute.xlu1 %545 }
  0x9e   : > { %v1249_v5 = vpop.permute.xlu0 %550  ;;  %v1252_v6 = vpop.permute.xlu1 %555 }
  0xa2   : > { %v561_v7 = vpop.permute.xlu0 %560  ;;  %v566_v13 = vpop.permute.xlu1 %565 }
  0xa6   : > { %v571_v21 = vpop.permute.xlu0 %570  ;;  %v576_v31 = vpop.permute.xlu1 %575 }
  0xaa   : > { %v581_v41 = vpop.permute.xlu0 %580  ;;  %v586_v51 = vpop.permute.xlu1 %585 }
 0x11a   : > { %v355_v8 = vpop.f32.mrb[0].mxu0  ;;  %v415_v9 = vpop.f32.mrb[0].mxu1 }
 0x11b   : > { %v618_v10 = vmul.f32 %v501_v58, %v355_v8  ;;  %v357_v11 = vpop.f32.mrb[1].mxu0  ;;  %v1259_v3 = vmul.f32 %v561_v7, %v415_v9  ;;  %v417_v12 = vpop.f32.mrb[1].mxu1 }
 0x11d   : > { %642 = vst [vmem:[%s1257_s19] sm:$0xff] %v618_v10  ;;  %654 = vst [vmem:[%s1257_s19 + $0x60] sm:$0xff] %v1259_v3  ;;  %v696_v20 = vmul.f32 %v618_v10, %v618_v10 }
 0x11e   : > { %v360_v14 = vpop.f32.mrb[2].mxu0  ;;  %v420_v15 = vpop.f32.mrb[2].mxu1 }
 0x11f   : > { %v619_v16 = vmul.f32 %v506_v60, %v360_v14  ;;  %v362_v17 = vpop.f32.mrb[3].mxu0  ;;  %v1264_v18 = vmul.f32 %v566_v13, %v420_v15  ;;  %v422_v19 = vpop.f32.mrb[3].mxu1 }
 0x120   : > { %v596_v14 = vpop.permute.xlu1 %595 }
 0x121   : > { %643 = vst [vmem:[%s1257_s19 + $0x8] sm:$0xff] %v619_v16  ;;  %v666_v22 = vadd.f32 %v619_v16, %v618_v10  ;;  %v697_v23 = vmul.f32 %v619_v16, %v619_v16  ;;  %655 = vst [vmem:[%s1257_s19 + $0x68] sm:$0xff] %v1264_v18 }
 0x122   : > { %v365_v24 = vpop.f32.mrb[4].mxu0  ;;  %v425_v25 = vpop.f32.mrb[4].mxu1 }
 0x123   : > { %v720_v26 = vadd.f32 %v697_v23, %v696_v20  ;;  %v620_v27 = vmul.f32 %v511_v59, %v365_v24  ;;  %v367_v28 = vpop.f32.mrb[5].mxu0  ;;  %v1269_v29 = vmul.f32 %v571_v21, %v425_v25  ;;  %v427_v30 = vpop.f32.mrb[5].mxu1 }
 0x125   : > { %644 = vst [vmem:[%s1257_s19 + $0x10] sm:$0xff] %v620_v27  ;;  %v667_v32 = vadd.f32 %v666_v22, %v620_v27  ;;  %v698_v33 = vmul.f32 %v620_v27, %v620_v27  ;;  %656 = vst [vmem:[%s1257_s19 + $0x70] sm:$0xff] %v1269_v29 }
 0x126   : > { %v370_v34 = vpop.f32.mrb[6].mxu0  ;;  %v430_v35 = vpop.f32.mrb[6].mxu1 }
 0x127   : > { %v721_v36 = vadd.f32 %v720_v26, %v698_v33  ;;  %v621_v37 = vmul.f32 %v516_v61, %v370_v34  ;;  %v372_v38 = vpop.f32.mrb[7].mxu0  ;;  %v1274_v39 = vmul.f32 %v576_v31, %v430_v35  ;;  %v432_v40 = vpop.f32.mrb[7].mxu1 }
 0x128   : > { %v591_v61 = vpop.permute.xlu0 %590  ;;  %v606_v34 = vpop.permute.xlu1 %605 }
 0x129   : > { %645 = vst [vmem:[%s1257_s19 + $0x18] sm:$0xff] %v621_v37  ;;  %v668_v42 = vadd.f32 %v667_v32, %v621_v37  ;;  %v699_v43 = vmul.f32 %v621_v37, %v621_v37  ;;  %657 = vst [vmem:[%s1257_s19 + $0x78] sm:$0xff] %v1274_v39 }
 0x12a   : > { %v375_v44 = vpop.f32.mrb[8].mxu0  ;;  %v435_v45 = vpop.f32.mrb[8].mxu1 }
 0x12b   : > { %v722_v46 = vadd.f32 %v721_v36, %v699_v43  ;;  %v622_v47 = vmul.f32 %v521_v62, %v375_v44  ;;  %v377_v48 = vpop.f32.mrb[9].mxu0  ;;  %v1279_v49 = vmul.f32 %v581_v41, %v435_v45  ;;  %v437_v50 = vpop.f32.mrb[9].mxu1 }
 0x12c   : > { %v601_v24 = vpop.permute.xlu0 %600 }
 0x12d   : > { %646 = vst [vmem:[%s1257_s19 + $0x20] sm:$0xff] %v622_v47  ;;  %v669_v52 = vadd.f32 %v668_v42, %v622_v47  ;;  %v700_v53 = vmul.f32 %v622_v47, %v622_v47  ;;  %658 = vst [vmem:[%s1257_s19 + $0x80] sm:$0xff] %v1279_v49 }
 0x12e   : > { %v380_v54 = vpop.f32.mrb[10].mxu0  ;;  %v440_v55 = vpop.f32.mrb[10].mxu1 }
 0x12f   : > { %v723_v56 = vadd.f32 %v722_v46, %v700_v53  ;;  %v623_v57 = vmul.f32 %v1239_v63, %v380_v54  ;;  %v382_v58 = vpop.f32.mrb[11].mxu0  ;;  %v1285_v59 = vmul.f32 %v586_v51, %v440_v55  ;;  %v442_v60 = vpop.f32.mrb[11].mxu1 }
 0x130   : > { %v611_v44 = vpop.permute.xlu0 %610 }
 0x131   : > { %647 = vst [vmem:[%s1257_s19 + $0x28] sm:$0xff] %v623_v57  ;;  %v670_v62 = vadd.f32 %v669_v52, %v623_v57  ;;  %v701_v7 = vmul.f32 %v623_v57, %v623_v57  ;;  %659 = vst [vmem:[%s1257_s19 + $0x88] sm:$0xff] %v1285_v59 }
 0x132   : > { %v385_v8 = vpop.f32.mrb[12].mxu0  ;;  %v445_v9 = vpop.f32.mrb[12].mxu1 }
 0x133   : > { %v724_v10 = vadd.f32 %v723_v56, %v701_v7  ;;  %v624_v11 = vmul.f32 %v1241_v0, %v385_v8  ;;  %v1291_v12 = vmul.f32 %v591_v61, %v445_v9  ;;  %v387_v63 = vpop.f32.mrb[13].mxu0  ;;  %v447_v13 = vpop.f32.mrb[13].mxu1 }
 0x134   : > { %v709_v13 = vmul.f32 %v1264_v18, %v1264_v18 }
 0x135   : > { %648 = vst [vmem:[%s1257_s19 + $0x30] sm:$0xff] %v624_v11  ;;  %v671_v15 = vadd.f32 %v670_v62, %v624_v11  ;;  %v702_v16 = vmul.f32 %v624_v11, %v624_v11  ;;  %660 = vst [vmem:[%s1257_s19 + $0x90] sm:$0xff] %v1291_v12 }
 0x136   : > { %v390_v17 = vpop.f32.mrb[14].mxu0  ;;  %v450_v19 = vpop.f32.mrb[14].mxu1 }
 0x137   : > { %v725_v20 = vadd.f32 %v724_v10, %v702_v16  ;;  %v625_v21 = vmul.f32 %v1243_v1, %v390_v17  ;;  %v1297_v22 = vmul.f32 %v596_v14, %v450_v19  ;;  %v392_v0 = vpop.f32.mrb[15].mxu0  ;;  %v452_v23 = vpop.f32.mrb[15].mxu1  ;;  %v708_v10 = vmul.f32 %v1259_v3, %v1259_v3 }
 0x138   : > { %v711_v19 = vmul.f32 %v1274_v39, %v1274_v39 }
 0x139   : > { %649 = vst [vmem:[%s1257_s19 + $0x38] sm:$0xff] %v625_v21  ;;  %v672_v25 = vadd.f32 %v671_v15, %v625_v21  ;;  %v703_v26 = vmul.f32 %v625_v21, %v625_v21  ;;  %661 = vst [vmem:[%s1257_s19 + $0x98] sm:$0xff] %v1297_v22 }
 0x13a   : > { %v395_v27 = vpop.f32.mrb[16].mxu0  ;;  %v455_v28 = vpop.f32.mrb[16].mxu1 }
 0x13b   : > { %v726_v30 = vadd.f32 %v725_v20, %v703_v26  ;;  %v626_v31 = vmul.f32 %v1245_v2, %v395_v27  ;;  %v1303_v32 = vmul.f32 %v601_v24, %v455_v28  ;;  %v397_v1 = vpop.f32.mrb[17].mxu0  ;;  %v457_v33 = vpop.f32.mrb[17].mxu1 }
 0x13d   : > { %650 = vst [vmem:[%s1257_s19 + $0x40] sm:$0xff] %v626_v31  ;;  %v673_v35 = vadd.f32 %v672_v25, %v626_v31  ;;  %v704_v36 = vmul.f32 %v626_v31, %v626_v31  ;;  %662 = vst [vmem:[%s1257_s19 + $0xa0] sm:$0xff] %v1303_v32 }
 0x13e   : > { %v400_v37 = vpop.f32.mrb[18].mxu0  ;;  %v460_v38 = vpop.f32.mrb[18].mxu1 }
 0x13f   : > { %v727_v40 = vadd.f32 %v726_v30, %v704_v36  ;;  %v627_v41 = vmul.f32 %v1247_v4, %v400_v37  ;;  %v639_v42 = vmul.f32 %v606_v34, %v460_v38  ;;  %v402_v2 = vpop.f32.mrb[19].mxu0  ;;  %v462_v43 = vpop.f32.mrb[19].mxu1 }
 0x140   : > { %v616_v4 = vpop.permute.xlu1 %615 }
 0x141   : > { %651 = vst [vmem:[%s1257_s19 + $0x48] sm:$0xff] %v627_v41  ;;  %v674_v45 = vadd.f32 %v673_v35, %v627_v41  ;;  %v705_v46 = vmul.f32 %v627_v41, %v627_v41  ;;  %663 = vst [vmem:[%s1257_s19 + $0xa8] sm:$0xff] %v639_v42 }
 0x142   : > { %v405_v47 = vpop.f32.mrb[20].mxu0  ;;  %v465_v48 = vpop.f32.mrb[20].mxu1 }
 0x143   : > { %v728_v50 = vadd.f32 %v727_v40, %v705_v46  ;;  %v628_v51 = vmul.f32 %v1249_v5, %v405_v47  ;;  %v640_v52 = vmul.f32 %v611_v44, %v465_v48  ;;  %v407_v53 = vpop.f32.mrb[21].mxu0  ;;  %v467_v54 = vpop.f32.mrb[21].mxu1 }
 0x145   : > { %652 = vst [vmem:[%s1257_s19 + $0x50] sm:$0xff] %v628_v51  ;;  %v675_v55 = vadd.f32 %v674_v45, %v628_v51  ;;  %v706_v56 = vmul.f32 %v628_v51, %v628_v51  ;;  %664 = vst [vmem:[%s1257_s19 + $0xb0] sm:$0xff] %v640_v52  ;;  %v718_v35 = vmul.f32 %v640_v52, %v640_v52 }
 0x146   : > { %v410_v57 = vpop.f32.mrb[22].mxu0  ;;  %v470_v58 = vpop.f32.mrb[22].mxu1 }
 0x147   : > { %v729_v60 = vadd.f32 %v728_v50, %v706_v56  ;;  %v629_v61 = vmul.f32 %v1252_v6, %v410_v57  ;;  %v641_v62 = vmul.f32 %v616_v4, %v470_v58  ;;  %v412_v7 = vpop.f32.mrb[23].mxu0  ;;  %v472_v8 = vpop.f32.mrb[23].mxu1  ;;  %v710_v6 = vmul.f32 %v1269_v29, %v1269_v29 }
 0x149   : > { %653 = vst [vmem:[%s1257_s19 + $0x58] sm:$0xff] %v629_v61  ;;  %v676_v5 = vadd.f32 %v675_v55, %v629_v61  ;;  %v707_v9 = vmul.f32 %v629_v61, %v629_v61  ;;  %665 = vst [vmem:[%s1257_s19 + $0xb8] sm:$0xff] %v641_v62  ;;  %v719_v38 = vmul.f32 %v641_v62, %v641_v62 }
 0x14b   : > { %v677_v11 = vadd.f32 %v676_v5, %v1259_v3  ;;  %v730_v63 = vadd.f32 %v729_v60, %v707_v9  ;;  %v712_v3 = vmul.f32 %v1279_v49, %v1279_v49 }
 0x14d   : > { %v678_v14 = vadd.f32 %v677_v11, %v1264_v18  ;;  %v731_v15 = vadd.f32 %v730_v63, %v708_v10  ;;  %v713_v18 = vmul.f32 %v1285_v59, %v1285_v59 }
 0x14f   : > { %v679_v16 = vadd.f32 %v678_v14, %v1269_v29  ;;  %v732_v17 = vadd.f32 %v731_v15, %v709_v13  ;;  %v714_v29 = vmul.f32 %v1291_v12, %v1291_v12 }
 0x151   : > { %v680_v20 = vadd.f32 %v679_v16, %v1274_v39  ;;  %v733_v21 = vadd.f32 %v732_v17, %v710_v6  ;;  %v715_v39 = vmul.f32 %v1297_v22, %v1297_v22 }
 0x153   : > { %v681_v0 = vadd.f32 %v680_v20, %v1279_v49  ;;  %v734_v23 = vadd.f32 %v733_v21, %v711_v19  ;;  %v716_v49 = vmul.f32 %v1303_v32, %v1303_v32 }
 0x155   : > { %v735_v24 = vadd.f32 %v734_v23, %v712_v3  ;;  %v682_v25 = vadd.f32 %v681_v0, %v1285_v59  ;;  %v717_v59 = vmul.f32 %v639_v42, %v639_v42 }
 0x157   : > { %v683_v26 = vadd.f32 %v682_v25, %v1291_v12  ;;  %v736_v27 = vadd.f32 %v735_v24, %v713_v18 }
 0x159   : > { %v684_v28 = vadd.f32 %v683_v26, %v1297_v22  ;;  %v737_v30 = vadd.f32 %v736_v27, %v714_v29 }
 0x15b   : > { %v685_v31 = vadd.f32 %v684_v28, %v1303_v32  ;;  %v738_v1 = vadd.f32 %v737_v30, %v715_v39 }
 0x15d   : > { %v686_v33 = vadd.f32 %v685_v31, %v639_v42  ;;  %v739_v34 = vadd.f32 %v738_v1, %v716_v49 }
 0x15f   : > { %v687_v36 = vadd.f32 %v686_v33, %v640_v52  ;;  %v740_v12 = vadd.f32 %v739_v34, %v717_v59 }
 0x161   : > { %v688_v37 = vadd.f32 %v687_v36, %v641_v62  ;;  %v741_v40 = vadd.f32 %v740_v12, %v718_v35 }
 0x163   : > { %v689_v41 = vrot.slane %v688_v37, 4  ;;  %v742_v2 = vadd.f32 %v741_v40, %v719_v38 }
 0x165   : > { %v690_v22 = vadd.f32 %v689_v41, %v688_v37  ;;  %v743_v43 = vrot.slane %v742_v2, 4 }
 0x167   : > { %v691_v44 = vrot.slane %v690_v22, 2  ;;  %v744_v45 = vadd.f32 %v743_v43, %v742_v2 }
 0x169   : > { %v692_v46 = vadd.f32 %v691_v44, %v690_v22  ;;  %v745_v32 = vrot.slane %v744_v45, 2 }
 0x16b   : > { %v693_v47 = vrot.slane %v692_v46, 1  ;;  %v746_v48 = vadd.f32 %v745_v32, %v744_v45 }
 0x16d   : > { %v694_v42 = vadd.f32 %v693_v47, %v692_v46  ;;  %v747_v50 = vrot.slane %v746_v48, 1 }
 0x16f   : > { %695 = vst [vmem:[%s208_s23] sm:$0x1] %v694_v42  ;;  %v748_v51 = vadd.f32 %v747_v50, %v746_v48 }
 0x171   : > { %749 = vst [vmem:[%s208_s23 + $0x1] sm:$0x1] %v748_v51 }
 0x172 PF: > { %s15_s15 = sadd.s32 1, %s946_s15  }
 0x173   : > { %p12_p4 = scmp.ge.s32.totalorder %s15_s15, 4  }
 0x175   :  { %14 = sbr.rel (!%p12_p4) target bundleno = 1 (0x1), region = 74 }

// kernel: decoder_forward.12
= control target key start
LH: loop header
LB: loop body
LE: loop exit
PB: predicated region body
PF: predicated region fallthrough
CT: control target
= control target key end

     0   :  { %s1000_s15 = smov 0   ;;  %s1362_s0 = inlined_call_operand.vmem [shape: f32[2,13,17,128], index: 0, kind: input, shape index: {}]   ;;  %s1363_s1 = inlined_call_operand.vmem [shape: f32[256,128], index: 1, kind: input, shape index: {}]   ;;  %s1364_s2 = inlined_call_operand.vmem [shape: f32[192,1], index: 2, kind: input, shape index: {}]   ;;  %s1365_s3 = inlined_call_operand.vmem [shape: f32[2,192,128], index: 3, kind: output, shape index: {0}]   ;;  %s1366_s4 = inlined_call_operand.vmem [shape: f32[2,2,128], index: 4, kind: output, shape index: {1}]  }
   0x1 LB: > { %s837_s16 = sadd.s32 4294967295, %s971_s15   ;;  %p841_p0 = scmp.ge.s32.totalorder %s971_s15, 1  ;;  %s971_s15 = sphi %s1000_s15, %s15_s15  }
   0x2   : > { %p165_p1 = scmp.lt.s32.totalorder %s971_s15, 3 }
   0x4   : > { %p166_p2 = pnand %p841_p0, %p165_p1 }
   0x5   : > { %v258_v0 = vld [vmem:[%s1363_s1] sm:$0xff] (!%p166_p2)  ;;  %v259_v1 = vld [vmem:[%s1363_s1 + $0x8] sm:$0xff] (!%p166_p2)  ;;  %v260_v2 = vld [vmem:[%s1363_s1 + $0x10] sm:$0xff] (!%p166_p2)  ;;  %p195_p3 = scmp.lt.s32.totalorder (!%p166_p2), %s837_s16, 1  ;;  %v973_v3 = vmov (!%p166_p2), 0.0|0.0   ;;  %v974_v6 = vmov (!%p166_p2), 0  }
   0x6   : > { %169 = sbr.rel (%p166_p2) target bundleno = 370 (0x172), region = 32  ;;  %871 = vmatprep.subr.bf16.mxu0 (!%p166_p2), %v973_v3  ;;  %919 = vmatprep.subr.bf16.mxu1 (!%p166_p2), %v973_v3  ;;  %v872_v4 = vpack.c.bf16 (!%p166_p2), %v259_v1, %v258_v0  ;;  %v261_v5 = vld [vmem:[%s1363_s1 + $0x18] sm:$0xff] (!%p166_p2)  ;;  %v262_v8 = vld [vmem:[%s1363_s1 + $0x20] sm:$0xff] (!%p166_p2)  ;;  %v263_v9 = vld [vmem:[%s1363_s1 + $0x28] sm:$0xff] (!%p166_p2) }
   0x7   : > { %963 = vset.pattern.permute.xlu0 (!%p166_p2), %v974_v6  ;;  %964 = vset.pattern.permute.xlu1 (!%p166_p2), %v974_v6  ;;  %v875_v7 = vpack.c.bf16 (!%p166_p2), %v261_v5, %v260_v2  ;;  %v878_v10 = vpack.c.bf16 (!%p166_p2), %v263_v9, %v262_v8  ;;  %v264_v11 = vld [vmem:[%s1363_s1 + $0x30] sm:$0xff] (!%p166_p2)  ;;  %v265_v12 = vld [vmem:[%s1363_s1 + $0x38] sm:$0xff] (!%p166_p2)  ;;  %v266_v16 = vld [vmem:[%s1363_s1 + $0x40] sm:$0xff] (!%p166_p2) }
   0x8   : > { %873 = vmatpush1.bf16.msra.mxu0 (!%p166_p2), %v872_v4  ;;  %935 = vmatpush1.bf16.msra.mxu1 (!%p166_p2), %v872_v4  ;;  %v881_v14 = vpack.c.bf16 (!%p166_p2), %v265_v12, %v264_v11  ;;  %v267_v17 = vld [vmem:[%s1363_s1 + $0x48] sm:$0xff] (!%p166_p2)  ;;  %v268_v19 = vld [vmem:[%s1363_s1 + $0x50] sm:$0xff] (!%p166_p2)  ;;  %v269_v20 = vld [vmem:[%s1363_s1 + $0x58] sm:$0xff] (!%p166_p2) }
   0x9   : > { %874 = vmatprep.subr.bf16.mxu0 (!%p166_p2), %v973_v3  ;;  %920 = vmatprep.subr.bf16.mxu1 (!%p166_p2), %v973_v3  ;;  %v884_v18 = vpack.c.bf16 (!%p166_p2), %v267_v17, %v266_v16  ;;  %v887_v21 = vpack.c.bf16 (!%p166_p2), %v269_v20, %v268_v19  ;;  %v475_v22 = vld [vmem:[%s1364_s2] sm:$0xff] (!%p166_p2)  ;;  %v477_v23 = vld [vmem:[%s1364_s2 + $0x10] sm:$0xff] (!%p166_p2)  ;;  %v271_v25 = vld [vmem:[%s1363_s1 + $0x68] sm:$0xff] (!%p166_p2) }
   0xa   : > { %v270_v24 = vld [vmem:[%s1363_s1 + $0x60] sm:$0xff] (!%p166_p2)  ;;  %501 = vperm.xlu0 (!%p166_p2), %963, %v475_v22   ;;  %511 = vperm.xlu1 (!%p166_p2), %964, %v477_v23   ;;  %v476_v26 = vld [vmem:[%s1364_s2 + $0x8] sm:$0xff] (!%p166_p2)  ;;  %v478_v27 = vld [vmem:[%s1364_s2 + $0x18] sm:$0xff] (!%p166_p2) }
   0xb   : > { %v890_v28 = vpack.c.bf16 (!%p166_p2), %v271_v25, %v270_v24  ;;  %v272_v29 = vld [vmem:[%s1363_s1 + $0x70] sm:$0xff] (!%p166_p2)  ;;  %v273_v30 = vld [vmem:[%s1363_s1 + $0x78] sm:$0xff] (!%p166_p2)  ;;  %v479_v31 = vld [vmem:[%s1364_s2 + $0x20] sm:$0xff] (!%p166_p2) }
   0xc   : > { %876 = vmatpush1.bf16.msra.mxu0 (!%p166_p2), %v875_v7  ;;  %936 = vmatpush1.bf16.msra.mxu1 (!%p166_p2), %v875_v7  ;;  %v480_v32 = vld [vmem:[%s1364_s2 + $0x28] sm:$0xff] (!%p166_p2)  ;;  %v893_v33 = vpack.c.bf16 (!%p166_p2), %v273_v30, %v272_v29  ;;  %v274_v34 = vld [vmem:[%s1363_s1 + $0x80] sm:$0xff] (!%p166_p2)  ;;  %v481_v36 = vld [vmem:[%s1364_s2 + $0x30] sm:$0xff] (!%p166_p2) }
   0xd   : > { %s1368_s16 = smov (!%p195_p3, %s837_s16), 1  ;;  %877 = vmatprep.subr.bf16.mxu0 %v973_v3  ;;  %921 = vmatprep.subr.bf16.mxu1 %v973_v3  ;;  %v275_v35 = vld [vmem:[%s1363_s1 + $0x88] sm:$0xff]  ;;  %v482_v37 = vld [vmem:[%s1364_s2 + $0x38] sm:$0xff]  ;;  %v276_v39 = vld [vmem:[%s1363_s1 + $0x90] sm:$0xff] }
   0xe   : > { %s951_s29 = smul.u32 312, %s1368_s16  ;;  %506 = vperm.xlu0 %963, %v476_v26   ;;  %516 = vperm.xlu1 %964, %v478_v27   ;;  %v896_v38 = vpack.c.bf16 %v275_v35, %v274_v34  ;;  %v277_v40 = vld [vmem:[%s1363_s1 + $0x98] sm:$0xff]  ;;  %v483_v41 = vld [vmem:[%s1364_s2 + $0x40] sm:$0xff]  ;;  %v484_v42 = vld [vmem:[%s1364_s2 + $0x48] sm:$0xff]  ;;  %s844_s20 = sshll.u32 %s1368_s16, 1 }
   0xf   : > { %v899_v43 = vpack.c.bf16 %v277_v40, %v276_v39  ;;  %v278_v44 = vld [vmem:[%s1363_s1 + $0xa0] sm:$0xff]  ;;  %v279_v45 = vld [vmem:[%s1363_s1 + $0xa8] sm:$0xff]  ;;  %v485_v46 = vld [vmem:[%s1364_s2 + $0x50] sm:$0xff]  ;;  %s208_s23 = scalar_lea.vmem %s1366_s4, %s844_s20 }
  0x10   : > { %s1036_s6 = scalar_lea.vmem %s1362_s0, %s951_s29  ;;  %879 = vmatpush1.bf16.msra.mxu0 %v878_v10  ;;  %937 = vmatpush1.bf16.msra.mxu1 %v878_v10  ;;  %v486_v47 = vld [vmem:[%s1364_s2 + $0x58] sm:$0xff]  ;;  %v902_v48 = vpack.c.bf16 %v279_v45, %v278_v44  ;;  %v280_v49 = vld [vmem:[%s1363_s1 + $0xb0] sm:$0xff]  ;;  %v487_v51 = vld [vmem:[%s1364_s2 + $0x60] sm:$0xff] }
  0x11   : > { %v1047_v13 = vld [vmem:[%s1036_s6 + $0x18] sm:$0xff]  ;;  %v1050_v15 = vld [vmem:[%s1036_s6 + $0xa8] sm:$0xff]  ;;  %880 = vmatprep.subr.bf16.mxu0 %v973_v3  ;;  %922 = vmatprep.subr.bf16.mxu1 %v973_v3  ;;  %v282_v54 = vld [vmem:[%s1363_s1 + $0xc0] sm:$0xff] }
  0x12   : > { %354 = vmatprep.mubr.f32.mxu0 %v1047_v13  ;;  %414 = vmatprep.mubr.f32.mxu1 %v1050_v15  ;;  %v281_v50 = vld [vmem:[%s1363_s1 + $0xb8] sm:$0xff]  ;;  %v488_v52 = vld [vmem:[%s1364_s2 + $0x68] sm:$0xff]  ;;  %v489_v56 = vld [vmem:[%s1364_s2 + $0x70] sm:$0xff] }
  0x13   : > { %521 = vperm.xlu0 %963, %v479_v31   ;;  %526 = vperm.xlu1 %964, %v480_v32   ;;  %v905_v53 = vpack.c.bf16 %v281_v50, %v280_v49  ;;  %v283_v55 = vld [vmem:[%s1363_s1 + $0xc8] sm:$0xff]  ;;  %v490_v57 = vld [vmem:[%s1364_s2 + $0x78] sm:$0xff]  ;;  %v284_v59 = vld [vmem:[%s1363_s1 + $0xd0] sm:$0xff] }
  0x14   : > { %882 = vmatpush1.bf16.msra.mxu0 %v881_v14  ;;  %938 = vmatpush1.bf16.msra.mxu1 %v881_v14  ;;  %v908_v58 = vpack.c.bf16 %v283_v55, %v282_v54  ;;  %v285_v60 = vld [vmem:[%s1363_s1 + $0xd8] sm:$0xff]  ;;  %v491_v61 = vld [vmem:[%s1364_s2 + $0x80] sm:$0xff]  ;;  %v492_v62 = vld [vmem:[%s1364_s2 + $0x88] sm:$0xff] }
  0x15   : > { %883 = vmatprep.subr.bf16.mxu0 %v973_v3  ;;  %923 = vmatprep.subr.bf16.mxu1 %v973_v3  ;;  %v911_v63 = vpack.c.bf16 %v285_v60, %v284_v59  ;;  %v286_v0 = vld [vmem:[%s1363_s1 + $0xe0] sm:$0xff]  ;;  %v287_v1 = vld [vmem:[%s1363_s1 + $0xe8] sm:$0xff]  ;;  %v493_v2 = vld [vmem:[%s1364_s2 + $0x90] sm:$0xff] }
  0x16   : > { %v494_v4 = vld [vmem:[%s1364_s2 + $0x98] sm:$0xff]  ;;  %v914_v5 = vpack.c.bf16 %v287_v1, %v286_v0  ;;  %v288_v6 = vld [vmem:[%s1363_s1 + $0xf0] sm:$0xff]  ;;  %v495_v8 = vld [vmem:[%s1364_s2 + $0xa0] sm:$0xff] }
  0x17   : > { %531 = vperm.xlu0 %963, %v481_v36   ;;  %536 = vperm.xlu1 %964, %v482_v37   ;;  %v289_v7 = vld [vmem:[%s1363_s1 + $0xf8] sm:$0xff]  ;;  %v496_v9 = vld [vmem:[%s1364_s2 + $0xa8] sm:$0xff]  ;;  %v497_v11 = vld [vmem:[%s1364_s2 + $0xb0] sm:$0xff] }
  0x18   : > { %885 = vmatpush1.bf16.msra.mxu0 %v884_v18  ;;  %939 = vmatpush1.bf16.msra.mxu1 %v884_v18  ;;  %v917_v10 = vpack.c.bf16 %v289_v7, %v288_v6  ;;  %v498_v12 = vld [vmem:[%s1364_s2 + $0xb8] sm:$0xff]  ;;  %v209_v14 = vld [vmem:[%s1036_s6] sm:$0xff]  ;;  %v221_v16 = vld [vmem:[%s1036_s6 + $0x90] sm:$0xff] }
  0x19   : > { %886 = vmatprep.subr.bf16.mxu0 %v973_v3  ;;  %924 = vmatprep.subr.bf16.mxu1 %v973_v3  ;;  %v846_v17 = vld [vmem:[%s1036_s6 + $0x20] sm:$0xff]  ;;  %v210_v18 = vld [vmem:[%s1036_s6 + $0x8] sm:$0xff]  ;;  %v222_v19 = vld [vmem:[%s1036_s6 + $0x98] sm:$0xff] }
  0x1a   : > { %v847_v20 = vld [vmem:[%s1036_s6 + $0x30] sm:$0xff]  ;;  %v848_v22 = vld [vmem:[%s1036_s6 + $0x38] sm:$0xff]  ;;  %v860_v23 = vld [vmem:[%s1036_s6 + $0xc8] sm:$0xff] }
  0x1b   : > { %541 = vperm.xlu0 %963, %v483_v41   ;;  %546 = vperm.xlu1 %964, %v484_v42   ;;  %v849_v24 = vld [vmem:[%s1036_s6 + $0x48] sm:$0xff]  ;;  %v861_v25 = vld [vmem:[%s1036_s6 + $0xd8] sm:$0xff]  ;;  %v850_v26 = vld [vmem:[%s1036_s6 + $0x50] sm:$0xff] }
  0x1c   : > { %888 = vmatpush1.bf16.msra.mxu0 %v887_v21  ;;  %940 = vmatpush1.bf16.msra.mxu1 %v887_v21  ;;  %v859_v21 = vld [vmem:[%s1036_s6 + $0xc0] sm:$0xff]  ;;  %v864_v29 = vld [vmem:[%s1036_s6 + $0xf8] sm:$0xff]  ;;  %v865_v31 = vld [vmem:[%s1036_s6 + $0x108] sm:$0xff] }
  0x1d   : > { %889 = vmatprep.subr.bf16.mxu0 %v973_v3  ;;  %925 = vmatprep.subr.bf16.mxu1 %v973_v3  ;;  %v862_v27 = vld [vmem:[%s1036_s6 + $0xe0] sm:$0xff]  ;;  %v853_v30 = vld [vmem:[%s1036_s6 + $0x78] sm:$0xff]  ;;  %v868_v35 = vld [vmem:[%s1036_s6 + $0x128] sm:$0xff] }
  0x1e   : > { %v854_v32 = vld [vmem:[%s1036_s6 + $0x80] sm:$0xff] }
  0x1f   : > { %551 = vperm.xlu0 %963, %v485_v46   ;;  %556 = vperm.xlu1 %964, %v486_v47   ;;  %v867_v34 = vld [vmem:[%s1036_s6 + $0x120] sm:$0xff] }
  0x20   : > { %891 = vmatpush1.bf16.msra.mxu0 %v890_v28  ;;  %941 = vmatpush1.bf16.msra.mxu1 %v890_v28  ;;  %v852_v28 = vld [vmem:[%s1036_s6 + $0x68] sm:$0xff] }
  0x21   : > { %892 = vmatprep.subr.bf16.mxu0 %v973_v3  ;;  %926 = vmatprep.subr.bf16.mxu1 %v973_v3 }
  0x23   : > { %561 = vperm.xlu0 %963, %v487_v51   ;;  %566 = vperm.xlu1 %964, %v488_v52  }
  0x24   : > { %894 = vmatpush1.bf16.msra.mxu0 %v893_v33  ;;  %942 = vmatpush1.bf16.msra.mxu1 %v893_v33  ;;  %v866_v33 = vld [vmem:[%s1036_s6 + $0x110] sm:$0xff] }
  0x25   : > { %895 = vmatprep.subr.bf16.mxu0 %v973_v3  ;;  %927 = vmatprep.subr.bf16.mxu1 %v973_v3 }
  0x27   : > { %571 = vperm.xlu0 %963, %v489_v56   ;;  %576 = vperm.xlu1 %964, %v490_v57  }
  0x28   : > { %897 = vmatpush1.bf16.msra.mxu0 %v896_v38  ;;  %943 = vmatpush1.bf16.msra.mxu1 %v896_v38 }
  0x29   : > { %898 = vmatprep.subr.bf16.mxu0 %v973_v3  ;;  %928 = vmatprep.subr.bf16.mxu1 %v973_v3 }
  0x2b   : > { %581 = vperm.xlu0 %963, %v491_v61   ;;  %586 = vperm.xlu1 %964, %v492_v62  }
  0x2c   : > { %900 = vmatpush1.bf16.msra.mxu0 %v899_v43  ;;  %944 = vmatpush1.bf16.msra.mxu1 %v899_v43 }
  0x2d   : > { %901 = vmatprep.subr.bf16.mxu0 %v973_v3  ;;  %929 = vmatprep.subr.bf16.mxu1 %v973_v3 }
  0x2f   : > { %591 = vperm.xlu0 %963, %v493_v2   ;;  %596 = vperm.xlu1 %964, %v494_v4  }
  0x30   : > { %903 = vmatpush1.bf16.msra.mxu0 %v902_v48  ;;  %945 = vmatpush1.bf16.msra.mxu1 %v902_v48 }
  0x31   : > { %904 = vmatprep.subr.bf16.mxu0 %v973_v3  ;;  %930 = vmatprep.subr.bf16.mxu1 %v973_v3 }
  0x33   : > { %601 = vperm.xlu0 %963, %v495_v8   ;;  %606 = vperm.xlu1 %964, %v496_v9  }
  0x34   : > { %906 = vmatpush1.bf16.msra.mxu0 %v905_v53  ;;  %946 = vmatpush1.bf16.msra.mxu1 %v905_v53 }
  0x35   : > { %907 = vmatprep.subr.bf16.mxu0 %v973_v3  ;;  %931 = vmatprep.subr.bf16.mxu1 %v973_v3 }
  0x37   : > { %611 = vperm.xlu0 %963, %v497_v11   ;;  %616 = vperm.xlu1 %964, %v498_v12  }
  0x38   : > { %909 = vmatpush1.bf16.msra.mxu0 %v908_v58  ;;  %947 = vmatpush1.bf16.msra.mxu1 %v908_v58 }
  0x39   : > { %910 = vmatprep.subr.bf16.mxu0 %v973_v3  ;;  %932 = vmatprep.subr.bf16.mxu1 %v973_v3 }
  0x3c   : > { %912 = vmatpush1.bf16.msra.mxu0 %v911_v63  ;;  %948 = vmatpush1.bf16.msra.mxu1 %v911_v63 }
  0x3d   : > { %913 = vmatprep.subr.bf16.mxu0 %v973_v3  ;;  %933 = vmatprep.subr.bf16.mxu1 %v973_v3 }
  0x40   : > { %915 = vmatpush1.bf16.msra.mxu0 %v914_v5  ;;  %949 = vmatpush1.bf16.msra.mxu1 %v914_v5 }
  0x41   : > { %916 = vmatprep.subr.bf16.mxu0 %v973_v3  ;;  %934 = vmatprep.subr.bf16.mxu1 %v973_v3  ;;  %v858_v3 = vld [vmem:[%s1036_s6 + $0xb0] sm:$0xff] }
  0x44   : > { %918 = vmatpush1.bf16.msra.mxu0 %v917_v10  ;;  %950 = vmatpush1.bf16.msra.mxu1 %v917_v10 }
  0x47   : > { %355 = vmatmul.mubr.f32.vlgmr.msra.gmra.mrb[0].mxu0 %v209_v14  ;;  %415 = vmatmul.mubr.f32.vlgmr.msra.gmra.mrb[0].mxu1 %v221_v16 }
  0x48   : > { %359 = vmatprep.mubr.f32.mxu0 %v846_v17  ;;  %419 = vmatprep.mubr.f32.mxu1 %v858_v3 }
  0x4b   : > { %360 = vmatmul.mubr.f32.gmra.mrb[2].mxu0 %v210_v18  ;;  %420 = vmatmul.mubr.f32.gmra.mrb[2].mxu1 %v222_v19 }
  0x4c   : > { %364 = vmatprep.mubr.f32.mxu0 %v847_v20  ;;  %424 = vmatprep.mubr.f32.mxu1 %v859_v21 }
  0x4f   : > { %365 = vmatmul.mubr.f32.gmra.mrb[4].mxu0 %v1047_v13  ;;  %425 = vmatmul.mubr.f32.gmra.mrb[4].mxu1 %v1050_v15  ;;  %v851_v13 = vld [vmem:[%s1036_s6 + $0x60] sm:$0xff]  ;;  %v863_v15 = vld [vmem:[%s1036_s6 + $0xf0] sm:$0xff]  ;;  %s952_s6 = smul.u32 192, %s1368_s16 }
  0x50   : > { %369 = vmatprep.mubr.f32.mxu0 %v848_v22  ;;  %429 = vmatprep.mubr.f32.mxu1 %v860_v23 }
  0x51   : > { %s1268_s19 = scalar_lea.vmem %s1365_s3, %s952_s6 }
  0x53   : > { %370 = vmatmul.mubr.f32.gmra.mrb[6].mxu0 %v846_v17  ;;  %430 = vmatmul.mubr.f32.gmra.mrb[6].mxu1 %v858_v3 }
  0x54   : > { %374 = vmatprep.mubr.f32.mxu0 %v849_v24  ;;  %434 = vmatprep.mubr.f32.mxu1 %v861_v25 }
  0x57   : > { %375 = vmatmul.mubr.f32.gmra.mrb[8].mxu0 %v847_v20  ;;  %435 = vmatmul.mubr.f32.gmra.mrb[8].mxu1 %v859_v21 }
  0x58   : > { %379 = vmatprep.mubr.f32.mxu0 %v850_v26  ;;  %439 = vmatprep.mubr.f32.mxu1 %v862_v27 }
  0x5b   : > { %380 = vmatmul.mubr.f32.gmra.mrb[10].mxu0 %v848_v22  ;;  %440 = vmatmul.mubr.f32.gmra.mrb[10].mxu1 %v860_v23 }
  0x5c   : > { %384 = vmatprep.mubr.f32.mxu0 %v851_v13  ;;  %444 = vmatprep.mubr.f32.mxu1 %v863_v15 }
  0x5f   : > { %385 = vmatmul.mubr.f32.gmra.mrb[12].mxu0 %v849_v24  ;;  %445 = vmatmul.mubr.f32.gmra.mrb[12].mxu1 %v861_v25 }
  0x60   : > { %389 = vmatprep.mubr.f32.mxu0 %v852_v28  ;;  %449 = vmatprep.mubr.f32.mxu1 %v864_v29 }
  0x63   : > { %390 = vmatmul.mubr.f32.gmra.mrb[14].mxu0 %v850_v26  ;;  %450 = vmatmul.mubr.f32.gmra.mrb[14].mxu1 %v862_v27 }
  0x64   : > { %394 = vmatprep.mubr.f32.mxu0 %v853_v30  ;;  %454 = vmatprep.mubr.f32.mxu1 %v865_v31 }
  0x67   : > { %395 = vmatmul.mubr.f32.gmra.mrb[16].mxu0 %v851_v13  ;;  %455 = vmatmul.mubr.f32.gmra.mrb[16].mxu1 %v863_v15 }
  0x68   : > { %399 = vmatprep.mubr.f32.mxu0 %v854_v32  ;;  %459 = vmatprep.mubr.f32.mxu1 %v866_v33 }
  0x6b   : > { %400 = vmatmul.mubr.f32.gmra.mrb[18].mxu0 %v852_v28  ;;  %460 = vmatmul.mubr.f32.gmra.mrb[18].mxu1 %v864_v29 }
  0x6c   : > { %404 = vmatprep.mubr.f32.mxu0 %v221_v16  ;;  %464 = vmatprep.mubr.f32.mxu1 %v867_v34 }
  0x6f   : > { %405 = vmatmul.mubr.f32.gmra.mrb[20].mxu0 %v853_v30  ;;  %465 = vmatmul.mubr.f32.gmra.mrb[20].mxu1 %v865_v31 }
  0x70   : > { %409 = vmatprep.mubr.f32.mxu0 %v222_v19  ;;  %469 = vmatprep.mubr.f32.mxu1 %v868_v35 }
  0x73   : > { %410 = vmatmul.mubr.f32.gmra.mrb[22].mxu0 %v854_v32  ;;  %470 = vmatmul.mubr.f32.gmra.mrb[22].mxu1 %v866_v33 }
  0x89   : > { %v502_v36 = vpop.permute.xlu0 %501  ;;  %v512_v37 = vpop.permute.xlu1 %511 }
  0x8d   : > { %v507_v38 = vpop.permute.xlu0 %506  ;;  %v517_v39 = vpop.permute.xlu1 %516 }
  0x92   : > { %v522_v40 = vpop.permute.xlu0 %521  ;;  %v1250_v41 = vpop.permute.xlu1 %526 }
  0x96   : > { %v1252_v42 = vpop.permute.xlu0 %531  ;;  %v1254_v43 = vpop.permute.xlu1 %536 }
  0x9a   : > { %v1256_v44 = vpop.permute.xlu0 %541  ;;  %v1258_v45 = vpop.permute.xlu1 %546 }
  0x9e   : > { %v1260_v46 = vpop.permute.xlu0 %551  ;;  %v1263_v47 = vpop.permute.xlu1 %556 }
  0xa2   : > { %v562_v48 = vpop.permute.xlu0 %561  ;;  %v567_v55 = vpop.permute.xlu1 %566 }
  0xa6   : > { %v572_v63 = vpop.permute.xlu0 %571  ;;  %v577_v10 = vpop.permute.xlu1 %576 }
  0xaa   : > { %v582_v21 = vpop.permute.xlu0 %581  ;;  %v587_v29 = vpop.permute.xlu1 %586 }
 0x11a   : > { %v356_v49 = vpop.f32.mrb[0].mxu0  ;;  %v416_v50 = vpop.f32.mrb[0].mxu1 }
 0x11b   : > { %v619_v51 = vmul.f32 %v502_v36, %v356_v49  ;;  %v358_v52 = vpop.f32.mrb[1].mxu0  ;;  %v1270_v53 = vmul.f32 %v562_v48, %v416_v50  ;;  %v418_v54 = vpop.f32.mrb[1].mxu1 }
 0x11d   : > { %643 = vst [vmem:[%s1268_s19] sm:$0xff] %v619_v51  ;;  %655 = vst [vmem:[%s1268_s19 + $0x60] sm:$0xff] %v1270_v53  ;;  %v697_v62 = vmul.f32 %v619_v51, %v619_v51 }
 0x11e   : > { %v361_v56 = vpop.f32.mrb[2].mxu0  ;;  %v421_v57 = vpop.f32.mrb[2].mxu1 }
 0x11f   : > { %v620_v58 = vmul.f32 %v507_v38, %v361_v56  ;;  %v363_v59 = vpop.f32.mrb[3].mxu0  ;;  %v1275_v60 = vmul.f32 %v567_v55, %v421_v57  ;;  %v423_v61 = vpop.f32.mrb[3].mxu1 }
 0x120   : > { %v597_v56 = vpop.permute.xlu1 %596 }
 0x121   : > { %644 = vst [vmem:[%s1268_s19 + $0x8] sm:$0xff] %v620_v58  ;;  %v667_v0 = vadd.f32 %v620_v58, %v619_v51  ;;  %v698_v1 = vmul.f32 %v620_v58, %v620_v58  ;;  %656 = vst [vmem:[%s1268_s19 + $0x68] sm:$0xff] %v1275_v60 }
 0x122   : > { %v366_v2 = vpop.f32.mrb[4].mxu0  ;;  %v426_v4 = vpop.f32.mrb[4].mxu1 }
 0x123   : > { %v721_v5 = vadd.f32 %v698_v1, %v697_v62  ;;  %v621_v6 = vmul.f32 %v512_v37, %v366_v2  ;;  %v368_v7 = vpop.f32.mrb[5].mxu0  ;;  %v1280_v8 = vmul.f32 %v572_v63, %v426_v4  ;;  %v428_v9 = vpop.f32.mrb[5].mxu1 }
 0x125   : > { %645 = vst [vmem:[%s1268_s19 + $0x10] sm:$0xff] %v621_v6  ;;  %v668_v11 = vadd.f32 %v667_v0, %v621_v6  ;;  %v699_v12 = vmul.f32 %v621_v6, %v621_v6  ;;  %657 = vst [vmem:[%s1268_s19 + $0x70] sm:$0xff] %v1280_v8 }
 0x126   : > { %v371_v14 = vpop.f32.mrb[6].mxu0  ;;  %v431_v16 = vpop.f32.mrb[6].mxu1 }
 0x127   : > { %v722_v17 = vadd.f32 %v721_v5, %v699_v12  ;;  %v622_v3 = vmul.f32 %v517_v39, %v371_v14  ;;  %v373_v18 = vpop.f32.mrb[7].mxu0  ;;  %v1285_v19 = vmul.f32 %v577_v10, %v431_v16  ;;  %v433_v20 = vpop.f32.mrb[7].mxu1 }
 0x128   : > { %v592_v39 = vpop.permute.xlu0 %591  ;;  %v607_v14 = vpop.permute.xlu1 %606 }
 0x129   : > { %646 = vst [vmem:[%s1268_s19 + $0x18] sm:$0xff] %v622_v3  ;;  %v669_v22 = vadd.f32 %v668_v11, %v622_v3  ;;  %v700_v23 = vmul.f32 %v622_v3, %v622_v3  ;;  %658 = vst [vmem:[%s1268_s19 + $0x78] sm:$0xff] %v1285_v19 }
 0x12a   : > { %v376_v24 = vpop.f32.mrb[8].mxu0  ;;  %v436_v25 = vpop.f32.mrb[8].mxu1 }
 0x12b   : > { %v723_v26 = vadd.f32 %v722_v17, %v700_v23  ;;  %v623_v27 = vmul.f32 %v522_v40, %v376_v24  ;;  %v378_v13 = vpop.f32.mrb[9].mxu0  ;;  %v1290_v15 = vmul.f32 %v582_v21, %v436_v25  ;;  %v438_v28 = vpop.f32.mrb[9].mxu1 }
 0x12c   : > { %v602_v2 = vpop.permute.xlu0 %601 }
 0x12d   : > { %647 = vst [vmem:[%s1268_s19 + $0x20] sm:$0xff] %v623_v27  ;;  %v670_v30 = vadd.f32 %v669_v22, %v623_v27  ;;  %v701_v31 = vmul.f32 %v623_v27, %v623_v27  ;;  %659 = vst [vmem:[%s1268_s19 + $0x80] sm:$0xff] %v1290_v15 }
 0x12e   : > { %v381_v32 = vpop.f32.mrb[10].mxu0  ;;  %v441_v33 = vpop.f32.mrb[10].mxu1 }
 0x12f   : > { %v724_v34 = vadd.f32 %v723_v26, %v701_v31  ;;  %v624_v35 = vmul.f32 %v1250_v41, %v381_v32  ;;  %v383_v36 = vpop.f32.mrb[11].mxu0  ;;  %v1296_v37 = vmul.f32 %v587_v29, %v441_v33  ;;  %v443_v38 = vpop.f32.mrb[11].mxu1 }
 0x130   : > { %v612_v24 = vpop.permute.xlu0 %611 }
 0x131   : > { %648 = vst [vmem:[%s1268_s19 + $0x28] sm:$0xff] %v624_v35  ;;  %v671_v40 = vadd.f32 %v670_v30, %v624_v35  ;;  %v702_v48 = vmul.f32 %v624_v35, %v624_v35  ;;  %660 = vst [vmem:[%s1268_s19 + $0x88] sm:$0xff] %v1296_v37 }
 0x132   : > { %v386_v49 = vpop.f32.mrb[12].mxu0  ;;  %v446_v50 = vpop.f32.mrb[12].mxu1 }
 0x133   : > { %v725_v51 = vadd.f32 %v724_v34, %v702_v48  ;;  %v625_v52 = vmul.f32 %v1252_v42, %v386_v49  ;;  %v1302_v54 = vmul.f32 %v592_v39, %v446_v50  ;;  %v388_v41 = vpop.f32.mrb[13].mxu0  ;;  %v448_v55 = vpop.f32.mrb[13].mxu1 }
 0x134   : > { %v710_v55 = vmul.f32 %v1275_v60, %v1275_v60 }
 0x135   : > { %649 = vst [vmem:[%s1268_s19 + $0x30] sm:$0xff] %v625_v52  ;;  %v672_v57 = vadd.f32 %v671_v40, %v625_v52  ;;  %v703_v58 = vmul.f32 %v625_v52, %v625_v52  ;;  %661 = vst [vmem:[%s1268_s19 + $0x90] sm:$0xff] %v1302_v54 }
 0x136   : > { %v391_v59 = vpop.f32.mrb[14].mxu0  ;;  %v451_v61 = vpop.f32.mrb[14].mxu1 }
 0x137   : > { %v726_v62 = vadd.f32 %v725_v51, %v703_v58  ;;  %v626_v63 = vmul.f32 %v1254_v43, %v391_v59  ;;  %v1308_v0 = vmul.f32 %v597_v56, %v451_v61  ;;  %v393_v42 = vpop.f32.mrb[15].mxu0  ;;  %v453_v1 = vpop.f32.mrb[15].mxu1  ;;  %v709_v51 = vmul.f32 %v1270_v53, %v1270_v53 }
 0x138   : > { %v712_v61 = vmul.f32 %v1285_v19, %v1285_v19 }
 0x139   : > { %650 = vst [vmem:[%s1268_s19 + $0x38] sm:$0xff] %v626_v63  ;;  %v673_v4 = vadd.f32 %v672_v57, %v626_v63  ;;  %v704_v5 = vmul.f32 %v626_v63, %v626_v63  ;;  %662 = vst [vmem:[%s1268_s19 + $0x98] sm:$0xff] %v1308_v0 }
 0x13a   : > { %v396_v6 = vpop.f32.mrb[16].mxu0  ;;  %v456_v7 = vpop.f32.mrb[16].mxu1 }
 0x13b   : > { %v727_v9 = vadd.f32 %v726_v62, %v704_v5  ;;  %v627_v10 = vmul.f32 %v1256_v44, %v396_v6  ;;  %v1314_v11 = vmul.f32 %v602_v2, %v456_v7  ;;  %v398_v43 = vpop.f32.mrb[17].mxu0  ;;  %v458_v12 = vpop.f32.mrb[17].mxu1 }
 0x13d   : > { %651 = vst [vmem:[%s1268_s19 + $0x40] sm:$0xff] %v627_v10  ;;  %v674_v16 = vadd.f32 %v673_v4, %v627_v10  ;;  %v705_v17 = vmul.f32 %v627_v10, %v627_v10  ;;  %663 = vst [vmem:[%s1268_s19 + $0xa0] sm:$0xff] %v1314_v11 }
 0x13e   : > { %v401_v3 = vpop.f32.mrb[18].mxu0  ;;  %v461_v18 = vpop.f32.mrb[18].mxu1 }
 0x13f   : > { %v728_v20 = vadd.f32 %v727_v9, %v705_v17  ;;  %v628_v21 = vmul.f32 %v1258_v45, %v401_v3  ;;  %v640_v22 = vmul.f32 %v607_v14, %v461_v18  ;;  %v403_v44 = vpop.f32.mrb[19].mxu0  ;;  %v463_v23 = vpop.f32.mrb[19].mxu1 }
 0x140   : > { %v617_v45 = vpop.permute.xlu1 %616 }
 0x141   : > { %652 = vst [vmem:[%s1268_s19 + $0x48] sm:$0xff] %v628_v21  ;;  %v675_v25 = vadd.f32 %v674_v16, %v628_v21  ;;  %v706_v26 = vmul.f32 %v628_v21, %v628_v21  ;;  %664 = vst [vmem:[%s1268_s19 + $0xa8] sm:$0xff] %v640_v22 }
 0x142   : > { %v406_v27 = vpop.f32.mrb[20].mxu0  ;;  %v466_v13 = vpop.f32.mrb[20].mxu1 }
 0x143   : > { %v729_v28 = vadd.f32 %v728_v20, %v706_v26  ;;  %v629_v29 = vmul.f32 %v1260_v46, %v406_v27  ;;  %v641_v30 = vmul.f32 %v612_v24, %v466_v13  ;;  %v408_v31 = vpop.f32.mrb[21].mxu0  ;;  %v468_v32 = vpop.f32.mrb[21].mxu1 }
 0x145   : > { %653 = vst [vmem:[%s1268_s19 + $0x50] sm:$0xff] %v629_v29  ;;  %v676_v33 = vadd.f32 %v675_v25, %v629_v29  ;;  %v707_v34 = vmul.f32 %v629_v29, %v629_v29  ;;  %665 = vst [vmem:[%s1268_s19 + $0xb0] sm:$0xff] %v641_v30  ;;  %v719_v16 = vmul.f32 %v641_v30, %v641_v30 }
 0x146   : > { %v411_v35 = vpop.f32.mrb[22].mxu0  ;;  %v471_v36 = vpop.f32.mrb[22].mxu1 }
 0x147   : > { %v730_v38 = vadd.f32 %v729_v28, %v707_v34  ;;  %v630_v39 = vmul.f32 %v1263_v47, %v411_v35  ;;  %v642_v40 = vmul.f32 %v617_v45, %v471_v36  ;;  %v413_v48 = vpop.f32.mrb[23].mxu0  ;;  %v473_v49 = vpop.f32.mrb[23].mxu1  ;;  %v711_v47 = vmul.f32 %v1280_v8, %v1280_v8 }
 0x149   : > { %654 = vst [vmem:[%s1268_s19 + $0x58] sm:$0xff] %v630_v39  ;;  %v677_v46 = vadd.f32 %v676_v33, %v630_v39  ;;  %v708_v50 = vmul.f32 %v630_v39, %v630_v39  ;;  %666 = vst [vmem:[%s1268_s19 + $0xb8] sm:$0xff] %v642_v40  ;;  %v720_v18 = vmul.f32 %v642_v40, %v642_v40 }
 0x14b   : > { %v678_v52 = vadd.f32 %v677_v46, %v1270_v53  ;;  %v731_v41 = vadd.f32 %v730_v38, %v708_v50  ;;  %v713_v53 = vmul.f32 %v1290_v15, %v1290_v15 }
 0x14d   : > { %v679_v56 = vadd.f32 %v678_v52, %v1275_v60  ;;  %v732_v57 = vadd.f32 %v731_v41, %v709_v51  ;;  %v714_v60 = vmul.f32 %v1296_v37, %v1296_v37 }
 0x14f   : > { %v680_v58 = vadd.f32 %v679_v56, %v1280_v8  ;;  %v733_v59 = vadd.f32 %v732_v57, %v710_v55  ;;  %v715_v8 = vmul.f32 %v1302_v54, %v1302_v54 }
 0x151   : > { %v681_v62 = vadd.f32 %v680_v58, %v1285_v19  ;;  %v734_v63 = vadd.f32 %v733_v59, %v711_v47  ;;  %v716_v19 = vmul.f32 %v1308_v0, %v1308_v0 }
 0x153   : > { %v682_v42 = vadd.f32 %v681_v62, %v1290_v15  ;;  %v735_v1 = vadd.f32 %v734_v63, %v712_v61  ;;  %v717_v15 = vmul.f32 %v1314_v11, %v1314_v11 }
 0x155   : > { %v736_v2 = vadd.f32 %v735_v1, %v713_v53  ;;  %v683_v4 = vadd.f32 %v682_v42, %v1296_v37  ;;  %v718_v37 = vmul.f32 %v640_v22, %v640_v22 }
 0x157   : > { %v684_v5 = vadd.f32 %v683_v4, %v1302_v54  ;;  %v737_v6 = vadd.f32 %v736_v2, %v714_v60 }
 0x159   : > { %v685_v7 = vadd.f32 %v684_v5, %v1308_v0  ;;  %v738_v9 = vadd.f32 %v737_v6, %v715_v8 }
 0x15b   : > { %v686_v10 = vadd.f32 %v685_v7, %v1314_v11  ;;  %v739_v43 = vadd.f32 %v738_v9, %v716_v19 }
 0x15d   : > { %v687_v12 = vadd.f32 %v686_v10, %v640_v22  ;;  %v740_v14 = vadd.f32 %v739_v43, %v717_v15 }
 0x15f   : > { %v688_v17 = vadd.f32 %v687_v12, %v641_v30  ;;  %v741_v54 = vadd.f32 %v740_v14, %v718_v37 }
 0x161   : > { %v689_v3 = vadd.f32 %v688_v17, %v642_v40  ;;  %v742_v20 = vadd.f32 %v741_v54, %v719_v16 }
 0x163   : > { %v690_v21 = vrot.slane %v689_v3, 4  ;;  %v743_v44 = vadd.f32 %v742_v20, %v720_v18 }
 0x165   : > { %v691_v0 = vadd.f32 %v690_v21, %v689_v3  ;;  %v744_v23 = vrot.slane %v743_v44, 4 }
 0x167   : > { %v692_v24 = vrot.slane %v691_v0, 2  ;;  %v745_v25 = vadd.f32 %v744_v23, %v743_v44 }
 0x169   : > { %v693_v26 = vadd.f32 %v692_v24, %v691_v0  ;;  %v746_v11 = vrot.slane %v745_v25, 2 }
 0x16b   : > { %v694_v27 = vrot.slane %v693_v26, 1  ;;  %v747_v13 = vadd.f32 %v746_v11, %v745_v25 }
 0x16d   : > { %v695_v22 = vadd.f32 %v694_v27, %v693_v26  ;;  %v748_v28 = vrot.slane %v747_v13, 1 }
 0x16f   : > { %696 = vst [vmem:[%s208_s23] sm:$0x1] %v695_v22  ;;  %v749_v29 = vadd.f32 %v748_v28, %v747_v13 }
 0x171   : > { %750 = vst [vmem:[%s208_s23 + $0x1] sm:$0x1] %v749_v29 }
 0x172 PF: > { %s15_s15 = sadd.s32 1, %s971_s15  }
 0x173   : > { %p12_p4 = scmp.ge.s32.totalorder %s15_s15, 4  }
 0x175   :  { %14 = sbr.rel (!%p12_p4) target bundleno = 1 (0x1), region = 75 }

// kernel: decoder_forward.11
= control target key start
LH: loop header
LB: loop body
LE: loop exit
PB: predicated region body
PF: predicated region fallthrough
CT: control target
= control target key end

     0   :  { %s1329_s15 = smov 0   ;;  %s1738_s0 = inlined_call_operand.vmem [shape: f32[2,13,17,128], index: 0, kind: input, shape index: {}]   ;;  %s1739_s1 = inlined_call_operand.vmem [shape: f32[512,128], index: 1, kind: input, shape index: {}]   ;;  %s1740_s2 = inlined_call_operand.vmem [shape: f32[192,1], index: 2, kind: input, shape index: {}]   ;;  %s1741_s3 = inlined_call_operand.vmem [shape: f32[2,192,128], index: 3, kind: output, shape index: {0}]   ;;  %s1742_s4 = inlined_call_operand.vmem [shape: f32[2,2,128], index: 4, kind: output, shape index: {1}]  }
   0x1 LB: > { %s1102_s16 = sadd.s32 4294967295, %s1300_s15   ;;  %p1106_p0 = scmp.ge.s32.totalorder %s1300_s15, 1  ;;  %s1300_s15 = sphi %s1329_s15, %s15_s15  }
   0x2   : > { %p165_p1 = scmp.lt.s32.totalorder %s1300_s15, 3 }
   0x4   : > { %p166_p2 = pnand %p1106_p0, %p165_p1 }
   0x5   : > { %v306_v0 = vld [vmem:[%s1739_s1] sm:$0xff] (!%p166_p2)  ;;  %v307_v1 = vld [vmem:[%s1739_s1 + $0x8] sm:$0xff] (!%p166_p2)  ;;  %v1302_v3 = vmov (!%p166_p2), 0.0|0.0   ;;  %v308_v6 = vld [vmem:[%s1739_s1 + $0x10] sm:$0xff] (!%p166_p2)  ;;  %p195_p3 = scmp.lt.s32.totalorder (!%p166_p2), %s1102_s16, 1  ;;  %v1303_v49 = vmov (!%p166_p2), 0  }
   0x6   : > { %169 = sbr.rel (%p166_p2) target bundleno = 397 (0x18d), region = 32  ;;  %v338_v2 = vld [vmem:[%s1739_s1 + $0x100] sm:$0xff] (!%p166_p2)  ;;  %1160 = vmatprep.subr.bf16.mxu1 (!%p166_p2), %v1302_v3  ;;  %1208 = vmatprep.subr.bf16.mxu0 (!%p166_p2), %v1302_v3  ;;  %v1161_v4 = vpack.c.bf16 (!%p166_p2), %v307_v1, %v306_v0  ;;  %v339_v5 = vld [vmem:[%s1739_s1 + $0x108] sm:$0xff] (!%p166_p2)  ;;  %v309_v7 = vld [vmem:[%s1739_s1 + $0x18] sm:$0xff] (!%p166_p2) }
   0x7   : > { %v1209_v8 = vpack.c.bf16 (!%p166_p2), %v339_v5, %v338_v2  ;;  %v340_v9 = vld [vmem:[%s1739_s1 + $0x110] sm:$0xff] (!%p166_p2)  ;;  %v341_v10 = vld [vmem:[%s1739_s1 + $0x118] sm:$0xff] (!%p166_p2)  ;;  %v1164_v11 = vpack.c.bf16 (!%p166_p2), %v309_v7, %v308_v6  ;;  %v310_v13 = vld [vmem:[%s1739_s1 + $0x20] sm:$0xff] (!%p166_p2)  ;;  %1292 = vset.pattern.permute.xlu0 (!%p166_p2), %v1303_v49  ;;  %1293 = vset.pattern.permute.xlu1 (!%p166_p2), %v1303_v49 }
   0x8   : > { %1162 = vmatpush1.bf16.msra.mxu1 (!%p166_p2), %v1161_v4  ;;  %v1212_v12 = vpack.c.bf16 (!%p166_p2), %v341_v10, %v340_v9  ;;  %v311_v14 = vld [vmem:[%s1739_s1 + $0x28] sm:$0xff] (!%p166_p2)  ;;  %v342_v15 = vld [vmem:[%s1739_s1 + $0x120] sm:$0xff] (!%p166_p2)  ;;  %v312_v19 = vld [vmem:[%s1739_s1 + $0x30] sm:$0xff] (!%p166_p2) }
   0x9   : > { %1210 = vmatpush1.bf16.msra.mxu0 (!%p166_p2), %v1209_v8  ;;  %1163 = vmatprep.subr.bf16.mxu1 (!%p166_p2), %v1302_v3  ;;  %v343_v16 = vld [vmem:[%s1739_s1 + $0x128] sm:$0xff] (!%p166_p2)  ;;  %v1167_v17 = vpack.c.bf16 (!%p166_p2), %v311_v14, %v310_v13  ;;  %v313_v20 = vld [vmem:[%s1739_s1 + $0x38] sm:$0xff] (!%p166_p2)  ;;  %v344_v21 = vld [vmem:[%s1739_s1 + $0x130] sm:$0xff] (!%p166_p2) }
   0xa   : > { %1211 = vmatprep.subr.bf16.mxu0 (!%p166_p2), %v1302_v3  ;;  %v1215_v18 = vpack.c.bf16 (!%p166_p2), %v343_v16, %v342_v15  ;;  %v345_v22 = vld [vmem:[%s1739_s1 + $0x138] sm:$0xff] (!%p166_p2)  ;;  %v1170_v23 = vpack.c.bf16 (!%p166_p2), %v313_v20, %v312_v19  ;;  %v314_v25 = vld [vmem:[%s1739_s1 + $0x40] sm:$0xff] (!%p166_p2)  ;;  %v315_v26 = vld [vmem:[%s1739_s1 + $0x48] sm:$0xff] (!%p166_p2) }
   0xb   : > { %v1218_v24 = vpack.c.bf16 (!%p166_p2), %v345_v22, %v344_v21  ;;  %v346_v27 = vld [vmem:[%s1739_s1 + $0x140] sm:$0xff] (!%p166_p2)  ;;  %v347_v28 = vld [vmem:[%s1739_s1 + $0x148] sm:$0xff] (!%p166_p2)  ;;  %v1173_v29 = vpack.c.bf16 (!%p166_p2), %v315_v26, %v314_v25  ;;  %v316_v31 = vld [vmem:[%s1739_s1 + $0x50] sm:$0xff] (!%p166_p2) }
   0xc   : > { %1165 = vmatpush1.bf16.msra.mxu1 (!%p166_p2), %v1164_v11  ;;  %v1221_v30 = vpack.c.bf16 (!%p166_p2), %v347_v28, %v346_v27  ;;  %v317_v32 = vld [vmem:[%s1739_s1 + $0x58] sm:$0xff] (!%p166_p2)  ;;  %v348_v33 = vld [vmem:[%s1739_s1 + $0x150] sm:$0xff] (!%p166_p2)  ;;  %v318_v37 = vld [vmem:[%s1739_s1 + $0x60] sm:$0xff] (!%p166_p2) }
   0xd   : > { %1213 = vmatpush1.bf16.msra.mxu0 %v1212_v12  ;;  %1166 = vmatprep.subr.bf16.mxu1 %v1302_v3  ;;  %s1744_s16 = smov (!%p195_p3, %s1102_s16), 1  ;;  %v349_v34 = vld [vmem:[%s1739_s1 + $0x158] sm:$0xff]  ;;  %v1176_v35 = vpack.c.bf16 %v317_v32, %v316_v31  ;;  %v319_v38 = vld [vmem:[%s1739_s1 + $0x68] sm:$0xff]  ;;  %v350_v39 = vld [vmem:[%s1739_s1 + $0x160] sm:$0xff] }
   0xe   : > { %1214 = vmatprep.subr.bf16.mxu0 %v1302_v3  ;;  %s1280_s7 = smul.u32 312, %s1744_s16  ;;  %v1224_v36 = vpack.c.bf16 %v349_v34, %v348_v33  ;;  %v351_v40 = vld [vmem:[%s1739_s1 + $0x168] sm:$0xff]  ;;  %v1179_v43 = vpack.c.bf16 %v319_v38, %v318_v37  ;;  %v320_v45 = vld [vmem:[%s1739_s1 + $0x70] sm:$0xff]  ;;  %v321_v46 = vld [vmem:[%s1739_s1 + $0x78] sm:$0xff] }
   0xf   : > { %v1227_v44 = vpack.c.bf16 %v351_v40, %v350_v39  ;;  %v352_v47 = vld [vmem:[%s1739_s1 + $0x170] sm:$0xff]  ;;  %v353_v48 = vld [vmem:[%s1739_s1 + $0x178] sm:$0xff]  ;;  %v1182_v50 = vpack.c.bf16 %v321_v46, %v320_v45  ;;  %v322_v52 = vld [vmem:[%s1739_s1 + $0x80] sm:$0xff]  ;;  %s1281_s8 = smul.u32 192, %s1744_s16 }
  0x10   : > { %1168 = vmatpush1.bf16.msra.mxu1 %v1167_v17  ;;  %s1429_s20 = scalar_lea.vmem %s1738_s0, %s1280_s7  ;;  %v1230_v51 = vpack.c.bf16 %v353_v48, %v352_v47  ;;  %v323_v53 = vld [vmem:[%s1739_s1 + $0x88] sm:$0xff]  ;;  %v354_v54 = vld [vmem:[%s1739_s1 + $0x180] sm:$0xff]  ;;  %v324_v58 = vld [vmem:[%s1739_s1 + $0x90] sm:$0xff] }
  0x11   : > { %1216 = vmatpush1.bf16.msra.mxu0 %v1215_v18  ;;  %1169 = vmatprep.subr.bf16.mxu1 %v1302_v3  ;;  %v233_v41 = vld [vmem:[%s1429_s20 + $0x1] sm:$0xff]  ;;  %v1447_v42 = vld [vmem:[%s1429_s20 + $0x19] sm:$0xff]  ;;  %v1185_v56 = vpack.c.bf16 %v323_v53, %v322_v52  ;;  %v356_v60 = vld [vmem:[%s1739_s1 + $0x190] sm:$0xff]  ;;  %s1705_s11 = scalar_lea.vmem %s1741_s3, %s1281_s8 }
  0x12   : > { %1217 = vmatprep.subr.bf16.mxu0 %v1302_v3  ;;  %434 = vmatprep.mubr.f32.mxu1 %v233_v41  ;;  %v355_v55 = vld [vmem:[%s1739_s1 + $0x188] sm:$0xff]  ;;  %v325_v59 = vld [vmem:[%s1739_s1 + $0x98] sm:$0xff]  ;;  %v326_v0 = vld [vmem:[%s1739_s1 + $0xa0] sm:$0xff] }
  0x13   : > { %619 = vmatprep.mubr.f32.mxu0 %v1447_v42  ;;  %v1233_v57 = vpack.c.bf16 %v355_v55, %v354_v54  ;;  %v357_v61 = vld [vmem:[%s1739_s1 + $0x198] sm:$0xff]  ;;  %v1188_v62 = vpack.c.bf16 %v325_v59, %v324_v58  ;;  %v327_v1 = vld [vmem:[%s1739_s1 + $0xa8] sm:$0xff]  ;;  %v358_v2 = vld [vmem:[%s1739_s1 + $0x1a0] sm:$0xff] }
  0x14   : > { %1171 = vmatpush1.bf16.msra.mxu1 %v1170_v23  ;;  %v1236_v63 = vpack.c.bf16 %v357_v61, %v356_v60  ;;  %v359_v4 = vld [vmem:[%s1739_s1 + $0x1a8] sm:$0xff]  ;;  %v740_v5 = vld [vmem:[%s1740_s2] sm:$0xff]  ;;  %v742_v6 = vld [vmem:[%s1740_s2 + $0x10] sm:$0xff]  ;;  %v1191_v7 = vpack.c.bf16 %v327_v1, %v326_v0 }
  0x15   : > { %1219 = vmatpush1.bf16.msra.mxu0 %v1218_v24  ;;  %1172 = vmatprep.subr.bf16.mxu1 %v1302_v3  ;;  %v741_v8 = vld [vmem:[%s1740_s2 + $0x8] sm:$0xff]  ;;  %v1239_v9 = vpack.c.bf16 %v359_v4, %v358_v2  ;;  %v328_v10 = vld [vmem:[%s1739_s1 + $0xb0] sm:$0xff]  ;;  %v329_v11 = vld [vmem:[%s1739_s1 + $0xb8] sm:$0xff] }
  0x16   : > { %1220 = vmatprep.subr.bf16.mxu0 %v1302_v3  ;;  %766 = vperm.xlu0 %1292, %v740_v5   ;;  %v743_v12 = vld [vmem:[%s1740_s2 + $0x18] sm:$0xff]  ;;  %v360_v13 = vld [vmem:[%s1739_s1 + $0x1b0] sm:$0xff]  ;;  %v1194_v15 = vpack.c.bf16 %v329_v11, %v328_v10  ;;  %v744_v16 = vld [vmem:[%s1740_s2 + $0x20] sm:$0xff] }
  0x17   : > { %776 = vperm.xlu1 %1293, %v742_v6   ;;  %v361_v14 = vld [vmem:[%s1739_s1 + $0x1b8] sm:$0xff]  ;;  %v330_v18 = vld [vmem:[%s1739_s1 + $0xc0] sm:$0xff]  ;;  %v331_v19 = vld [vmem:[%s1739_s1 + $0xc8] sm:$0xff] }
  0x18   : > { %1174 = vmatpush1.bf16.msra.mxu1 %v1173_v29  ;;  %v1242_v17 = vpack.c.bf16 %v361_v14, %v360_v13  ;;  %v745_v20 = vld [vmem:[%s1740_s2 + $0x28] sm:$0xff]  ;;  %v362_v21 = vld [vmem:[%s1739_s1 + $0x1c0] sm:$0xff]  ;;  %v1197_v23 = vpack.c.bf16 %v331_v19, %v330_v18  ;;  %v746_v24 = vld [vmem:[%s1740_s2 + $0x30] sm:$0xff] }
  0x19   : > { %1222 = vmatpush1.bf16.msra.mxu0 %v1221_v30  ;;  %1175 = vmatprep.subr.bf16.mxu1 %v1302_v3  ;;  %v363_v22 = vld [vmem:[%s1739_s1 + $0x1c8] sm:$0xff]  ;;  %v332_v26 = vld [vmem:[%s1739_s1 + $0xd0] sm:$0xff]  ;;  %v333_v27 = vld [vmem:[%s1739_s1 + $0xd8] sm:$0xff] }
  0x1a   : > { %1223 = vmatprep.subr.bf16.mxu0 %v1302_v3  ;;  %771 = vperm.xlu0 %1292, %v741_v8   ;;  %v1245_v25 = vpack.c.bf16 %v363_v22, %v362_v21  ;;  %v747_v28 = vld [vmem:[%s1740_s2 + $0x38] sm:$0xff]  ;;  %v364_v29 = vld [vmem:[%s1739_s1 + $0x1d0] sm:$0xff]  ;;  %v1200_v31 = vpack.c.bf16 %v333_v27, %v332_v26  ;;  %v748_v32 = vld [vmem:[%s1740_s2 + $0x40] sm:$0xff] }
  0x1b   : > { %781 = vperm.xlu1 %1293, %v743_v12   ;;  %v365_v30 = vld [vmem:[%s1739_s1 + $0x1d8] sm:$0xff]  ;;  %v334_v34 = vld [vmem:[%s1739_s1 + $0xe0] sm:$0xff]  ;;  %v367_v38 = vld [vmem:[%s1739_s1 + $0x1e8] sm:$0xff] }
  0x1c   : > { %1177 = vmatpush1.bf16.msra.mxu1 %v1176_v35  ;;  %v1248_v33 = vpack.c.bf16 %v365_v30, %v364_v29  ;;  %v335_v35 = vld [vmem:[%s1739_s1 + $0xe8] sm:$0xff]  ;;  %v366_v37 = vld [vmem:[%s1739_s1 + $0x1e0] sm:$0xff]  ;;  %v750_v40 = vld [vmem:[%s1740_s2 + $0x50] sm:$0xff] }
  0x1d   : > { %1225 = vmatpush1.bf16.msra.mxu0 %v1224_v36  ;;  %1178 = vmatprep.subr.bf16.mxu1 %v1302_v3  ;;  %v749_v36 = vld [vmem:[%s1740_s2 + $0x48] sm:$0xff]  ;;  %v1203_v39 = vpack.c.bf16 %v335_v35, %v334_v34  ;;  %v1251_v41 = vpack.c.bf16 %v367_v38, %v366_v37  ;;  %v751_v45 = vld [vmem:[%s1740_s2 + $0x58] sm:$0xff]  ;;  %v368_v46 = vld [vmem:[%s1739_s1 + $0x1f0] sm:$0xff] }
  0x1e   : > { %1226 = vmatprep.subr.bf16.mxu0 %v1302_v3  ;;  %786 = vperm.xlu0 %1292, %v744_v16   ;;  %v369_v47 = vld [vmem:[%s1739_s1 + $0x1f8] sm:$0xff]  ;;  %v752_v49 = vld [vmem:[%s1740_s2 + $0x60] sm:$0xff]  ;;  %v754_v53 = vld [vmem:[%s1740_s2 + $0x70] sm:$0xff] }
  0x1f   : > { %791 = vperm.xlu1 %1293, %v745_v20   ;;  %v209_v52 = vld [vmem:[%s1429_s20] sm:$0xff]  ;;  %v1110_v54 = vld [vmem:[%s1429_s20 + $0x18] sm:$0xff]  ;;  %v234_v55 = vld [vmem:[%s1429_s20 + $0x9] sm:$0xff] }
  0x20   : > { %1180 = vmatpush1.bf16.msra.mxu1 %v1179_v43  ;;  %v336_v43 = vld [vmem:[%s1739_s1 + $0xf0] sm:$0xff]  ;;  %v756_v58 = vld [vmem:[%s1740_s2 + $0x80] sm:$0xff]  ;;  %v757_v61 = vld [vmem:[%s1740_s2 + $0x88] sm:$0xff] }
  0x21   : > { %1228 = vmatpush1.bf16.msra.mxu0 %v1227_v44  ;;  %1181 = vmatprep.subr.bf16.mxu1 %v1302_v3  ;;  %v337_v44 = vld [vmem:[%s1739_s1 + $0xf8] sm:$0xff]  ;;  %v1111_v59 = vld [vmem:[%s1429_s20 + $0x20] sm:$0xff]  ;;  %v1138_v4 = vld [vmem:[%s1429_s20 + $0x49] sm:$0xff] }
  0x22   : > { %1229 = vmatprep.subr.bf16.mxu0 %v1302_v3  ;;  %796 = vperm.xlu0 %1292, %v746_v24   ;;  %v1206_v48 = vpack.c.bf16 %v337_v44, %v336_v43  ;;  %v1136_v60 = vld [vmem:[%s1429_s20 + $0x31] sm:$0xff]  ;;  %v1137_v0 = vld [vmem:[%s1429_s20 + $0x39] sm:$0xff]  ;;  %v761_v5 = vld [vmem:[%s1740_s2 + $0xa8] sm:$0xff] }
  0x23   : > { %801 = vperm.xlu1 %1293, %v747_v28   ;;  %v759_v1 = vld [vmem:[%s1740_s2 + $0x98] sm:$0xff]  ;;  %v762_v6 = vld [vmem:[%s1740_s2 + $0xb0] sm:$0xff]  ;;  %v1140_v11 = vld [vmem:[%s1429_s20 + $0x61] sm:$0xff] }
  0x24   : > { %1183 = vmatpush1.bf16.msra.mxu1 %v1182_v50  ;;  %v1254_v50 = vpack.c.bf16 %v369_v47, %v368_v46  ;;  %v1113_v2 = vld [vmem:[%s1429_s20 + $0x38] sm:$0xff]  ;;  %v1115_v10 = vld [vmem:[%s1429_s20 + $0x50] sm:$0xff]  ;;  %v1116_v12 = vld [vmem:[%s1429_s20 + $0x60] sm:$0xff] }
  0x25   : > { %1231 = vmatpush1.bf16.msra.mxu0 %v1230_v51  ;;  %1184 = vmatprep.subr.bf16.mxu1 %v1302_v3  ;;  %v753_v51 = vld [vmem:[%s1740_s2 + $0x68] sm:$0xff]  ;;  %v1139_v8 = vld [vmem:[%s1429_s20 + $0x51] sm:$0xff]  ;;  %v1119_v18 = vld [vmem:[%s1429_s20 + $0x80] sm:$0xff] }
  0x26   : > { %1232 = vmatprep.subr.bf16.mxu0 %v1302_v3  ;;  %806 = vperm.xlu0 %1292, %v748_v32   ;;  %v1141_v13 = vld [vmem:[%s1429_s20 + $0x69] sm:$0xff]  ;;  %v1118_v16 = vld [vmem:[%s1429_s20 + $0x78] sm:$0xff]  ;;  %v1148_v27 = vld [vmem:[%s1429_s20 + $0xc1] sm:$0xff] }
  0x27   : > { %811 = vperm.xlu1 %1293, %v749_v36   ;;  %v1117_v14 = vld [vmem:[%s1429_s20 + $0x68] sm:$0xff]  ;;  %v1144_v19 = vld [vmem:[%s1429_s20 + $0x91] sm:$0xff]  ;;  %v1145_v21 = vld [vmem:[%s1429_s20 + $0x99] sm:$0xff] }
  0x28   : > { %1186 = vmatpush1.bf16.msra.mxu1 %v1185_v56  ;;  %v1135_v56 = vld [vmem:[%s1429_s20 + $0x21] sm:$0xff]  ;;  %v1120_v20 = vld [vmem:[%s1429_s20 + $0x90] sm:$0xff]  ;;  %v1121_v22 = vld [vmem:[%s1429_s20 + $0x98] sm:$0xff] }
  0x29   : > { %1234 = vmatpush1.bf16.msra.mxu0 %v1233_v57  ;;  %1187 = vmatprep.subr.bf16.mxu1 %v1302_v3  ;;  %v755_v57 = vld [vmem:[%s1740_s2 + $0x78] sm:$0xff]  ;;  %v1122_v24 = vld [vmem:[%s1429_s20 + $0xa8] sm:$0xff]  ;;  %v1123_v26 = vld [vmem:[%s1429_s20 + $0xb0] sm:$0xff] }
  0x2a   : > { %1235 = vmatprep.subr.bf16.mxu0 %v1302_v3  ;;  %816 = vperm.xlu0 %1292, %v750_v40   ;;  %v1124_v28 = vld [vmem:[%s1429_s20 + $0xc0] sm:$0xff]  ;;  %v1149_v29 = vld [vmem:[%s1429_s20 + $0xc9] sm:$0xff]  ;;  %v1126_v32 = vld [vmem:[%s1429_s20 + $0xd8] sm:$0xff] }
  0x2b   : > { %821 = vperm.xlu1 %1293, %v751_v45   ;;  %v1125_v30 = vld [vmem:[%s1429_s20 + $0xc8] sm:$0xff]  ;;  %v1127_v34 = vld [vmem:[%s1429_s20 + $0xe0] sm:$0xff]  ;;  %v1152_v35 = vld [vmem:[%s1429_s20 + $0xf1] sm:$0xff] }
  0x2c   : > { %1189 = vmatpush1.bf16.msra.mxu1 %v1188_v62  ;;  %v758_v62 = vld [vmem:[%s1740_s2 + $0x90] sm:$0xff]  ;;  %v1153_v37 = vld [vmem:[%s1429_s20 + $0xf9] sm:$0xff]  ;;  %v1130_v40 = vld [vmem:[%s1429_s20 + $0x108] sm:$0xff] }
  0x2d   : > { %1237 = vmatpush1.bf16.msra.mxu0 %v1236_v63  ;;  %1190 = vmatprep.subr.bf16.mxu1 %v1302_v3  ;;  %v1112_v63 = vld [vmem:[%s1429_s20 + $0x30] sm:$0xff]  ;;  %v1129_v38 = vld [vmem:[%s1429_s20 + $0xf8] sm:$0xff]  ;;  %v1156_v44 = vld [vmem:[%s1429_s20 + $0x121] sm:$0xff] }
  0x2e   : > { %1238 = vmatprep.subr.bf16.mxu0 %v1302_v3  ;;  %826 = vperm.xlu0 %1292, %v752_v49   ;;  %v1128_v36 = vld [vmem:[%s1429_s20 + $0xf0] sm:$0xff]  ;;  %v1132_v45 = vld [vmem:[%s1429_s20 + $0x120] sm:$0xff]  ;;  %v1133_v47 = vld [vmem:[%s1429_s20 + $0x128] sm:$0xff] }
  0x2f   : > { %831 = vperm.xlu1 %1293, %v753_v51   ;;  %v1131_v43 = vld [vmem:[%s1429_s20 + $0x110] sm:$0xff] }
  0x30   : > { %1192 = vmatpush1.bf16.msra.mxu1 %v1191_v7  ;;  %v1114_v7 = vld [vmem:[%s1429_s20 + $0x48] sm:$0xff] }
  0x31   : > { %1240 = vmatpush1.bf16.msra.mxu0 %v1239_v9  ;;  %1193 = vmatprep.subr.bf16.mxu1 %v1302_v3  ;;  %v763_v9 = vld [vmem:[%s1740_s2 + $0xb8] sm:$0xff]  ;;  %v1157_v46 = vld [vmem:[%s1429_s20 + $0x129] sm:$0xff] }
  0x32   : > { %1241 = vmatprep.subr.bf16.mxu0 %v1302_v3  ;;  %836 = vperm.xlu0 %1292, %v754_v53  }
  0x33   : > { %841 = vperm.xlu1 %1293, %v755_v57  }
  0x34   : > { %1195 = vmatpush1.bf16.msra.mxu1 %v1194_v15  ;;  %v1142_v15 = vld [vmem:[%s1429_s20 + $0x79] sm:$0xff] }
  0x35   : > { %1243 = vmatpush1.bf16.msra.mxu0 %v1242_v17  ;;  %1196 = vmatprep.subr.bf16.mxu1 %v1302_v3  ;;  %v1143_v17 = vld [vmem:[%s1429_s20 + $0x81] sm:$0xff] }
  0x36   : > { %1244 = vmatprep.subr.bf16.mxu0 %v1302_v3  ;;  %846 = vperm.xlu0 %1292, %v756_v58  }
  0x37   : > { %851 = vperm.xlu1 %1293, %v757_v61  }
  0x38   : > { %1198 = vmatpush1.bf16.msra.mxu1 %v1197_v23  ;;  %v1146_v23 = vld [vmem:[%s1429_s20 + $0xa9] sm:$0xff] }
  0x39   : > { %1246 = vmatpush1.bf16.msra.mxu0 %v1245_v25  ;;  %1199 = vmatprep.subr.bf16.mxu1 %v1302_v3  ;;  %v1147_v25 = vld [vmem:[%s1429_s20 + $0xb1] sm:$0xff] }
  0x3a   : > { %1247 = vmatprep.subr.bf16.mxu0 %v1302_v3  ;;  %856 = vperm.xlu0 %1292, %v758_v62  }
  0x3b   : > { %861 = vperm.xlu1 %1293, %v759_v1  }
  0x3c   : > { %1201 = vmatpush1.bf16.msra.mxu1 %v1200_v31  ;;  %v1150_v31 = vld [vmem:[%s1429_s20 + $0xd9] sm:$0xff] }
  0x3d   : > { %1249 = vmatpush1.bf16.msra.mxu0 %v1248_v33  ;;  %1202 = vmatprep.subr.bf16.mxu1 %v1302_v3  ;;  %v1151_v33 = vld [vmem:[%s1429_s20 + $0xe1] sm:$0xff] }
  0x3e   : > { %1250 = vmatprep.subr.bf16.mxu0 %v1302_v3 }
  0x3f   : > { %871 = vperm.xlu1 %1293, %v761_v5  }
  0x40   : > { %1204 = vmatpush1.bf16.msra.mxu1 %v1203_v39  ;;  %v1154_v39 = vld [vmem:[%s1429_s20 + $0x109] sm:$0xff] }
  0x41   : > { %1252 = vmatpush1.bf16.msra.mxu0 %v1251_v41  ;;  %1205 = vmatprep.subr.bf16.mxu1 %v1302_v3  ;;  %v1155_v41 = vld [vmem:[%s1429_s20 + $0x111] sm:$0xff] }
  0x42   : > { %1253 = vmatprep.subr.bf16.mxu0 %v1302_v3  ;;  %v210_v3 = vld [vmem:[%s1429_s20 + $0x8] sm:$0xff]  ;;  %s1109_s20 = sshll.u32 %s1744_s16, 1 }
  0x43   : > { %881 = vperm.xlu1 %1293, %v763_v9   ;;  %s208_s14 = scalar_lea.vmem %s1742_s4, %s1109_s20 }
  0x44   : > { %1207 = vmatpush1.bf16.msra.mxu1 %v1206_v48 }
  0x45   : > { %1255 = vmatpush1.bf16.msra.mxu0 %v1254_v50 }
  0x47   : > { %435 = vmatmul.mubr.f32.vlgmr.msra.gmra.mrb[0].mxu1 %v209_v52 }
  0x48   : > { %620 = vmatmul.mubr.f32.vlgmr.msra.gmra.mrb[0].mxu0 %v1110_v54  ;;  %439 = vmatprep.mubr.f32.mxu1 %v234_v55 }
  0x49   : > { %624 = vmatprep.mubr.f32.mxu0 %v1135_v56 }
  0x4b   : > { %440 = vmatmul.mubr.f32.gmra.mrb[2].mxu1 %v210_v3 }
  0x4c   : > { %625 = vmatmul.mubr.f32.gmra.mrb[2].mxu0 %v1111_v59  ;;  %444 = vmatprep.mubr.f32.mxu1 %v1447_v42  ;;  %v760_v42 = vld [vmem:[%s1740_s2 + $0xa0] sm:$0xff] }
  0x4d   : > { %629 = vmatprep.mubr.f32.mxu0 %v1136_v60  ;;  %866 = vperm.xlu0 %1292, %v760_v42  }
  0x4f   : > { %445 = vmatmul.mubr.f32.gmra.mrb[4].mxu1 %v1110_v54 }
  0x50   : > { %630 = vmatmul.mubr.f32.gmra.mrb[4].mxu0 %v1112_v63  ;;  %449 = vmatprep.mubr.f32.mxu1 %v1135_v56 }
  0x51   : > { %634 = vmatprep.mubr.f32.mxu0 %v1137_v0  ;;  %876 = vperm.xlu0 %1292, %v762_v6  }
  0x53   : > { %450 = vmatmul.mubr.f32.gmra.mrb[6].mxu1 %v1111_v59 }
  0x54   : > { %635 = vmatmul.mubr.f32.gmra.mrb[6].mxu0 %v1113_v2  ;;  %454 = vmatprep.mubr.f32.mxu1 %v1136_v60 }
  0x55   : > { %639 = vmatprep.mubr.f32.mxu0 %v1138_v4 }
  0x57   : > { %455 = vmatmul.mubr.f32.gmra.mrb[8].mxu1 %v1112_v63 }
  0x58   : > { %640 = vmatmul.mubr.f32.gmra.mrb[8].mxu0 %v1114_v7  ;;  %459 = vmatprep.mubr.f32.mxu1 %v1137_v0 }
  0x59   : > { %644 = vmatprep.mubr.f32.mxu0 %v1139_v8 }
  0x5b   : > { %460 = vmatmul.mubr.f32.gmra.mrb[10].mxu1 %v1113_v2 }
  0x5c   : > { %645 = vmatmul.mubr.f32.gmra.mrb[10].mxu0 %v1115_v10  ;;  %464 = vmatprep.mubr.f32.mxu1 %v1138_v4 }
  0x5d   : > { %649 = vmatprep.mubr.f32.mxu0 %v1140_v11 }
  0x5f   : > { %465 = vmatmul.mubr.f32.gmra.mrb[12].mxu1 %v1114_v7 }
  0x60   : > { %650 = vmatmul.mubr.f32.gmra.mrb[12].mxu0 %v1116_v12  ;;  %469 = vmatprep.mubr.f32.mxu1 %v1139_v8 }
  0x61   : > { %654 = vmatprep.mubr.f32.mxu0 %v1141_v13 }
  0x63   : > { %470 = vmatmul.mubr.f32.gmra.mrb[14].mxu1 %v1115_v10 }
  0x64   : > { %655 = vmatmul.mubr.f32.gmra.mrb[14].mxu0 %v1117_v14  ;;  %474 = vmatprep.mubr.f32.mxu1 %v1140_v11 }
  0x65   : > { %659 = vmatprep.mubr.f32.mxu0 %v1142_v15 }
  0x67   : > { %475 = vmatmul.mubr.f32.gmra.mrb[16].mxu1 %v1116_v12 }
  0x68   : > { %660 = vmatmul.mubr.f32.gmra.mrb[16].mxu0 %v1118_v16  ;;  %479 = vmatprep.mubr.f32.mxu1 %v1141_v13 }
  0x69   : > { %664 = vmatprep.mubr.f32.mxu0 %v1143_v17 }
  0x6b   : > { %480 = vmatmul.mubr.f32.gmra.mrb[18].mxu1 %v1117_v14 }
  0x6c   : > { %665 = vmatmul.mubr.f32.gmra.mrb[18].mxu0 %v1119_v18  ;;  %484 = vmatprep.mubr.f32.mxu1 %v1142_v15 }
  0x6d   : > { %669 = vmatprep.mubr.f32.mxu0 %v1144_v19 }
  0x6f   : > { %485 = vmatmul.mubr.f32.gmra.mrb[20].mxu1 %v1118_v16 }
  0x70   : > { %670 = vmatmul.mubr.f32.gmra.mrb[20].mxu0 %v1120_v20  ;;  %489 = vmatprep.mubr.f32.mxu1 %v1143_v17 }
  0x71   : > { %674 = vmatprep.mubr.f32.mxu0 %v1145_v21 }
  0x73   : > { %490 = vmatmul.mubr.f32.gmra.mrb[22].mxu1 %v1119_v18 }
  0x74   : > { %675 = vmatmul.mubr.f32.gmra.mrb[22].mxu0 %v1121_v22  ;;  %494 = vmatprep.mubr.f32.mxu1 %v1144_v19 }
  0x75   : > { %679 = vmatprep.mubr.f32.mxu0 %v1146_v23 }
  0x77   : > { %495 = vmatmul.mubr.f32.gmra.mrb[24].mxu1 %v1120_v20 }
  0x78   : > { %680 = vmatmul.mubr.f32.gmra.mrb[24].mxu0 %v1122_v24  ;;  %499 = vmatprep.mubr.f32.mxu1 %v1145_v21 }
  0x79   : > { %684 = vmatprep.mubr.f32.mxu0 %v1147_v25 }
  0x7b   : > { %500 = vmatmul.mubr.f32.gmra.mrb[26].mxu1 %v1121_v22 }
  0x7c   : > { %685 = vmatmul.mubr.f32.gmra.mrb[26].mxu0 %v1123_v26  ;;  %504 = vmatprep.mubr.f32.mxu1 %v1146_v23 }
  0x7d   : > { %689 = vmatprep.mubr.f32.mxu0 %v1148_v27 }
  0x7f   : > { %505 = vmatmul.mubr.f32.gmra.mrb[28].mxu1 %v1122_v24 }
  0x80   : > { %690 = vmatmul.mubr.f32.gmra.mrb[28].mxu0 %v1124_v28  ;;  %509 = vmatprep.mubr.f32.mxu1 %v1147_v25 }
  0x81   : > { %694 = vmatprep.mubr.f32.mxu0 %v1149_v29 }
  0x83   : > { %510 = vmatmul.mubr.f32.gmra.mrb[30].mxu1 %v1123_v26 }
  0x84   : > { %695 = vmatmul.mubr.f32.gmra.mrb[30].mxu0 %v1125_v30  ;;  %514 = vmatprep.mubr.f32.mxu1 %v1148_v27 }
  0x85   : > { %699 = vmatprep.mubr.f32.mxu0 %v1150_v31 }
  0x87   : > { %515 = vmatmul.mubr.f32.gmra.mrb[32].mxu1 %v1124_v28 }
  0x88   : > { %700 = vmatmul.mubr.f32.gmra.mrb[32].mxu0 %v1126_v32  ;;  %519 = vmatprep.mubr.f32.mxu1 %v1149_v29 }
  0x89   : > { %704 = vmatprep.mubr.f32.mxu0 %v1151_v33 }
  0x8b   : > { %520 = vmatmul.mubr.f32.gmra.mrb[34].mxu1 %v1125_v30 }
  0x8c   : > { %705 = vmatmul.mubr.f32.gmra.mrb[34].mxu0 %v1127_v34  ;;  %524 = vmatprep.mubr.f32.mxu1 %v1150_v31 }
  0x8d   : > { %709 = vmatprep.mubr.f32.mxu0 %v1152_v35 }
  0x8f   : > { %525 = vmatmul.mubr.f32.gmra.mrb[36].mxu1 %v1126_v32 }
  0x90   : > { %710 = vmatmul.mubr.f32.gmra.mrb[36].mxu0 %v1128_v36  ;;  %529 = vmatprep.mubr.f32.mxu1 %v1151_v33 }
  0x91   : > { %714 = vmatprep.mubr.f32.mxu0 %v1153_v37 }
  0x93   : > { %530 = vmatmul.mubr.f32.gmra.mrb[38].mxu1 %v1127_v34 }
  0x94   : > { %715 = vmatmul.mubr.f32.gmra.mrb[38].mxu0 %v1129_v38  ;;  %534 = vmatprep.mubr.f32.mxu1 %v1152_v35 }
  0x95   : > { %719 = vmatprep.mubr.f32.mxu0 %v1154_v39  ;;  %v767_v48 = vpop.permute.xlu0 %766 }
  0x96   : > { %v777_v60 = vpop.permute.xlu1 %776 }
  0x97   : > { %535 = vmatmul.mubr.f32.gmra.mrb[40].mxu1 %v1128_v36 }
  0x98   : > { %720 = vmatmul.mubr.f32.gmra.mrb[40].mxu0 %v1130_v40  ;;  %539 = vmatprep.mubr.f32.mxu1 %v1153_v37 }
  0x99   : > { %724 = vmatprep.mubr.f32.mxu0 %v1155_v41  ;;  %v772_v56 = vpop.permute.xlu0 %771 }
  0x9a   : > { %v782_v15 = vpop.permute.xlu1 %781 }
  0x9b   : > { %540 = vmatmul.mubr.f32.gmra.mrb[42].mxu1 %v1129_v38 }
  0x9c   : > { %725 = vmatmul.mubr.f32.gmra.mrb[42].mxu0 %v1131_v43  ;;  %544 = vmatprep.mubr.f32.mxu1 %v1154_v39 }
  0x9d   : > { %729 = vmatprep.mubr.f32.mxu0 %v1156_v44  ;;  %v787_v25 = vpop.permute.xlu0 %786 }
  0x9e   : > { %v792_v35 = vpop.permute.xlu1 %791 }
  0x9f   : > { %545 = vmatmul.mubr.f32.gmra.mrb[44].mxu1 %v1130_v40 }
  0xa0   : > { %730 = vmatmul.mubr.f32.gmra.mrb[44].mxu0 %v1132_v45  ;;  %549 = vmatprep.mubr.f32.mxu1 %v1155_v41 }
  0xa1   : > { %734 = vmatprep.mubr.f32.mxu0 %v1157_v46  ;;  %v797_v46 = vpop.permute.xlu0 %796 }
  0xa3   : > { %550 = vmatmul.mubr.f32.gmra.mrb[46].mxu1 %v1131_v43 }
  0xa4   : > { %735 = vmatmul.mubr.f32.gmra.mrb[46].mxu0 %v1133_v47 }
 0x11a   : > { %v436_v49 = vpop.f32.mrb[0].mxu1 }
 0x11b   : > { %v621_v50 = vpop.f32.mrb[0].mxu0  ;;  %v438_v51 = vpop.f32.mrb[1].mxu1 }
 0x11c   : > { %v622_v52 = vadd.f32 %v621_v50, %v436_v49  ;;  %v623_v53 = vpop.f32.mrb[1].mxu0 }
 0x11e   : > { %v884_v54 = vmul.f32 %v767_v48, %v622_v52  ;;  %v441_v55 = vpop.f32.mrb[2].mxu1 }
 0x11f   : > { %v626_v57 = vpop.f32.mrb[2].mxu0  ;;  %v443_v3 = vpop.f32.mrb[3].mxu1 }
 0x120   : > { %908 = vst [vmem:[%s1705_s11] sm:$0xff] %v884_v54  ;;  %v627_v58 = vadd.f32 %v626_v57, %v441_v55  ;;  %v628_v59 = vpop.f32.mrb[3].mxu0  ;;  %v962_v1 = vmul.f32 %v884_v54, %v884_v54 }
 0x122   : > { %v885_v61 = vmul.f32 %v772_v56, %v627_v58  ;;  %v446_v62 = vpop.f32.mrb[4].mxu1  ;;  %v802_v56 = vpop.permute.xlu1 %801 }
 0x123   : > { %v631_v63 = vpop.f32.mrb[4].mxu0  ;;  %v448_v0 = vpop.f32.mrb[5].mxu1 }
 0x124   : > { %909 = vst [vmem:[%s1705_s11 + $0x8] sm:$0xff] %v885_v61  ;;  %v932_v42 = vadd.f32 %v885_v61, %v884_v54  ;;  %v963_v2 = vmul.f32 %v885_v61, %v885_v61  ;;  %v632_v4 = vadd.f32 %v631_v63, %v446_v62  ;;  %v633_v5 = vpop.f32.mrb[5].mxu0 }
 0x126   : > { %v986_v6 = vadd.f32 %v963_v2, %v962_v1  ;;  %v886_v7 = vmul.f32 %v777_v60, %v632_v4  ;;  %v451_v8 = vpop.f32.mrb[6].mxu1  ;;  %v807_v1 = vpop.permute.xlu0 %806 }
 0x127   : > { %v636_v9 = vpop.f32.mrb[6].mxu0  ;;  %v453_v10 = vpop.f32.mrb[7].mxu1 }
 0x128   : > { %910 = vst [vmem:[%s1705_s11 + $0x10] sm:$0xff] %v886_v7  ;;  %v933_v11 = vadd.f32 %v932_v42, %v886_v7  ;;  %v964_v12 = vmul.f32 %v886_v7, %v886_v7  ;;  %v637_v13 = vadd.f32 %v636_v9, %v451_v8  ;;  %v638_v14 = vpop.f32.mrb[7].mxu0 }
 0x12a   : > { %v987_v16 = vadd.f32 %v986_v6, %v964_v12  ;;  %v887_v17 = vmul.f32 %v782_v15, %v637_v13  ;;  %v456_v18 = vpop.f32.mrb[8].mxu1 }
 0x12b   : > { %v641_v19 = vpop.f32.mrb[8].mxu0  ;;  %v458_v20 = vpop.f32.mrb[9].mxu1 }
 0x12c   : > { %911 = vst [vmem:[%s1705_s11 + $0x18] sm:$0xff] %v887_v17  ;;  %v934_v21 = vadd.f32 %v933_v11, %v887_v17  ;;  %v965_v22 = vmul.f32 %v887_v17, %v887_v17  ;;  %v642_v23 = vadd.f32 %v641_v19, %v456_v18  ;;  %v643_v24 = vpop.f32.mrb[9].mxu0  ;;  %v812_v11 = vpop.permute.xlu1 %811 }
 0x12e   : > { %v988_v26 = vadd.f32 %v987_v16, %v965_v22  ;;  %v888_v27 = vmul.f32 %v787_v25, %v642_v23  ;;  %v461_v28 = vpop.f32.mrb[10].mxu1 }
 0x12f   : > { %v646_v29 = vpop.f32.mrb[10].mxu0  ;;  %v463_v30 = vpop.f32.mrb[11].mxu1 }
 0x130   : > { %912 = vst [vmem:[%s1705_s11 + $0x20] sm:$0xff] %v888_v27  ;;  %v935_v31 = vadd.f32 %v934_v21, %v888_v27  ;;  %v966_v32 = vmul.f32 %v888_v27, %v888_v27  ;;  %v647_v33 = vadd.f32 %v646_v29, %v461_v28  ;;  %v648_v34 = vpop.f32.mrb[11].mxu0  ;;  %v817_v21 = vpop.permute.xlu0 %816 }
 0x132   : > { %v989_v36 = vadd.f32 %v988_v26, %v966_v32  ;;  %v889_v37 = vmul.f32 %v792_v35, %v647_v33  ;;  %v466_v38 = vpop.f32.mrb[12].mxu1 }
 0x133   : > { %v651_v39 = vpop.f32.mrb[12].mxu0  ;;  %v468_v40 = vpop.f32.mrb[13].mxu1 }
 0x134   : > { %913 = vst [vmem:[%s1705_s11 + $0x28] sm:$0xff] %v889_v37  ;;  %v936_v41 = vadd.f32 %v935_v31, %v889_v37  ;;  %v967_v43 = vmul.f32 %v889_v37, %v889_v37  ;;  %v652_v44 = vadd.f32 %v651_v39, %v466_v38  ;;  %v653_v45 = vpop.f32.mrb[13].mxu0  ;;  %v822_v31 = vpop.permute.xlu1 %821 }
 0x136   : > { %v990_v47 = vadd.f32 %v989_v36, %v967_v43  ;;  %v890_v48 = vmul.f32 %v797_v46, %v652_v44  ;;  %v471_v49 = vpop.f32.mrb[14].mxu1 }
 0x137   : > { %v656_v50 = vpop.f32.mrb[14].mxu0  ;;  %v473_v51 = vpop.f32.mrb[15].mxu1 }
 0x138   : > { %914 = vst [vmem:[%s1705_s11 + $0x30] sm:$0xff] %v890_v48  ;;  %v937_v52 = vadd.f32 %v936_v41, %v890_v48  ;;  %v968_v53 = vmul.f32 %v890_v48, %v890_v48  ;;  %v657_v54 = vadd.f32 %v656_v50, %v471_v49  ;;  %v658_v55 = vpop.f32.mrb[15].mxu0  ;;  %v827_v41 = vpop.permute.xlu0 %826 }
 0x13a   : > { %v991_v57 = vadd.f32 %v990_v47, %v968_v53  ;;  %v891_v3 = vmul.f32 %v802_v56, %v657_v54  ;;  %v476_v58 = vpop.f32.mrb[16].mxu1 }
 0x13b   : > { %v661_v59 = vpop.f32.mrb[16].mxu0  ;;  %v478_v60 = vpop.f32.mrb[17].mxu1 }
 0x13c   : > { %915 = vst [vmem:[%s1705_s11 + $0x38] sm:$0xff] %v891_v3  ;;  %v938_v61 = vadd.f32 %v937_v52, %v891_v3  ;;  %v969_v62 = vmul.f32 %v891_v3, %v891_v3  ;;  %v662_v63 = vadd.f32 %v661_v59, %v476_v58  ;;  %v663_v0 = vpop.f32.mrb[17].mxu0  ;;  %v832_v52 = vpop.permute.xlu1 %831 }
 0x13e   : > { %v992_v42 = vadd.f32 %v991_v57, %v969_v62  ;;  %v892_v2 = vmul.f32 %v807_v1, %v662_v63  ;;  %v481_v4 = vpop.f32.mrb[18].mxu1 }
 0x13f   : > { %v666_v5 = vpop.f32.mrb[18].mxu0  ;;  %v483_v6 = vpop.f32.mrb[19].mxu1 }
 0x140   : > { %916 = vst [vmem:[%s1705_s11 + $0x40] sm:$0xff] %v892_v2  ;;  %v939_v7 = vadd.f32 %v938_v61, %v892_v2  ;;  %v970_v8 = vmul.f32 %v892_v2, %v892_v2  ;;  %v667_v9 = vadd.f32 %v666_v5, %v481_v4  ;;  %v668_v10 = vpop.f32.mrb[19].mxu0  ;;  %v837_v61 = vpop.permute.xlu0 %836 }
 0x142   : > { %v993_v12 = vadd.f32 %v992_v42, %v970_v8  ;;  %v893_v13 = vmul.f32 %v812_v11, %v667_v9  ;;  %v486_v14 = vpop.f32.mrb[20].mxu1 }
 0x143   : > { %v671_v15 = vpop.f32.mrb[20].mxu0  ;;  %v488_v16 = vpop.f32.mrb[21].mxu1 }
 0x144   : > { %917 = vst [vmem:[%s1705_s11 + $0x48] sm:$0xff] %v893_v13  ;;  %v940_v17 = vadd.f32 %v939_v7, %v893_v13  ;;  %v971_v18 = vmul.f32 %v893_v13, %v893_v13  ;;  %v672_v19 = vadd.f32 %v671_v15, %v486_v14  ;;  %v673_v20 = vpop.f32.mrb[21].mxu0  ;;  %v842_v7 = vpop.permute.xlu1 %841 }
 0x146   : > { %v994_v22 = vadd.f32 %v993_v12, %v971_v18  ;;  %v894_v23 = vmul.f32 %v817_v21, %v672_v19  ;;  %v491_v24 = vpop.f32.mrb[22].mxu1 }
 0x147   : > { %v676_v25 = vpop.f32.mrb[22].mxu0  ;;  %v493_v26 = vpop.f32.mrb[23].mxu1 }
 0x148   : > { %918 = vst [vmem:[%s1705_s11 + $0x50] sm:$0xff] %v894_v23  ;;  %v941_v27 = vadd.f32 %v940_v17, %v894_v23  ;;  %v972_v28 = vmul.f32 %v894_v23, %v894_v23  ;;  %v677_v29 = vadd.f32 %v676_v25, %v491_v24  ;;  %v678_v30 = vpop.f32.mrb[23].mxu0  ;;  %v847_v17 = vpop.permute.xlu0 %846 }
 0x14a   : > { %v995_v32 = vadd.f32 %v994_v22, %v972_v28  ;;  %v895_v33 = vmul.f32 %v822_v31, %v677_v29  ;;  %v496_v34 = vpop.f32.mrb[24].mxu1 }
 0x14b   : > { %v681_v35 = vpop.f32.mrb[24].mxu0  ;;  %v498_v36 = vpop.f32.mrb[25].mxu1 }
 0x14c   : > { %919 = vst [vmem:[%s1705_s11 + $0x58] sm:$0xff] %v895_v33  ;;  %v942_v37 = vadd.f32 %v941_v27, %v895_v33  ;;  %v973_v38 = vmul.f32 %v895_v33, %v895_v33  ;;  %v682_v39 = vadd.f32 %v681_v35, %v496_v34  ;;  %v683_v40 = vpop.f32.mrb[25].mxu0  ;;  %v852_v27 = vpop.permute.xlu1 %851 }
 0x14e   : > { %v996_v43 = vadd.f32 %v995_v32, %v973_v38  ;;  %v896_v44 = vmul.f32 %v827_v41, %v682_v39  ;;  %v501_v45 = vpop.f32.mrb[26].mxu1 }
 0x14f   : > { %v686_v46 = vpop.f32.mrb[26].mxu0  ;;  %v503_v47 = vpop.f32.mrb[27].mxu1 }
 0x150   : > { %920 = vst [vmem:[%s1705_s11 + $0x60] sm:$0xff] %v896_v44  ;;  %v943_v48 = vadd.f32 %v942_v37, %v896_v44  ;;  %v974_v49 = vmul.f32 %v896_v44, %v896_v44  ;;  %v687_v50 = vadd.f32 %v686_v46, %v501_v45  ;;  %v688_v51 = vpop.f32.mrb[27].mxu0  ;;  %v857_v37 = vpop.permute.xlu0 %856 }
 0x152   : > { %v997_v53 = vadd.f32 %v996_v43, %v974_v49  ;;  %v897_v54 = vmul.f32 %v832_v52, %v687_v50  ;;  %v506_v55 = vpop.f32.mrb[28].mxu1 }
 0x153   : > { %v691_v56 = vpop.f32.mrb[28].mxu0  ;;  %v508_v57 = vpop.f32.mrb[29].mxu1 }
 0x154   : > { %921 = vst [vmem:[%s1705_s11 + $0x68] sm:$0xff] %v897_v54  ;;  %v944_v3 = vadd.f32 %v943_v48, %v897_v54  ;;  %v975_v58 = vmul.f32 %v897_v54, %v897_v54  ;;  %v692_v59 = vadd.f32 %v691_v56, %v506_v55  ;;  %v693_v60 = vpop.f32.mrb[29].mxu0  ;;  %v862_v48 = vpop.permute.xlu1 %861 }
 0x156   : > { %v998_v62 = vadd.f32 %v997_v53, %v975_v58  ;;  %v898_v63 = vmul.f32 %v837_v61, %v692_v59  ;;  %v511_v0 = vpop.f32.mrb[30].mxu1 }
 0x157   : > { %v696_v1 = vpop.f32.mrb[30].mxu0  ;;  %v513_v42 = vpop.f32.mrb[31].mxu1 }
 0x158   : > { %922 = vst [vmem:[%s1705_s11 + $0x70] sm:$0xff] %v898_v63  ;;  %v945_v2 = vadd.f32 %v944_v3, %v898_v63  ;;  %v976_v4 = vmul.f32 %v898_v63, %v898_v63  ;;  %v697_v5 = vadd.f32 %v696_v1, %v511_v0  ;;  %v698_v6 = vpop.f32.mrb[31].mxu0  ;;  %v867_v3 = vpop.permute.xlu0 %866 }
 0x15a   : > { %v999_v8 = vadd.f32 %v998_v62, %v976_v4  ;;  %v899_v9 = vmul.f32 %v842_v7, %v697_v5  ;;  %v516_v10 = vpop.f32.mrb[32].mxu1 }
 0x15b   : > { %v701_v11 = vpop.f32.mrb[32].mxu0  ;;  %v518_v12 = vpop.f32.mrb[33].mxu1 }
 0x15c   : > { %923 = vst [vmem:[%s1705_s11 + $0x78] sm:$0xff] %v899_v9  ;;  %v946_v13 = vadd.f32 %v945_v2, %v899_v9  ;;  %v977_v14 = vmul.f32 %v899_v9, %v899_v9  ;;  %v702_v15 = vadd.f32 %v701_v11, %v516_v10  ;;  %v703_v16 = vpop.f32.mrb[33].mxu0  ;;  %v872_v2 = vpop.permute.xlu1 %871 }
 0x15e   : > { %v1000_v18 = vadd.f32 %v999_v8, %v977_v14  ;;  %v900_v19 = vmul.f32 %v847_v17, %v702_v15  ;;  %v521_v20 = vpop.f32.mrb[34].mxu1 }
 0x15f   : > { %v706_v21 = vpop.f32.mrb[34].mxu0  ;;  %v523_v22 = vpop.f32.mrb[35].mxu1 }
 0x160   : > { %924 = vst [vmem:[%s1705_s11 + $0x80] sm:$0xff] %v900_v19  ;;  %v947_v23 = vadd.f32 %v946_v13, %v900_v19  ;;  %v978_v24 = vmul.f32 %v900_v19, %v900_v19  ;;  %v707_v25 = vadd.f32 %v706_v21, %v521_v20  ;;  %v708_v26 = vpop.f32.mrb[35].mxu0  ;;  %v877_v13 = vpop.permute.xlu0 %876 }
 0x162   : > { %v1001_v28 = vadd.f32 %v1000_v18, %v978_v24  ;;  %v901_v29 = vmul.f32 %v852_v27, %v707_v25  ;;  %v526_v30 = vpop.f32.mrb[36].mxu1 }
 0x163   : > { %v711_v31 = vpop.f32.mrb[36].mxu0  ;;  %v528_v32 = vpop.f32.mrb[37].mxu1 }
 0x164   : > { %925 = vst [vmem:[%s1705_s11 + $0x88] sm:$0xff] %v901_v29  ;;  %v948_v33 = vadd.f32 %v947_v23, %v901_v29  ;;  %v979_v34 = vmul.f32 %v901_v29, %v901_v29  ;;  %v712_v35 = vadd.f32 %v711_v31, %v526_v30  ;;  %v713_v36 = vpop.f32.mrb[37].mxu0  ;;  %v882_v23 = vpop.permute.xlu1 %881 }
 0x166   : > { %v1002_v38 = vadd.f32 %v1001_v28, %v979_v34  ;;  %v902_v39 = vmul.f32 %v857_v37, %v712_v35  ;;  %v531_v40 = vpop.f32.mrb[38].mxu1 }
 0x167   : > { %v716_v41 = vpop.f32.mrb[38].mxu0  ;;  %v533_v43 = vpop.f32.mrb[39].mxu1 }
 0x168   : > { %926 = vst [vmem:[%s1705_s11 + $0x90] sm:$0xff] %v902_v39  ;;  %v949_v44 = vadd.f32 %v948_v33, %v902_v39  ;;  %v980_v45 = vmul.f32 %v902_v39, %v902_v39  ;;  %v717_v46 = vadd.f32 %v716_v41, %v531_v40  ;;  %v718_v47 = vpop.f32.mrb[39].mxu0 }
 0x16a   : > { %v1003_v49 = vadd.f32 %v1002_v38, %v980_v45  ;;  %v903_v50 = vmul.f32 %v862_v48, %v717_v46  ;;  %v536_v51 = vpop.f32.mrb[40].mxu1 }
 0x16b   : > { %v721_v52 = vpop.f32.mrb[40].mxu0  ;;  %v538_v53 = vpop.f32.mrb[41].mxu1 }
 0x16c   : > { %927 = vst [vmem:[%s1705_s11 + $0x98] sm:$0xff] %v903_v50  ;;  %v950_v54 = vadd.f32 %v949_v44, %v903_v50  ;;  %v981_v55 = vmul.f32 %v903_v50, %v903_v50  ;;  %v722_v56 = vadd.f32 %v721_v52, %v536_v51  ;;  %v723_v57 = vpop.f32.mrb[41].mxu0 }
 0x16e   : > { %v1004_v58 = vadd.f32 %v1003_v49, %v981_v55  ;;  %v904_v59 = vmul.f32 %v867_v3, %v722_v56  ;;  %v541_v60 = vpop.f32.mrb[42].mxu1 }
 0x16f   : > { %v726_v61 = vpop.f32.mrb[42].mxu0  ;;  %v543_v62 = vpop.f32.mrb[43].mxu1 }
 0x170   : > { %928 = vst [vmem:[%s1705_s11 + $0xa0] sm:$0xff] %v904_v59  ;;  %v951_v63 = vadd.f32 %v950_v54, %v904_v59  ;;  %v982_v0 = vmul.f32 %v904_v59, %v904_v59  ;;  %v727_v1 = vadd.f32 %v726_v61, %v541_v60  ;;  %v728_v42 = vpop.f32.mrb[43].mxu0 }
 0x172   : > { %v1005_v4 = vadd.f32 %v1004_v58, %v982_v0  ;;  %v905_v5 = vmul.f32 %v872_v2, %v727_v1  ;;  %v546_v6 = vpop.f32.mrb[44].mxu1 }
 0x173   : > { %v731_v7 = vpop.f32.mrb[44].mxu0  ;;  %v548_v8 = vpop.f32.mrb[45].mxu1 }
 0x174   : > { %929 = vst [vmem:[%s1705_s11 + $0xa8] sm:$0xff] %v905_v5  ;;  %v952_v9 = vadd.f32 %v951_v63, %v905_v5  ;;  %v983_v10 = vmul.f32 %v905_v5, %v905_v5  ;;  %v732_v11 = vadd.f32 %v731_v7, %v546_v6  ;;  %v733_v12 = vpop.f32.mrb[45].mxu0 }
 0x176   : > { %v1006_v14 = vadd.f32 %v1005_v4, %v983_v10  ;;  %v906_v15 = vmul.f32 %v877_v13, %v732_v11  ;;  %v551_v16 = vpop.f32.mrb[46].mxu1 }
 0x177   : > { %v736_v17 = vpop.f32.mrb[46].mxu0  ;;  %v553_v18 = vpop.f32.mrb[47].mxu1 }
 0x178   : > { %930 = vst [vmem:[%s1705_s11 + $0xb0] sm:$0xff] %v906_v15  ;;  %v953_v19 = vadd.f32 %v952_v9, %v906_v15  ;;  %v984_v20 = vmul.f32 %v906_v15, %v906_v15  ;;  %v737_v21 = vadd.f32 %v736_v17, %v551_v16  ;;  %v738_v22 = vpop.f32.mrb[47].mxu0 }
 0x17a   : > { %v1007_v24 = vadd.f32 %v1006_v14, %v984_v20  ;;  %v907_v25 = vmul.f32 %v882_v23, %v737_v21 }
 0x17c   : > { %931 = vst [vmem:[%s1705_s11 + $0xb8] sm:$0xff] %v907_v25  ;;  %v954_v26 = vadd.f32 %v953_v19, %v907_v25  ;;  %v985_v27 = vmul.f32 %v907_v25, %v907_v25 }
 0x17e   : > { %v955_v28 = vrot.slane %v954_v26, 4  ;;  %v1008_v29 = vadd.f32 %v1007_v24, %v985_v27 }
 0x180   : > { %v956_v30 = vadd.f32 %v955_v28, %v954_v26  ;;  %v1009_v31 = vrot.slane %v1008_v29, 4 }
 0x182   : > { %v957_v32 = vrot.slane %v956_v30, 2  ;;  %v1010_v33 = vadd.f32 %v1009_v31, %v1008_v29 }
 0x184   : > { %v958_v34 = vadd.f32 %v957_v32, %v956_v30  ;;  %v1011_v35 = vrot.slane %v1010_v33, 2 }
 0x186   : > { %v959_v36 = vrot.slane %v958_v34, 1  ;;  %v1012_v37 = vadd.f32 %v1011_v35, %v1010_v33 }
 0x188   : > { %v960_v38 = vadd.f32 %v959_v36, %v958_v34  ;;  %v1013_v39 = vrot.slane %v1012_v37, 1 }
 0x18a   : > { %961 = vst [vmem:[%s208_s14] sm:$0x1] %v960_v38  ;;  %v1014_v40 = vadd.f32 %v1013_v39, %v1012_v37 }
 0x18c   : > { %1015 = vst [vmem:[%s208_s14 + $0x1] sm:$0x1] %v1014_v40 }
 0x18d PF: > { %s15_s15 = sadd.s32 1, %s1300_s15  }
 0x18e   : > { %p12_p4 = scmp.ge.s32.totalorder %s15_s15, 4  }
 0x190   :  { %14 = sbr.rel (!%p12_p4) target bundleno = 1 (0x1), region = 75 }

// kernel: decoder_forward.15
= control target key start
LH: loop header
LB: loop body
LE: loop exit
PB: predicated region body
PF: predicated region fallthrough
CT: control target
= control target key end

     0   :  { %s531_s12 = smov 0   ;;  %s754_s0 = inlined_call_operand.vmem [shape: f32[1152,128], index: 0, kind: input, shape index: {}]   ;;  %s755_s1 = inlined_call_operand.vmem [shape: f32[1,128], index: 1, kind: input, shape index: {}]   ;;  %s756_s2 = inlined_call_operand.vmem [shape: f32[1,128], index: 2, kind: input, shape index: {}]   ;;  %s757_s3 = inlined_call_operand.vmem [shape: f32[1152,128], index: 3, kind: output, shape index: {}]  }
   0x1 LB: > { %s484_s13 = sadd.s32 4294967295, %s509_s12   ;;  %p488_p0 = scmp.ge.s32.totalorder %s509_s12, 1  ;;  %s509_s12 = sphi %s531_s12, %s13_s12  }
   0x2   : > { %p138_p1 = scmp.lt.s32.totalorder %s509_s12, 4 }
   0x4   : > { %p139_p2 = pnand %p488_p0, %p138_p1 }
   0x5   : > { %s162_s14 = smul.u32 (!%p139_p2), 48, %s484_s13  ;;  %v542_v0 = vld [vmem:[%s755_s1] ss:$0 sm:$0xff] (!%p139_p2) }
   0x6   : > { %142 = sbr.rel (%p139_p2) target bundleno = 58 (0x3a), region = 32  ;;  %v552_v1 = vld [vmem:[%s756_s2] ss:$0 sm:$0xff] (!%p139_p2) }
   0x7   : > { %p163_p3 = scmp.lt.s32.totalorder (!%p139_p2), %s162_s14, 143 }
   0xd   : > { %s759_s14 = smov (!%p163_p3, %s162_s14), 143 }
   0xe   : > { %s489_s15 = sshll.u32 %s759_s14, 3 }
   0xf   : > { %s547_s20 = scalar_lea.vmem %s754_s0, %s489_s15  ;;  %s575_s25 = scalar_lea.vmem %s757_s3, %s489_s15 }
  0x10   : > { %v174_v2 = vld [vmem:[%s547_s20] sm:$0xff]  ;;  %v175_v3 = vld [vmem:[%s547_s20 + $0x8] sm:$0xff]  ;;  %v176_v4 = vld [vmem:[%s547_s20 + $0x10] sm:$0xff] }
  0x11   : > { %v229_v5 = vmul.f32 %v542_v0, %v174_v2  ;;  %v230_v6 = vmul.f32 %v542_v0, %v175_v3  ;;  %v231_v7 = vmul.f32 %v542_v0, %v176_v4  ;;  %v177_v8 = vld [vmem:[%s547_s20 + $0x18] sm:$0xff]  ;;  %v178_v9 = vld [vmem:[%s547_s20 + $0x20] sm:$0xff]  ;;  %v179_v10 = vld [vmem:[%s547_s20 + $0x28] sm:$0xff] }
  0x12   : > { %v232_v11 = vmul.f32 %v542_v0, %v177_v8  ;;  %v233_v12 = vmul.f32 %v542_v0, %v178_v9  ;;  %v234_v13 = vmul.f32 %v542_v0, %v179_v10  ;;  %v180_v14 = vld [vmem:[%s547_s20 + $0x30] sm:$0xff]  ;;  %v181_v15 = vld [vmem:[%s547_s20 + $0x38] sm:$0xff]  ;;  %v182_v24 = vld [vmem:[%s547_s20 + $0x40] sm:$0xff] }
  0x13   : > { %v284_v16 = vadd.f32 %v552_v1, %v229_v5  ;;  %v285_v17 = vadd.f32 %v552_v1, %v230_v6  ;;  %v286_v18 = vadd.f32 %v552_v1, %v231_v7  ;;  %v235_v19 = vmul.f32 %v542_v0, %v180_v14  ;;  %v183_v25 = vld [vmem:[%s547_s20 + $0x48] sm:$0xff]  ;;  %v184_v26 = vld [vmem:[%s547_s20 + $0x50] sm:$0xff]  ;;  %v185_v31 = vld [vmem:[%s547_s20 + $0x58] sm:$0xff] }
  0x14   : > { %v287_v20 = vadd.f32 %v552_v1, %v232_v11  ;;  %v288_v21 = vadd.f32 %v552_v1, %v233_v12  ;;  %v289_v22 = vadd.f32 %v552_v1, %v234_v13  ;;  %v236_v23 = vmul.f32 %v542_v0, %v181_v15  ;;  %v186_v32 = vld [vmem:[%s547_s20 + $0x60] sm:$0xff]  ;;  %v187_v33 = vld [vmem:[%s547_s20 + $0x68] sm:$0xff]  ;;  %v188_v38 = vld [vmem:[%s547_s20 + $0x70] sm:$0xff] }
  0x15   : > { %v332_v27 = vmax.f32 %v284_v16, 0.0  ;;  %v333_v28 = vmax.f32 %v285_v17, 0.0  ;;  %v334_v29 = vmax.f32 %v286_v18, 0.0  ;;  %v290_v30 = vadd.f32 %v552_v1, %v235_v19  ;;  %v189_v43 = vld [vmem:[%s547_s20 + $0x78] sm:$0xff]  ;;  %v190_v56 = vld [vmem:[%s547_s20 + $0x80] sm:$0xff]  ;;  %v191_v57 = vld [vmem:[%s547_s20 + $0x88] sm:$0xff] }
  0x16   : > { %v335_v34 = vmax.f32 %v287_v20, 0.0  ;;  %v336_v35 = vmax.f32 %v288_v21, 0.0  ;;  %v337_v36 = vmax.f32 %v289_v22, 0.0  ;;  %v291_v37 = vadd.f32 %v552_v1, %v236_v23  ;;  %v192_v58 = vld [vmem:[%s547_s20 + $0x90] sm:$0xff]  ;;  %v193_v63 = vld [vmem:[%s547_s20 + $0x98] sm:$0xff]  ;;  %v194_v2 = vld [vmem:[%s547_s20 + $0xa0] sm:$0xff] }
  0x17   : > { %380 = vst [vmem:[%s575_s25] sm:$0xff] %v332_v27  ;;  %381 = vst [vmem:[%s575_s25 + $0x8] sm:$0xff] %v333_v28  ;;  %v338_v39 = vmax.f32 %v290_v30, 0.0  ;;  %v237_v40 = vmul.f32 %v542_v0, %v182_v24  ;;  %v238_v41 = vmul.f32 %v542_v0, %v183_v25  ;;  %v239_v42 = vmul.f32 %v542_v0, %v184_v26  ;;  %v195_v3 = vld [vmem:[%s547_s20 + $0xa8] sm:$0xff]  ;;  %v196_v8 = vld [vmem:[%s547_s20 + $0xb0] sm:$0xff] }
  0x18   : > { %382 = vst [vmem:[%s575_s25 + $0x10] sm:$0xff] %v334_v29  ;;  %383 = vst [vmem:[%s575_s25 + $0x18] sm:$0xff] %v335_v34  ;;  %v339_v44 = vmax.f32 %v291_v37, 0.0  ;;  %v240_v45 = vmul.f32 %v542_v0, %v185_v31  ;;  %v241_v46 = vmul.f32 %v542_v0, %v186_v32  ;;  %v242_v47 = vmul.f32 %v542_v0, %v187_v33  ;;  %v197_v13 = vld [vmem:[%s547_s20 + $0xb8] sm:$0xff]  ;;  %v198_v26 = vld [vmem:[%s547_s20 + $0xc0] sm:$0xff] }
  0x19   : > { %384 = vst [vmem:[%s575_s25 + $0x20] sm:$0xff] %v336_v35  ;;  %385 = vst [vmem:[%s575_s25 + $0x28] sm:$0xff] %v337_v36  ;;  %v292_v48 = vadd.f32 %v552_v1, %v237_v40  ;;  %v293_v49 = vadd.f32 %v552_v1, %v238_v41  ;;  %v294_v50 = vadd.f32 %v552_v1, %v239_v42  ;;  %v199_v27 = vld [vmem:[%s547_s20 + $0xc8] sm:$0xff]  ;;  %v200_v28 = vld [vmem:[%s547_s20 + $0xd0] sm:$0xff] }
  0x1a   : > { %386 = vst [vmem:[%s575_s25 + $0x30] sm:$0xff] %v338_v39  ;;  %v243_v51 = vmul.f32 %v542_v0, %v188_v38  ;;  %387 = vst [vmem:[%s575_s25 + $0x38] sm:$0xff] %v339_v44  ;;  %v295_v52 = vadd.f32 %v552_v1, %v240_v45  ;;  %v296_v53 = vadd.f32 %v552_v1, %v241_v46  ;;  %v201_v33 = vld [vmem:[%s547_s20 + $0xd8] sm:$0xff]  ;;  %v202_v34 = vld [vmem:[%s547_s20 + $0xe0] sm:$0xff] }
  0x1b   : > { %v297_v54 = vadd.f32 %v552_v1, %v242_v47  ;;  %v244_v55 = vmul.f32 %v542_v0, %v189_v43  ;;  %v340_v59 = vmax.f32 %v292_v48, 0.0  ;;  %v341_v60 = vmax.f32 %v293_v49, 0.0  ;;  %v203_v35 = vld [vmem:[%s547_s20 + $0xe8] sm:$0xff]  ;;  %v204_v40 = vld [vmem:[%s547_s20 + $0xf0] sm:$0xff]  ;;  %v205_v45 = vld [vmem:[%s547_s20 + $0xf8] sm:$0xff] }
  0x1c   : > { %v342_v61 = vmax.f32 %v294_v50, 0.0  ;;  %v298_v62 = vadd.f32 %v552_v1, %v243_v51  ;;  %v343_v4 = vmax.f32 %v295_v52, 0.0  ;;  %v344_v5 = vmax.f32 %v296_v53, 0.0 }
  0x1d   : > { %v345_v6 = vmax.f32 %v297_v54, 0.0  ;;  %v299_v7 = vadd.f32 %v552_v1, %v244_v55  ;;  %388 = vst [vmem:[%s575_s25 + $0x40] sm:$0xff] %v340_v59  ;;  %389 = vst [vmem:[%s575_s25 + $0x48] sm:$0xff] %v341_v60  ;;  %v245_v10 = vmul.f32 %v542_v0, %v190_v56  ;;  %v246_v11 = vmul.f32 %v542_v0, %v191_v57  ;;  %v207_v59 = vld [vmem:[%s547_s20 + $0x108] sm:$0xff]  ;;  %v208_v60 = vld [vmem:[%s547_s20 + $0x110] sm:$0xff] }
  0x1e   : > { %390 = vst [vmem:[%s575_s25 + $0x50] sm:$0xff] %v342_v61  ;;  %v346_v9 = vmax.f32 %v298_v62, 0.0  ;;  %v247_v12 = vmul.f32 %v542_v0, %v192_v58  ;;  %391 = vst [vmem:[%s575_s25 + $0x58] sm:$0xff] %v343_v4  ;;  %v248_v15 = vmul.f32 %v542_v0, %v193_v63  ;;  %v249_v16 = vmul.f32 %v542_v0, %v194_v2  ;;  %v206_v58 = vld [vmem:[%s547_s20 + $0x100] sm:$0xff] }
  0x1f   : > { %392 = vst [vmem:[%s575_s25 + $0x60] sm:$0xff] %v344_v5  ;;  %393 = vst [vmem:[%s575_s25 + $0x68] sm:$0xff] %v345_v6  ;;  %v347_v14 = vmax.f32 %v299_v7, 0.0  ;;  %v250_v17 = vmul.f32 %v542_v0, %v195_v3  ;;  %v300_v18 = vadd.f32 %v552_v1, %v245_v10  ;;  %v301_v19 = vadd.f32 %v552_v1, %v246_v11  ;;  %v209_v3 = vld [vmem:[%s547_s20 + $0x118] sm:$0xff]  ;;  %v210_v4 = vld [vmem:[%s547_s20 + $0x120] sm:$0xff] }
  0x20   : > { %394 = vst [vmem:[%s575_s25 + $0x70] sm:$0xff] %v346_v9  ;;  %v302_v20 = vadd.f32 %v552_v1, %v247_v12  ;;  %v251_v21 = vmul.f32 %v542_v0, %v196_v8  ;;  %v303_v22 = vadd.f32 %v552_v1, %v248_v15  ;;  %v304_v23 = vadd.f32 %v552_v1, %v249_v16  ;;  %v211_v5 = vld [vmem:[%s547_s20 + $0x128] sm:$0xff]  ;;  %v212_v10 = vld [vmem:[%s547_s20 + $0x130] sm:$0xff]  ;;  %v213_v15 = vld [vmem:[%s547_s20 + $0x138] sm:$0xff] }
  0x21   : > { %395 = vst [vmem:[%s575_s25 + $0x78] sm:$0xff] %v347_v14  ;;  %v305_v24 = vadd.f32 %v552_v1, %v250_v17  ;;  %v252_v25 = vmul.f32 %v542_v0, %v197_v13  ;;  %v348_v29 = vmax.f32 %v300_v18, 0.0  ;;  %v349_v30 = vmax.f32 %v301_v19, 0.0 }
  0x22   : > { %v350_v31 = vmax.f32 %v302_v20, 0.0  ;;  %v306_v32 = vadd.f32 %v552_v1, %v251_v21  ;;  %v351_v36 = vmax.f32 %v303_v22, 0.0  ;;  %v352_v37 = vmax.f32 %v304_v23, 0.0 }
  0x23   : > { %v353_v38 = vmax.f32 %v305_v24, 0.0  ;;  %v307_v39 = vadd.f32 %v552_v1, %v252_v25  ;;  %396 = vst [vmem:[%s575_s25 + $0x80] sm:$0xff] %v348_v29  ;;  %397 = vst [vmem:[%s575_s25 + $0x88] sm:$0xff] %v349_v30  ;;  %v253_v42 = vmul.f32 %v542_v0, %v198_v26  ;;  %v254_v43 = vmul.f32 %v542_v0, %v199_v27  ;;  %v215_v29 = vld [vmem:[%s547_s20 + $0x148] sm:$0xff]  ;;  %v216_v30 = vld [vmem:[%s547_s20 + $0x150] sm:$0xff] }
  0x24   : > { %398 = vst [vmem:[%s575_s25 + $0x90] sm:$0xff] %v350_v31  ;;  %v354_v41 = vmax.f32 %v306_v32, 0.0  ;;  %v255_v44 = vmul.f32 %v542_v0, %v200_v28  ;;  %399 = vst [vmem:[%s575_s25 + $0x98] sm:$0xff] %v351_v36  ;;  %v256_v47 = vmul.f32 %v542_v0, %v201_v33  ;;  %v257_v48 = vmul.f32 %v542_v0, %v202_v34  ;;  %v214_v28 = vld [vmem:[%s547_s20 + $0x140] sm:$0xff] }
  0x25   : > { %400 = vst [vmem:[%s575_s25 + $0xa0] sm:$0xff] %v352_v37  ;;  %401 = vst [vmem:[%s575_s25 + $0xa8] sm:$0xff] %v353_v38  ;;  %v355_v46 = vmax.f32 %v307_v39, 0.0  ;;  %v258_v49 = vmul.f32 %v542_v0, %v203_v35  ;;  %v308_v50 = vadd.f32 %v552_v1, %v253_v42  ;;  %v309_v51 = vadd.f32 %v552_v1, %v254_v43  ;;  %v217_v35 = vld [vmem:[%s547_s20 + $0x158] sm:$0xff]  ;;  %v218_v36 = vld [vmem:[%s547_s20 + $0x160] sm:$0xff] }
  0x26   : > { %402 = vst [vmem:[%s575_s25 + $0xb0] sm:$0xff] %v354_v41  ;;  %v310_v52 = vadd.f32 %v552_v1, %v255_v44  ;;  %v259_v53 = vmul.f32 %v542_v0, %v204_v40  ;;  %v311_v54 = vadd.f32 %v552_v1, %v256_v47  ;;  %v312_v55 = vadd.f32 %v552_v1, %v257_v48  ;;  %v219_v37 = vld [vmem:[%s547_s20 + $0x168] sm:$0xff]  ;;  %v220_v42 = vld [vmem:[%s547_s20 + $0x170] sm:$0xff]  ;;  %v221_v47 = vld [vmem:[%s547_s20 + $0x178] sm:$0xff] }
  0x27   : > { %403 = vst [vmem:[%s575_s25 + $0xb8] sm:$0xff] %v355_v46  ;;  %v313_v56 = vadd.f32 %v552_v1, %v258_v49  ;;  %v260_v57 = vmul.f32 %v542_v0, %v205_v45  ;;  %v356_v61 = vmax.f32 %v308_v50, 0.0  ;;  %v357_v62 = vmax.f32 %v309_v51, 0.0 }
  0x28   : > { %v358_v63 = vmax.f32 %v310_v52, 0.0  ;;  %v314_v2 = vadd.f32 %v552_v1, %v259_v53  ;;  %v359_v6 = vmax.f32 %v311_v54, 0.0  ;;  %v360_v7 = vmax.f32 %v312_v55, 0.0 }
  0x29   : > { %v361_v8 = vmax.f32 %v313_v56, 0.0  ;;  %v315_v9 = vadd.f32 %v552_v1, %v260_v57  ;;  %404 = vst [vmem:[%s575_s25 + $0xc0] sm:$0xff] %v356_v61  ;;  %405 = vst [vmem:[%s575_s25 + $0xc8] sm:$0xff] %v357_v62  ;;  %v261_v12 = vmul.f32 %v542_v0, %v206_v58  ;;  %v262_v13 = vmul.f32 %v542_v0, %v207_v59 }
  0x2a   : > { %406 = vst [vmem:[%s575_s25 + $0xd0] sm:$0xff] %v358_v63  ;;  %v362_v11 = vmax.f32 %v314_v2, 0.0  ;;  %v263_v14 = vmul.f32 %v542_v0, %v208_v60  ;;  %407 = vst [vmem:[%s575_s25 + $0xd8] sm:$0xff] %v359_v6  ;;  %v264_v17 = vmul.f32 %v542_v0, %v209_v3  ;;  %v265_v18 = vmul.f32 %v542_v0, %v210_v4 }
  0x2b   : > { %408 = vst [vmem:[%s575_s25 + $0xe0] sm:$0xff] %v360_v7  ;;  %409 = vst [vmem:[%s575_s25 + $0xe8] sm:$0xff] %v361_v8  ;;  %v363_v16 = vmax.f32 %v315_v9, 0.0  ;;  %v266_v19 = vmul.f32 %v542_v0, %v211_v5  ;;  %v316_v20 = vadd.f32 %v552_v1, %v261_v12  ;;  %v317_v21 = vadd.f32 %v552_v1, %v262_v13 }
  0x2c   : > { %410 = vst [vmem:[%s575_s25 + $0xf0] sm:$0xff] %v362_v11  ;;  %v318_v22 = vadd.f32 %v552_v1, %v263_v14  ;;  %v267_v23 = vmul.f32 %v542_v0, %v212_v10  ;;  %v319_v24 = vadd.f32 %v552_v1, %v264_v17  ;;  %v320_v25 = vadd.f32 %v552_v1, %v265_v18 }
  0x2d   : > { %411 = vst [vmem:[%s575_s25 + $0xf8] sm:$0xff] %v363_v16  ;;  %v321_v26 = vadd.f32 %v552_v1, %v266_v19  ;;  %v268_v27 = vmul.f32 %v542_v0, %v213_v15  ;;  %v364_v31 = vmax.f32 %v316_v20, 0.0  ;;  %v365_v32 = vmax.f32 %v317_v21, 0.0 }
  0x2e   : > { %v366_v33 = vmax.f32 %v318_v22, 0.0  ;;  %v322_v34 = vadd.f32 %v552_v1, %v267_v23  ;;  %v367_v38 = vmax.f32 %v319_v24, 0.0  ;;  %v368_v39 = vmax.f32 %v320_v25, 0.0 }
  0x2f   : > { %v369_v40 = vmax.f32 %v321_v26, 0.0  ;;  %v323_v41 = vadd.f32 %v552_v1, %v268_v27  ;;  %412 = vst [vmem:[%s575_s25 + $0x100] sm:$0xff] %v364_v31  ;;  %413 = vst [vmem:[%s575_s25 + $0x108] sm:$0xff] %v365_v32  ;;  %v269_v44 = vmul.f32 %v542_v0, %v214_v28  ;;  %v270_v45 = vmul.f32 %v542_v0, %v215_v29 }
  0x30   : > { %414 = vst [vmem:[%s575_s25 + $0x110] sm:$0xff] %v366_v33  ;;  %v370_v43 = vmax.f32 %v322_v34, 0.0  ;;  %v271_v46 = vmul.f32 %v542_v0, %v216_v30  ;;  %415 = vst [vmem:[%s575_s25 + $0x118] sm:$0xff] %v367_v38  ;;  %v272_v49 = vmul.f32 %v542_v0, %v217_v35  ;;  %v273_v50 = vmul.f32 %v542_v0, %v218_v36 }
  0x31   : > { %416 = vst [vmem:[%s575_s25 + $0x120] sm:$0xff] %v368_v39  ;;  %417 = vst [vmem:[%s575_s25 + $0x128] sm:$0xff] %v369_v40  ;;  %v371_v48 = vmax.f32 %v323_v41, 0.0  ;;  %v274_v51 = vmul.f32 %v542_v0, %v219_v37  ;;  %v324_v52 = vadd.f32 %v552_v1, %v269_v44  ;;  %v325_v53 = vadd.f32 %v552_v1, %v270_v45 }
  0x32   : > { %418 = vst [vmem:[%s575_s25 + $0x130] sm:$0xff] %v370_v43  ;;  %v326_v54 = vadd.f32 %v552_v1, %v271_v46  ;;  %v275_v55 = vmul.f32 %v542_v0, %v220_v42  ;;  %v327_v56 = vadd.f32 %v552_v1, %v272_v49  ;;  %v328_v57 = vadd.f32 %v552_v1, %v273_v50 }
  0x33   : > { %419 = vst [vmem:[%s575_s25 + $0x138] sm:$0xff] %v371_v48  ;;  %v329_v58 = vadd.f32 %v552_v1, %v274_v51  ;;  %v276_v59 = vmul.f32 %v542_v0, %v221_v47  ;;  %v372_v60 = vmax.f32 %v324_v52, 0.0  ;;  %v373_v61 = vmax.f32 %v325_v53, 0.0 }
  0x34   : > { %v374_v62 = vmax.f32 %v326_v54, 0.0  ;;  %v330_v63 = vadd.f32 %v552_v1, %v275_v55  ;;  %v375_v2 = vmax.f32 %v327_v56, 0.0  ;;  %v376_v3 = vmax.f32 %v328_v57, 0.0 }
  0x35   : > { %v377_v4 = vmax.f32 %v329_v58, 0.0  ;;  %v331_v5 = vadd.f32 %v552_v1, %v276_v59  ;;  %420 = vst [vmem:[%s575_s25 + $0x140] sm:$0xff] %v372_v60  ;;  %421 = vst [vmem:[%s575_s25 + $0x148] sm:$0xff] %v373_v61 }
  0x36   : > { %422 = vst [vmem:[%s575_s25 + $0x150] sm:$0xff] %v374_v62  ;;  %v378_v6 = vmax.f32 %v330_v63, 0.0  ;;  %423 = vst [vmem:[%s575_s25 + $0x158] sm:$0xff] %v375_v2 }
  0x37   : > { %424 = vst [vmem:[%s575_s25 + $0x160] sm:$0xff] %v376_v3  ;;  %425 = vst [vmem:[%s575_s25 + $0x168] sm:$0xff] %v377_v4  ;;  %v379_v0 = vmax.f32 %v331_v5, 0.0 }
  0x38   : > { %426 = vst [vmem:[%s575_s25 + $0x170] sm:$0xff] %v378_v6 }
  0x39   : > { %427 = vst [vmem:[%s575_s25 + $0x178] sm:$0xff] %v379_v0 }
  0x3a PF: > { %s13_s12 = sadd.s32 1, %s509_s12  }
  0x3b   : > { %p10_p4 = scmp.ge.s32.totalorder %s13_s12, 5  }
  0x3d   :  { %12 = sbr.rel (!%p10_p4) target bundleno = 1 (0x1), region = 62 }

// kernel: decoder_forward.16
= control target key start
LH: loop header
LB: loop body
LE: loop exit
PB: predicated region body
PF: predicated region fallthrough
CT: control target
= control target key end

     0   :  { %s1107_s12 = smov 0   ;;  %s1431_s0 = inlined_call_operand.vmem [shape: f32[1152,128], index: 0, kind: input, shape index: {}]   ;;  %s1432_s1 = inlined_call_operand.vmem [shape: f32[128,128], index: 1, kind: input, shape index: {}]   ;;  %s1433_s2 = inlined_call_operand.vmem [shape: f32[1152,128], index: 2, kind: output, shape index: {0}]   ;;  %s1434_s3 = inlined_call_operand.vmem [shape: f32[3,2,128], index: 3, kind: output, shape index: {1}]  }
   0x1 LB: > { %s1113_s13 = sadd.s32 4294967295, %s1085_s12   ;;  %p849_p0 = scmp.ge.s32.totalorder %s1085_s12, 1  ;;  %s1085_s12 = sphi %s1107_s12, %s14_s12  }
   0x2   : > { %p141_p1 = scmp.lt.s32.totalorder %s1085_s12, 4 }
   0x4   : > { %p142_p2 = pnand %p849_p0, %p141_p1 }
   0x5   : > { %v233_v0 = vld [vmem:[%s1432_s1] sm:$0xff] (!%p142_p2)  ;;  %v234_v1 = vld [vmem:[%s1432_s1 + $0x8] sm:$0xff] (!%p142_p2)  ;;  %v235_v2 = vld [vmem:[%s1432_s1 + $0x10] sm:$0xff] (!%p142_p2)  ;;  %s169_s20 = smul.u32 (!%p142_p2), 48, %s1113_s13  ;;  %p181_p4 = scmp.lt.s32.totalorder (!%p142_p2), %s1113_s13, 2 }
   0x6   : > { %145 = sbr.rel (%p142_p2) target bundleno = 364 (0x16c), region = 28  ;;  %v1023_v3 = vpack.c.bf16 (!%p142_p2), %v234_v1, %v233_v0  ;;  %v236_v4 = vld [vmem:[%s1432_s1 + $0x18] sm:$0xff] (!%p142_p2)  ;;  %v237_v6 = vld [vmem:[%s1432_s1 + $0x20] sm:$0xff] (!%p142_p2)  ;;  %v238_v7 = vld [vmem:[%s1432_s1 + $0x28] sm:$0xff] (!%p142_p2) }
   0x7   : > { %v1027_v5 = vpack.c.bf16 (!%p142_p2), %v236_v4, %v235_v2  ;;  %p170_p3 = scmp.lt.s32.totalorder (!%p142_p2), %s169_s20, 143  ;;  %v1031_v8 = vpack.c.bf16 (!%p142_p2), %v238_v7, %v237_v6  ;;  %v239_v9 = vld [vmem:[%s1432_s1 + $0x30] sm:$0xff] (!%p142_p2)  ;;  %v240_v10 = vld [vmem:[%s1432_s1 + $0x38] sm:$0xff] (!%p142_p2)  ;;  %v241_v13 = vld [vmem:[%s1432_s1 + $0x40] sm:$0xff] (!%p142_p2) }
   0x8   : > { %1024 = vmatprep.subr.bf16.mxu0 (!%p142_p2), %v1023_v3  ;;  %1055 = vmatprep.subr.bf16.mxu1 (!%p142_p2), %v1023_v3  ;;  %v1035_v12 = vpack.c.bf16 (!%p142_p2), %v240_v10, %v239_v9  ;;  %v242_v14 = vld [vmem:[%s1432_s1 + $0x48] sm:$0xff] (!%p142_p2)  ;;  %v243_v16 = vld [vmem:[%s1432_s1 + $0x50] sm:$0xff] (!%p142_p2)  ;;  %v244_v17 = vld [vmem:[%s1432_s1 + $0x58] sm:$0xff] (!%p142_p2) }
   0x9   : > { %1026 = vmatpush3.bf16.msra.mxu0 (!%p142_p2), %v1023_v3  ;;  %1063 = vmatpush3.bf16.msra.mxu1 (!%p142_p2), %v1023_v3  ;;  %v1039_v15 = vpack.c.bf16 (!%p142_p2), %v242_v14, %v241_v13  ;;  %v1043_v19 = vpack.c.bf16 (!%p142_p2), %v244_v17, %v243_v16  ;;  %v245_v20 = vld [vmem:[%s1432_s1 + $0x60] sm:$0xff] (!%p142_p2)  ;;  %v246_v21 = vld [vmem:[%s1432_s1 + $0x68] sm:$0xff] (!%p142_p2)  ;;  %v247_v23 = vld [vmem:[%s1432_s1 + $0x70] sm:$0xff] (!%p142_p2) }
   0xa   : > { %1028 = vmatprep.subr.bf16.mxu0 (!%p142_p2), %v1027_v5  ;;  %1056 = vmatprep.subr.bf16.mxu1 (!%p142_p2), %v1027_v5  ;;  %v1047_v22 = vpack.c.bf16 (!%p142_p2), %v246_v21, %v245_v20  ;;  %v248_v24 = vld [vmem:[%s1432_s1 + $0x78] sm:$0xff] (!%p142_p2) }
   0xb   : > { %v1051_v25 = vpack.c.bf16 (!%p142_p2), %v248_v24, %v247_v23 }
   0xd   : > { %s1436_s20 = smov (!%p170_p3, %s169_s20), 143  ;;  %1030 = vmatpush3.bf16.msra.mxu0 %v1027_v5  ;;  %1064 = vmatpush3.bf16.msra.mxu1 %v1027_v5  ;;  %s1438_s13 = smov (!%p181_p4, %s1113_s13), 2 }
   0xe   : > { %s850_s4 = sshll.u32 %s1436_s20, 3  ;;  %1032 = vmatprep.subr.bf16.mxu0 %v1031_v8  ;;  %1057 = vmatprep.subr.bf16.mxu1 %v1031_v8  ;;  %s852_s20 = sshll.u32 %s1438_s13, 1 }
   0xf   : > { %s1150_s7 = scalar_lea.vmem %s1431_s0, %s850_s4  ;;  %s1229_s29 = scalar_lea.vmem %s1433_s2, %s850_s4 }
  0x10   : > { %v185_v11 = vld [vmem:[%s1150_s7] sm:$0xff]  ;;  %v186_v26 = vld [vmem:[%s1150_s7 + $0x8] sm:$0xff]  ;;  %v187_v28 = vld [vmem:[%s1150_s7 + $0x10] sm:$0xff]  ;;  %s184_s5 = scalar_lea.vmem %s1434_s3, %s852_s20 }
  0x11   : > { %951 = vmatprep.mubr.f32.mxu0 %v185_v11  ;;  %1034 = vmatpush3.bf16.msra.mxu0 %v1031_v8  ;;  %v209_v18 = vld [vmem:[%s1150_s7 + $0xc0] sm:$0xff]  ;;  %v210_v27 = vld [vmem:[%s1150_s7 + $0xc8] sm:$0xff]  ;;  %v211_v29 = vld [vmem:[%s1150_s7 + $0xd0] sm:$0xff] }
  0x12   : > { %1065 = vmatpush3.bf16.msra.mxu1 %v1031_v8  ;;  %1036 = vmatprep.subr.bf16.mxu0 %v1035_v12  ;;  %v188_v30 = vld [vmem:[%s1150_s7 + $0x18] sm:$0xff]  ;;  %v189_v32 = vld [vmem:[%s1150_s7 + $0x20] sm:$0xff]  ;;  %v190_v34 = vld [vmem:[%s1150_s7 + $0x28] sm:$0xff] }
  0x13   : > { %1058 = vmatprep.subr.bf16.mxu1 %v1035_v12  ;;  %987 = vmatprep.mubr.f32.mxu1 %v209_v18  ;;  %v212_v31 = vld [vmem:[%s1150_s7 + $0xd8] sm:$0xff]  ;;  %v213_v33 = vld [vmem:[%s1150_s7 + $0xe0] sm:$0xff]  ;;  %v214_v35 = vld [vmem:[%s1150_s7 + $0xe8] sm:$0xff] }
  0x14   : > { %v191_v36 = vld [vmem:[%s1150_s7 + $0x30] sm:$0xff]  ;;  %v192_v38 = vld [vmem:[%s1150_s7 + $0x38] sm:$0xff]  ;;  %v193_v40 = vld [vmem:[%s1150_s7 + $0x40] sm:$0xff] }
  0x15   : > { %1038 = vmatpush3.bf16.msra.mxu0 %v1035_v12  ;;  %v215_v37 = vld [vmem:[%s1150_s7 + $0xf0] sm:$0xff]  ;;  %v216_v39 = vld [vmem:[%s1150_s7 + $0xf8] sm:$0xff]  ;;  %v217_v41 = vld [vmem:[%s1150_s7 + $0x100] sm:$0xff] }
  0x16   : > { %1066 = vmatpush3.bf16.msra.mxu1 %v1035_v12  ;;  %1040 = vmatprep.subr.bf16.mxu0 %v1039_v15  ;;  %v194_v42 = vld [vmem:[%s1150_s7 + $0x48] sm:$0xff]  ;;  %v195_v44 = vld [vmem:[%s1150_s7 + $0x50] sm:$0xff]  ;;  %v196_v46 = vld [vmem:[%s1150_s7 + $0x58] sm:$0xff] }
  0x17   : > { %1059 = vmatprep.subr.bf16.mxu1 %v1039_v15  ;;  %v218_v43 = vld [vmem:[%s1150_s7 + $0x108] sm:$0xff]  ;;  %v219_v45 = vld [vmem:[%s1150_s7 + $0x110] sm:$0xff]  ;;  %v220_v47 = vld [vmem:[%s1150_s7 + $0x118] sm:$0xff] }
  0x18   : > { %v197_v48 = vld [vmem:[%s1150_s7 + $0x60] sm:$0xff]  ;;  %v198_v50 = vld [vmem:[%s1150_s7 + $0x68] sm:$0xff]  ;;  %v199_v52 = vld [vmem:[%s1150_s7 + $0x70] sm:$0xff] }
  0x19   : > { %1042 = vmatpush3.bf16.msra.mxu0 %v1039_v15  ;;  %v221_v49 = vld [vmem:[%s1150_s7 + $0x120] sm:$0xff]  ;;  %v222_v51 = vld [vmem:[%s1150_s7 + $0x128] sm:$0xff]  ;;  %v223_v53 = vld [vmem:[%s1150_s7 + $0x130] sm:$0xff] }
  0x1a   : > { %1067 = vmatpush3.bf16.msra.mxu1 %v1039_v15  ;;  %1044 = vmatprep.subr.bf16.mxu0 %v1043_v19  ;;  %v200_v54 = vld [vmem:[%s1150_s7 + $0x78] sm:$0xff]  ;;  %v201_v56 = vld [vmem:[%s1150_s7 + $0x80] sm:$0xff]  ;;  %v202_v58 = vld [vmem:[%s1150_s7 + $0x88] sm:$0xff] }
  0x1b   : > { %1060 = vmatprep.subr.bf16.mxu1 %v1043_v19  ;;  %v224_v55 = vld [vmem:[%s1150_s7 + $0x138] sm:$0xff]  ;;  %v225_v57 = vld [vmem:[%s1150_s7 + $0x140] sm:$0xff]  ;;  %v226_v59 = vld [vmem:[%s1150_s7 + $0x148] sm:$0xff] }
  0x1c   : > { %v203_v60 = vld [vmem:[%s1150_s7 + $0x90] sm:$0xff]  ;;  %v204_v62 = vld [vmem:[%s1150_s7 + $0x98] sm:$0xff]  ;;  %v205_v0 = vld [vmem:[%s1150_s7 + $0xa0] sm:$0xff] }
  0x1d   : > { %1046 = vmatpush3.bf16.msra.mxu0 %v1043_v19  ;;  %v227_v61 = vld [vmem:[%s1150_s7 + $0x150] sm:$0xff]  ;;  %v228_v63 = vld [vmem:[%s1150_s7 + $0x158] sm:$0xff]  ;;  %v229_v1 = vld [vmem:[%s1150_s7 + $0x160] sm:$0xff] }
  0x1e   : > { %1068 = vmatpush3.bf16.msra.mxu1 %v1043_v19  ;;  %1048 = vmatprep.subr.bf16.mxu0 %v1047_v22  ;;  %v206_v2 = vld [vmem:[%s1150_s7 + $0xa8] sm:$0xff]  ;;  %v207_v4 = vld [vmem:[%s1150_s7 + $0xb0] sm:$0xff]  ;;  %v208_v6 = vld [vmem:[%s1150_s7 + $0xb8] sm:$0xff] }
  0x1f   : > { %1061 = vmatprep.subr.bf16.mxu1 %v1047_v22  ;;  %v230_v3 = vld [vmem:[%s1150_s7 + $0x168] sm:$0xff]  ;;  %v231_v5 = vld [vmem:[%s1150_s7 + $0x170] sm:$0xff]  ;;  %v232_v7 = vld [vmem:[%s1150_s7 + $0x178] sm:$0xff] }
  0x21   : > { %1050 = vmatpush3.bf16.msra.mxu0 %v1047_v22 }
  0x22   : > { %1069 = vmatpush3.bf16.msra.mxu1 %v1047_v22  ;;  %1052 = vmatprep.subr.bf16.mxu0 %v1051_v25 }
  0x23   : > { %1062 = vmatprep.subr.bf16.mxu1 %v1051_v25 }
  0x25   : > { %1054 = vmatpush3.bf16.msra.mxu0 %v1051_v25 }
  0x26   : > { %1070 = vmatpush3.bf16.msra.mxu1 %v1051_v25 }
  0x28   : > { %952 = vmatmul.mubr.f32.vlgmr.msra.gmra.mrb[0].mxu0 %v186_v26 }
  0x29   : > { %988 = vmatmul.mubr.f32.vlgmr.msra.gmra.mrb[0].mxu1 %v210_v27  ;;  %954 = vmatprep.mubr.f32.mxu0 %v187_v28 }
  0x2a   : > { %990 = vmatprep.mubr.f32.mxu1 %v211_v29 }
  0x2c   : > { %955 = vmatmul.mubr.f32.gmra.mrb[2].mxu0 %v188_v30 }
  0x2d   : > { %991 = vmatmul.mubr.f32.gmra.mrb[2].mxu1 %v212_v31  ;;  %957 = vmatprep.mubr.f32.mxu0 %v189_v32 }
  0x2e   : > { %993 = vmatprep.mubr.f32.mxu1 %v213_v33 }
  0x30   : > { %958 = vmatmul.mubr.f32.gmra.mrb[4].mxu0 %v190_v34 }
  0x31   : > { %994 = vmatmul.mubr.f32.gmra.mrb[4].mxu1 %v214_v35  ;;  %960 = vmatprep.mubr.f32.mxu0 %v191_v36 }
  0x32   : > { %996 = vmatprep.mubr.f32.mxu1 %v215_v37 }
  0x34   : > { %961 = vmatmul.mubr.f32.gmra.mrb[6].mxu0 %v192_v38 }
  0x35   : > { %997 = vmatmul.mubr.f32.gmra.mrb[6].mxu1 %v216_v39  ;;  %963 = vmatprep.mubr.f32.mxu0 %v193_v40 }
  0x36   : > { %999 = vmatprep.mubr.f32.mxu1 %v217_v41 }
  0x38   : > { %964 = vmatmul.mubr.f32.gmra.mrb[8].mxu0 %v194_v42 }
  0x39   : > { %1000 = vmatmul.mubr.f32.gmra.mrb[8].mxu1 %v218_v43  ;;  %966 = vmatprep.mubr.f32.mxu0 %v195_v44 }
  0x3a   : > { %1002 = vmatprep.mubr.f32.mxu1 %v219_v45 }
  0x3c   : > { %967 = vmatmul.mubr.f32.gmra.mrb[10].mxu0 %v196_v46 }
  0x3d   : > { %1003 = vmatmul.mubr.f32.gmra.mrb[10].mxu1 %v220_v47  ;;  %969 = vmatprep.mubr.f32.mxu0 %v197_v48 }
  0x3e   : > { %1005 = vmatprep.mubr.f32.mxu1 %v221_v49 }
  0x40   : > { %970 = vmatmul.mubr.f32.gmra.mrb[12].mxu0 %v198_v50 }
  0x41   : > { %1006 = vmatmul.mubr.f32.gmra.mrb[12].mxu1 %v222_v51  ;;  %972 = vmatprep.mubr.f32.mxu0 %v199_v52 }
  0x42   : > { %1008 = vmatprep.mubr.f32.mxu1 %v223_v53 }
  0x44   : > { %973 = vmatmul.mubr.f32.gmra.mrb[14].mxu0 %v200_v54 }
  0x45   : > { %1009 = vmatmul.mubr.f32.gmra.mrb[14].mxu1 %v224_v55  ;;  %975 = vmatprep.mubr.f32.mxu0 %v201_v56 }
  0x46   : > { %1011 = vmatprep.mubr.f32.mxu1 %v225_v57 }
  0x48   : > { %976 = vmatmul.mubr.f32.gmra.mrb[16].mxu0 %v202_v58 }
  0x49   : > { %1012 = vmatmul.mubr.f32.gmra.mrb[16].mxu1 %v226_v59  ;;  %978 = vmatprep.mubr.f32.mxu0 %v203_v60 }
  0x4a   : > { %1014 = vmatprep.mubr.f32.mxu1 %v227_v61 }
  0x4c   : > { %979 = vmatmul.mubr.f32.gmra.mrb[18].mxu0 %v204_v62 }
  0x4d   : > { %1015 = vmatmul.mubr.f32.gmra.mrb[18].mxu1 %v228_v63  ;;  %981 = vmatprep.mubr.f32.mxu0 %v205_v0 }
  0x4e   : > { %1017 = vmatprep.mubr.f32.mxu1 %v229_v1 }
  0x50   : > { %982 = vmatmul.mubr.f32.gmra.mrb[20].mxu0 %v206_v2 }
  0x51   : > { %1018 = vmatmul.mubr.f32.gmra.mrb[20].mxu1 %v230_v3  ;;  %984 = vmatprep.mubr.f32.mxu0 %v207_v4 }
  0x52   : > { %1020 = vmatprep.mubr.f32.mxu1 %v231_v5 }
  0x54   : > { %985 = vmatmul.mubr.f32.gmra.mrb[22].mxu0 %v208_v6 }
  0x55   : > { %1021 = vmatmul.mubr.f32.gmra.mrb[22].mxu1 %v232_v7 }
  0xfb   : > { %v953_v8 = vpop.f32.mrb[0].mxu0 }
  0xfc   : > { %v1231_v9 = vpop.f32.mrb[0].mxu1  ;;  %555 = vst [vmem:[%s1229_s29 + $0x8] sm:$0xff] %v953_v8  ;;  %v657_v10 = vmul.f32 %v953_v8, %v953_v8  ;;  %v315_v11 = vpop.f32.mrb[1].mxu0 }
  0xfd   : > { %579 = vst [vmem:[%s1229_s29 + $0xc8] sm:$0xff] %v1231_v9  ;;  %v1236_v12 = vpop.f32.mrb[1].mxu1  ;;  %554 = vst [vmem:[%s1229_s29] sm:$0xff] %v315_v11  ;;  %v602_v13 = vadd.f32 %v953_v8, %v315_v11  ;;  %v656_v14 = vmul.f32 %v315_v11, %v315_v11 }
  0xfe   : > { %578 = vst [vmem:[%s1229_s29 + $0xc0] sm:$0xff] %v1236_v12 }
  0xff   : > { %v704_v15 = vadd.f32 %v657_v10, %v656_v14  ;;  %v956_v16 = vpop.f32.mrb[2].mxu0 }
 0x100   : > { %v1241_v17 = vpop.f32.mrb[2].mxu1  ;;  %557 = vst [vmem:[%s1229_s29 + $0x18] sm:$0xff] %v956_v16  ;;  %v325_v18 = vpop.f32.mrb[3].mxu0  ;;  %v659_v22 = vmul.f32 %v956_v16, %v956_v16 }
 0x101   : > { %581 = vst [vmem:[%s1229_s29 + $0xd8] sm:$0xff] %v1241_v17  ;;  %v1246_v19 = vpop.f32.mrb[3].mxu1  ;;  %556 = vst [vmem:[%s1229_s29 + $0x10] sm:$0xff] %v325_v18  ;;  %v603_v20 = vadd.f32 %v602_v13, %v325_v18  ;;  %v658_v21 = vmul.f32 %v325_v18, %v325_v18 }
 0x102   : > { %580 = vst [vmem:[%s1229_s29 + $0xd0] sm:$0xff] %v1246_v19 }
 0x103   : > { %v705_v23 = vadd.f32 %v704_v15, %v658_v21  ;;  %v959_v24 = vpop.f32.mrb[4].mxu0  ;;  %v604_v25 = vadd.f32 %v956_v16, %v603_v20 }
 0x104   : > { %v1251_v26 = vpop.f32.mrb[4].mxu1  ;;  %559 = vst [vmem:[%s1229_s29 + $0x28] sm:$0xff] %v959_v24  ;;  %v335_v27 = vpop.f32.mrb[5].mxu0  ;;  %v661_v32 = vmul.f32 %v959_v24, %v959_v24 }
 0x105   : > { %583 = vst [vmem:[%s1229_s29 + $0xe8] sm:$0xff] %v1251_v26  ;;  %v1256_v28 = vpop.f32.mrb[5].mxu1  ;;  %558 = vst [vmem:[%s1229_s29 + $0x20] sm:$0xff] %v335_v27  ;;  %v605_v29 = vadd.f32 %v604_v25, %v335_v27  ;;  %v660_v30 = vmul.f32 %v335_v27, %v335_v27  ;;  %v706_v31 = vadd.f32 %v705_v23, %v659_v22 }
 0x106   : > { %582 = vst [vmem:[%s1229_s29 + $0xe0] sm:$0xff] %v1256_v28 }
 0x107   : > { %v707_v33 = vadd.f32 %v706_v31, %v660_v30  ;;  %v962_v34 = vpop.f32.mrb[6].mxu0  ;;  %v606_v35 = vadd.f32 %v959_v24, %v605_v29 }
 0x108   : > { %v1261_v36 = vpop.f32.mrb[6].mxu1  ;;  %561 = vst [vmem:[%s1229_s29 + $0x38] sm:$0xff] %v962_v34  ;;  %v345_v37 = vpop.f32.mrb[7].mxu0  ;;  %v663_v42 = vmul.f32 %v962_v34, %v962_v34 }
 0x109   : > { %585 = vst [vmem:[%s1229_s29 + $0xf8] sm:$0xff] %v1261_v36  ;;  %v1266_v38 = vpop.f32.mrb[7].mxu1  ;;  %560 = vst [vmem:[%s1229_s29 + $0x30] sm:$0xff] %v345_v37  ;;  %v607_v39 = vadd.f32 %v606_v35, %v345_v37  ;;  %v662_v40 = vmul.f32 %v345_v37, %v345_v37  ;;  %v708_v41 = vadd.f32 %v707_v33, %v661_v32 }
 0x10a   : > { %584 = vst [vmem:[%s1229_s29 + $0xf0] sm:$0xff] %v1266_v38 }
 0x10b   : > { %v709_v43 = vadd.f32 %v708_v41, %v662_v40  ;;  %v965_v44 = vpop.f32.mrb[8].mxu0  ;;  %v608_v45 = vadd.f32 %v962_v34, %v607_v39 }
 0x10c   : > { %v1271_v46 = vpop.f32.mrb[8].mxu1  ;;  %563 = vst [vmem:[%s1229_s29 + $0x48] sm:$0xff] %v965_v44  ;;  %v355_v47 = vpop.f32.mrb[9].mxu0  ;;  %v665_v52 = vmul.f32 %v965_v44, %v965_v44 }
 0x10d   : > { %587 = vst [vmem:[%s1229_s29 + $0x108] sm:$0xff] %v1271_v46  ;;  %v1276_v48 = vpop.f32.mrb[9].mxu1  ;;  %562 = vst [vmem:[%s1229_s29 + $0x40] sm:$0xff] %v355_v47  ;;  %v609_v49 = vadd.f32 %v608_v45, %v355_v47  ;;  %v664_v50 = vmul.f32 %v355_v47, %v355_v47  ;;  %v710_v51 = vadd.f32 %v709_v43, %v663_v42 }
 0x10e   : > { %586 = vst [vmem:[%s1229_s29 + $0x100] sm:$0xff] %v1276_v48 }
 0x10f   : > { %v711_v53 = vadd.f32 %v710_v51, %v664_v50  ;;  %v968_v54 = vpop.f32.mrb[10].mxu0  ;;  %v610_v55 = vadd.f32 %v965_v44, %v609_v49 }
 0x110   : > { %v1281_v56 = vpop.f32.mrb[10].mxu1  ;;  %565 = vst [vmem:[%s1229_s29 + $0x58] sm:$0xff] %v968_v54  ;;  %v365_v57 = vpop.f32.mrb[11].mxu0  ;;  %v667_v62 = vmul.f32 %v968_v54, %v968_v54 }
 0x111   : > { %589 = vst [vmem:[%s1229_s29 + $0x118] sm:$0xff] %v1281_v56  ;;  %v1286_v58 = vpop.f32.mrb[11].mxu1  ;;  %564 = vst [vmem:[%s1229_s29 + $0x50] sm:$0xff] %v365_v57  ;;  %v611_v59 = vadd.f32 %v610_v55, %v365_v57  ;;  %v666_v60 = vmul.f32 %v365_v57, %v365_v57  ;;  %v712_v61 = vadd.f32 %v711_v53, %v665_v52 }
 0x112   : > { %588 = vst [vmem:[%s1229_s29 + $0x110] sm:$0xff] %v1286_v58 }
 0x113   : > { %v713_v63 = vadd.f32 %v712_v61, %v666_v60  ;;  %v971_v0 = vpop.f32.mrb[12].mxu0  ;;  %v612_v1 = vadd.f32 %v968_v54, %v611_v59 }
 0x114   : > { %v1291_v2 = vpop.f32.mrb[12].mxu1  ;;  %567 = vst [vmem:[%s1229_s29 + $0x68] sm:$0xff] %v971_v0  ;;  %v375_v3 = vpop.f32.mrb[13].mxu0  ;;  %v669_v8 = vmul.f32 %v971_v0, %v971_v0 }
 0x115   : > { %591 = vst [vmem:[%s1229_s29 + $0x128] sm:$0xff] %v1291_v2  ;;  %v1296_v4 = vpop.f32.mrb[13].mxu1  ;;  %566 = vst [vmem:[%s1229_s29 + $0x60] sm:$0xff] %v375_v3  ;;  %v613_v5 = vadd.f32 %v612_v1, %v375_v3  ;;  %v668_v6 = vmul.f32 %v375_v3, %v375_v3  ;;  %v714_v7 = vadd.f32 %v713_v63, %v667_v62 }
 0x116   : > { %590 = vst [vmem:[%s1229_s29 + $0x120] sm:$0xff] %v1296_v4 }
 0x117   : > { %v715_v10 = vadd.f32 %v714_v7, %v668_v6  ;;  %v974_v11 = vpop.f32.mrb[14].mxu0  ;;  %v614_v13 = vadd.f32 %v971_v0, %v613_v5 }
 0x118   : > { %v1301_v14 = vpop.f32.mrb[14].mxu1  ;;  %569 = vst [vmem:[%s1229_s29 + $0x78] sm:$0xff] %v974_v11  ;;  %v385_v15 = vpop.f32.mrb[15].mxu0  ;;  %v671_v22 = vmul.f32 %v974_v11, %v974_v11 }
 0x119   : > { %593 = vst [vmem:[%s1229_s29 + $0x138] sm:$0xff] %v1301_v14  ;;  %v1306_v16 = vpop.f32.mrb[15].mxu1  ;;  %568 = vst [vmem:[%s1229_s29 + $0x70] sm:$0xff] %v385_v15  ;;  %v615_v18 = vadd.f32 %v614_v13, %v385_v15  ;;  %v670_v20 = vmul.f32 %v385_v15, %v385_v15  ;;  %v716_v21 = vadd.f32 %v715_v10, %v669_v8 }
 0x11a   : > { %592 = vst [vmem:[%s1229_s29 + $0x130] sm:$0xff] %v1306_v16  ;;  %v680_v13 = vmul.f32 %v1236_v12, %v1236_v12 }
 0x11b   : > { %v717_v23 = vadd.f32 %v716_v21, %v670_v20  ;;  %v977_v24 = vpop.f32.mrb[16].mxu0  ;;  %v616_v25 = vadd.f32 %v974_v11, %v615_v18  ;;  %v681_v20 = vmul.f32 %v1231_v9, %v1231_v9 }
 0x11c   : > { %v1311_v27 = vpop.f32.mrb[16].mxu1  ;;  %571 = vst [vmem:[%s1229_s29 + $0x88] sm:$0xff] %v977_v24  ;;  %v395_v29 = vpop.f32.mrb[17].mxu0  ;;  %v673_v34 = vmul.f32 %v977_v24, %v977_v24 }
 0x11d   : > { %595 = vst [vmem:[%s1229_s29 + $0x148] sm:$0xff] %v1311_v27  ;;  %v1316_v30 = vpop.f32.mrb[17].mxu1  ;;  %570 = vst [vmem:[%s1229_s29 + $0x80] sm:$0xff] %v395_v29  ;;  %v617_v31 = vadd.f32 %v616_v25, %v395_v29  ;;  %v672_v32 = vmul.f32 %v395_v29, %v395_v29  ;;  %v718_v33 = vadd.f32 %v717_v23, %v671_v22 }
 0x11e   : > { %594 = vst [vmem:[%s1229_s29 + $0x140] sm:$0xff] %v1316_v30  ;;  %v682_v23 = vmul.f32 %v1246_v19, %v1246_v19  ;;  %v683_v29 = vmul.f32 %v1241_v17, %v1241_v17 }
 0x11f   : > { %v719_v35 = vadd.f32 %v718_v33, %v672_v32  ;;  %v980_v37 = vpop.f32.mrb[18].mxu0  ;;  %v618_v39 = vadd.f32 %v977_v24, %v617_v31 }
 0x120   : > { %v1321_v40 = vpop.f32.mrb[18].mxu1  ;;  %573 = vst [vmem:[%s1229_s29 + $0x98] sm:$0xff] %v980_v37  ;;  %v405_v41 = vpop.f32.mrb[19].mxu0  ;;  %v675_v47 = vmul.f32 %v980_v37, %v980_v37 }
 0x121   : > { %597 = vst [vmem:[%s1229_s29 + $0x158] sm:$0xff] %v1321_v40  ;;  %v1326_v42 = vpop.f32.mrb[19].mxu1  ;;  %572 = vst [vmem:[%s1229_s29 + $0x90] sm:$0xff] %v405_v41  ;;  %v619_v43 = vadd.f32 %v618_v39, %v405_v41  ;;  %v674_v44 = vmul.f32 %v405_v41, %v405_v41  ;;  %v720_v45 = vadd.f32 %v719_v35, %v673_v34 }
 0x122   : > { %596 = vst [vmem:[%s1229_s29 + $0x150] sm:$0xff] %v1326_v42 }
 0x123   : > { %v721_v49 = vadd.f32 %v720_v45, %v674_v44  ;;  %v983_v50 = vpop.f32.mrb[20].mxu0  ;;  %v620_v51 = vadd.f32 %v980_v37, %v619_v43 }
 0x124   : > { %v1331_v52 = vpop.f32.mrb[20].mxu1  ;;  %575 = vst [vmem:[%s1229_s29 + $0xa8] sm:$0xff] %v983_v50  ;;  %v415_v53 = vpop.f32.mrb[21].mxu0  ;;  %v677_v60 = vmul.f32 %v983_v50, %v983_v50 }
 0x125   : > { %599 = vst [vmem:[%s1229_s29 + $0x168] sm:$0xff] %v1331_v52  ;;  %v1336_v54 = vpop.f32.mrb[21].mxu1  ;;  %574 = vst [vmem:[%s1229_s29 + $0xa0] sm:$0xff] %v415_v53  ;;  %v621_v55 = vadd.f32 %v620_v51, %v415_v53  ;;  %v676_v57 = vmul.f32 %v415_v53, %v415_v53  ;;  %v722_v59 = vadd.f32 %v721_v49, %v675_v47 }
 0x126   : > { %598 = vst [vmem:[%s1229_s29 + $0x160] sm:$0xff] %v1336_v54 }
 0x127   : > { %v723_v61 = vadd.f32 %v722_v59, %v676_v57  ;;  %v986_v62 = vpop.f32.mrb[22].mxu0  ;;  %v622_v63 = vadd.f32 %v983_v50, %v621_v55 }
 0x128   : > { %v1341_v0 = vpop.f32.mrb[22].mxu1  ;;  %577 = vst [vmem:[%s1229_s29 + $0xb8] sm:$0xff] %v986_v62  ;;  %v425_v1 = vpop.f32.mrb[23].mxu0  ;;  %v679_v8 = vmul.f32 %v986_v62, %v986_v62 }
 0x129   : > { %601 = vst [vmem:[%s1229_s29 + $0x178] sm:$0xff] %v1341_v0  ;;  %v1346_v3 = vpop.f32.mrb[23].mxu1  ;;  %576 = vst [vmem:[%s1229_s29 + $0xb0] sm:$0xff] %v425_v1  ;;  %v623_v5 = vadd.f32 %v622_v63, %v425_v1  ;;  %v678_v6 = vmul.f32 %v425_v1, %v425_v1  ;;  %v724_v7 = vadd.f32 %v723_v61, %v677_v60 }
 0x12a   : > { %600 = vst [vmem:[%s1229_s29 + $0x170] sm:$0xff] %v1346_v3 }
 0x12b   : > { %v624_v10 = vadd.f32 %v986_v62, %v623_v5  ;;  %v725_v11 = vadd.f32 %v724_v7, %v678_v6 }
 0x12d   : > { %v726_v15 = vadd.f32 %v725_v11, %v679_v8  ;;  %v625_v18 = vadd.f32 %v624_v10, %v1236_v12  ;;  %v684_v12 = vmul.f32 %v1256_v28, %v1256_v28 }
 0x12f   : > { %v727_v21 = vadd.f32 %v726_v15, %v680_v13  ;;  %v626_v22 = vadd.f32 %v1231_v9, %v625_v18  ;;  %v685_v9 = vmul.f32 %v1251_v26, %v1251_v26 }
 0x131   : > { %v627_v24 = vadd.f32 %v626_v22, %v1246_v19  ;;  %v728_v25 = vadd.f32 %v727_v21, %v681_v20  ;;  %v686_v19 = vmul.f32 %v1266_v38, %v1266_v38  ;;  %v700_v20 = vmul.f32 %v1336_v54, %v1336_v54 }
 0x132   : > { %v701_v22 = vmul.f32 %v1331_v52, %v1331_v52 }
 0x133   : > { %v729_v31 = vadd.f32 %v728_v25, %v682_v23  ;;  %v628_v32 = vadd.f32 %v1241_v17, %v627_v24  ;;  %v687_v17 = vmul.f32 %v1261_v36, %v1261_v36  ;;  %v702_v24 = vmul.f32 %v1346_v3, %v1346_v3 }
 0x135   : > { %v629_v33 = vadd.f32 %v628_v32, %v1256_v28  ;;  %v730_v34 = vadd.f32 %v729_v31, %v683_v29  ;;  %v688_v28 = vmul.f32 %v1276_v48, %v1276_v48 }
 0x137   : > { %v731_v35 = vadd.f32 %v730_v34, %v684_v12  ;;  %v630_v37 = vadd.f32 %v1251_v26, %v629_v33  ;;  %v689_v26 = vmul.f32 %v1271_v46, %v1271_v46 }
 0x139   : > { %v631_v39 = vadd.f32 %v630_v37, %v1266_v38  ;;  %v732_v41 = vadd.f32 %v731_v35, %v685_v9  ;;  %v690_v38 = vmul.f32 %v1286_v58, %v1286_v58 }
 0x13b   : > { %v733_v43 = vadd.f32 %v732_v41, %v686_v19  ;;  %v632_v44 = vadd.f32 %v1261_v36, %v631_v39  ;;  %v691_v36 = vmul.f32 %v1281_v56, %v1281_v56 }
 0x13d   : > { %v633_v45 = vadd.f32 %v632_v44, %v1276_v48  ;;  %v734_v47 = vadd.f32 %v733_v43, %v687_v17  ;;  %v692_v48 = vmul.f32 %v1296_v4, %v1296_v4 }
 0x13f   : > { %v735_v49 = vadd.f32 %v734_v47, %v688_v28  ;;  %v634_v50 = vadd.f32 %v1271_v46, %v633_v45  ;;  %v693_v46 = vmul.f32 %v1291_v2, %v1291_v2 }
 0x141   : > { %v635_v51 = vadd.f32 %v634_v50, %v1286_v58  ;;  %v736_v53 = vadd.f32 %v735_v49, %v689_v26  ;;  %v694_v58 = vmul.f32 %v1306_v16, %v1306_v16 }
 0x143   : > { %v737_v55 = vadd.f32 %v736_v53, %v690_v38  ;;  %v636_v57 = vadd.f32 %v1281_v56, %v635_v51  ;;  %v695_v56 = vmul.f32 %v1301_v14, %v1301_v14 }
 0x145   : > { %v637_v59 = vadd.f32 %v636_v57, %v1296_v4  ;;  %v738_v60 = vadd.f32 %v737_v55, %v691_v36  ;;  %v696_v4 = vmul.f32 %v1316_v30, %v1316_v30 }
 0x147   : > { %v739_v61 = vadd.f32 %v738_v60, %v692_v48  ;;  %v638_v62 = vadd.f32 %v1291_v2, %v637_v59  ;;  %v697_v2 = vmul.f32 %v1311_v27, %v1311_v27 }
 0x149   : > { %v639_v63 = vadd.f32 %v638_v62, %v1306_v16  ;;  %v740_v1 = vadd.f32 %v739_v61, %v693_v46  ;;  %v698_v16 = vmul.f32 %v1326_v42, %v1326_v42 }
 0x14b   : > { %v741_v5 = vadd.f32 %v740_v1, %v694_v58  ;;  %v640_v6 = vadd.f32 %v1301_v14, %v639_v63  ;;  %v699_v14 = vmul.f32 %v1321_v40, %v1321_v40 }
 0x14d   : > { %v641_v7 = vadd.f32 %v640_v6, %v1316_v30  ;;  %v742_v8 = vadd.f32 %v741_v5, %v695_v56 }
 0x14f   : > { %v743_v10 = vadd.f32 %v742_v8, %v696_v4  ;;  %v642_v11 = vadd.f32 %v1311_v27, %v641_v7 }
 0x151   : > { %v643_v13 = vadd.f32 %v642_v11, %v1326_v42  ;;  %v744_v15 = vadd.f32 %v743_v10, %v697_v2 }
 0x153   : > { %v745_v18 = vadd.f32 %v744_v15, %v698_v16  ;;  %v644_v30 = vadd.f32 %v1321_v40, %v643_v13  ;;  %v703_v40 = vmul.f32 %v1341_v0, %v1341_v0 }
 0x155   : > { %v645_v21 = vadd.f32 %v644_v30, %v1336_v54  ;;  %v746_v27 = vadd.f32 %v745_v18, %v699_v14 }
 0x157   : > { %v747_v23 = vadd.f32 %v746_v27, %v700_v20  ;;  %v646_v42 = vadd.f32 %v1331_v52, %v645_v21 }
 0x159   : > { %v647_v25 = vadd.f32 %v646_v42, %v1346_v3  ;;  %v748_v29 = vadd.f32 %v747_v23, %v701_v22 }
 0x15b   : > { %v648_v31 = vadd.f32 %v1341_v0, %v647_v25  ;;  %v749_v54 = vadd.f32 %v748_v29, %v702_v24 }
 0x15d   : > { %v649_v32 = vrot.slane %v648_v31, 4  ;;  %v750_v12 = vadd.f32 %v749_v54, %v703_v40 }
 0x15f   : > { %v650_v33 = vadd.f32 %v649_v32, %v648_v31  ;;  %v751_v34 = vrot.slane %v750_v12, 4 }
 0x161   : > { %v651_v9 = vrot.slane %v650_v33, 2  ;;  %v752_v52 = vadd.f32 %v751_v34, %v750_v12 }
 0x163   : > { %v652_v35 = vadd.f32 %v651_v9, %v650_v33  ;;  %v753_v37 = vrot.slane %v752_v52, 2 }
 0x165   : > { %v653_v19 = vrot.slane %v652_v35, 1  ;;  %v754_v3 = vadd.f32 %v753_v37, %v752_v52 }
 0x167   : > { %v654_v39 = vadd.f32 %v653_v19, %v652_v35  ;;  %v755_v41 = vrot.slane %v754_v3, 1 }
 0x169   : > { %655 = vst [vmem:[%s184_s5] sm:$0x1] %v654_v39  ;;  %v756_v0 = vadd.f32 %v755_v41, %v754_v3 }
 0x16b   : > { %757 = vst [vmem:[%s184_s5 + $0x1] sm:$0x1] %v756_v0 }
 0x16c PF: > { %s14_s12 = sadd.s32 1, %s1085_s12  }
 0x16d   : > { %p11_p5 = scmp.ge.s32.totalorder %s14_s12, 5  }
 0x16f   :  { %13 = sbr.rel (!%p11_p5) target bundleno = 1 (0x1), region = 70 }

</bundles_post_ra>
